<compile_context>
chip_gen: v6e
topology: v6e:2x2x1
jax: 0.10.0
libtpu: 0.0.40
codegen_flags: <defaults>
</compile_context>

<pallas_src>
import functools
import math

import jax
import jax.numpy as jnp
from jax import lax
from jax.experimental import pallas as pl
from jax.experimental.pallas import tpu as pltpu

HIDDEN = 1024
LSTM_H = 512
NUM_HEADS = 8
LEAK = 0.01           # nn.LeakyReLU default negative_slope
LOGIT_PAD = 128       # lane-dense padded width for the 2-wide logits
NEG_BIAS = -1e9       # additive attention-mask bias for disallowed pairs

_VMEM_SPEC = pl.BlockSpec(memory_space=pltpu.MemorySpace.VMEM)


def _vmem_limit_bytes():
    # v7x has only 64 MiB VMEM/TC: the streamed LSTM weight double-buffer
    # (~24 MiB) + scratch must stay within ~40 MiB.  v5e/v6e (128 MiB) get up
    # to 96 MiB.
    try:
        cap = int(pltpu.get_tpu_info().vmem_capacity_bytes)
    except Exception:
        cap = 64 * 1024 * 1024
    return max(32 * 1024 * 1024, min(cap - 24 * 1024 * 1024, 96 * 1024 * 1024))


_CPARAMS = pltpu.CompilerParams(vmem_limit_bytes=_vmem_limit_bytes())
_CPARAMS_LSTM = pltpu.CompilerParams(vmem_limit_bytes=_vmem_limit_bytes(),
                                     dimension_semantics=("arbitrary",))


def _round_up(x, m):
    return ((x + m - 1) // m) * m


# ----------------------------------------------------------------------------
# Dense layer kernel: y = act(x @ W + b)   (W is bf16, accumulation f32)
# ----------------------------------------------------------------------------
def _linear_kernel(x_ref, w_ref, b_ref, o_ref, *, activation):
    y = jnp.dot(x_ref[...].astype(jnp.bfloat16), w_ref[...],
                preferred_element_type=jnp.float32) + b_ref[...]
    if activation == "leaky_relu":
        y = jnp.where(y >= 0, y, LEAK * y)
    elif activation == "tanh":
        y = jnp.tanh(y)
    o_ref[...] = y.astype(o_ref.dtype)


def linear(x, w, b, activation=None, out_dtype=jnp.float32):
    # TODO(synk): if ever used with large M (real encoder, B*S >> 64), tile M
    # with a grid + resident-weight BlockSpec and dimension_semantics=("parallel",).
    m = x.shape[0]
    n = w.shape[1]
    return pl.pallas_call(
        functools.partial(_linear_kernel, activation=activation),
        out_shape=jax.ShapeDtypeStruct((m, n), out_dtype),
        in_specs=[_VMEM_SPEC] * 3,
        out_specs=_VMEM_SPEC,
        compiler_params=_CPARAMS,
    )(x, w, b)


# ----------------------------------------------------------------------------
# Fused 2-layer bidirectional LSTM + pooling linear over a batch of padded
# spans.  grid=(2,) over the LSTM layers: per-layer weights are streamed
# (double-buffered) by the Pallas pipeline; fwd/bwd recurrences of a layer are
# interleaved inside one fori_loop step.
#   x_ref    : (T*N, 1024) bf16, time-major rows (row t*N+n = span n at time t)
#   lens_ref : (N, 1)      i32, true span lengths (0 for padded span slots)
#   wih_ref  : (1024, 8H)  bf16, [fwd W_ih | bwd W_ih] of the current layer
#   whhf/whhb: (H, 4H)     bf16, recurrent weights of the current layer
#   b_ref    : (1, 8H)     f32,  [fwd (b_ih+b_hh) | bwd (b_ih+b_hh)]
#   out_ref  : (N, 1024)   bf16, leaky_relu([h1_fwd | h1_bwd] @ W_pool + b_pool)
# PyTorch gate order (i, f, g, o).
# ----------------------------------------------------------------------------
def _bilstm2_pool_kernel(x_ref, lens_ref, wih_ref, whhf_ref, whhb_ref, b_ref,
                         pw_ref, pb_ref, out_ref,
                         xg_scr, l0_scr, hf, hb, cf, cb, *, N, T, H):
    layer = pl.program_id(0)
    lens = lens_ref[...]                                  # (N, 1) int32
    G = 4 * H

    # Fused fwd+bwd input projection for this layer, hoisted off the recurrence.
    @pl.when(layer == 0)
    def _():
        xg_scr[...] = jnp.dot(x_ref[...], wih_ref[...],
                              preferred_element_type=jnp.float32) + b_ref[...]

    @pl.when(layer == 1)
    def _():
        xg_scr[...] = jnp.dot(l0_scr[...].astype(jnp.bfloat16), wih_ref[...],
                              preferred_element_type=jnp.float32) + b_ref[...]

    hf[...] = jnp.zeros_like(hf)
    hb[...] = jnp.zeros_like(hb)
    cf[...] = jnp.zeros_like(cf)
    cb[...] = jnp.zeros_like(cb)

    def gates(g, c_prev):
        i_g = jax.nn.sigmoid(g[:, 0:H])
        f_g = jax.nn.sigmoid(g[:, H:2 * H])
        g_g = jnp.tanh(g[:, 2 * H:3 * H])
        o_g = jax.nn.sigmoid(g[:, 3 * H:4 * H])
        c_new = f_g * c_prev + i_g * g_g
        return o_g * jnp.tanh(c_new), c_new

    def step(t, carry):
        tf = t
        tb = T - 1 - t
        row_f = pl.multiple_of(tf * N, N)
        row_b = pl.multiple_of(tb * N, N)
        # Interleaved directions: one direction's EUP/VPU gate work hides the
        # other's small recurrent MXU push.
        g_f = xg_scr[pl.ds(row_f, N), pl.ds(0, G)] + jnp.dot(
            hf[...].astype(jnp.bfloat16), whhf_ref[...],
            preferred_element_type=jnp.float32)
        g_b = xg_scr[pl.ds(row_b, N), pl.ds(G, G)] + jnp.dot(
            hb[...].astype(jnp.bfloat16), whhb_ref[...],
            preferred_element_type=jnp.float32)
        hf_new, cf_new = gates(g_f, cf[...])
        hb_new, cb_new = gates(g_b, cb[...])
        # mask state updates past each span's true length
        vf = (tf < lens).astype(jnp.float32)              # (N, 1)
        vb = (tb < lens).astype(jnp.float32)
        cf[...] = vf * cf_new + (1.0 - vf) * cf[...]
        cb[...] = vb * cb_new + (1.0 - vb) * cb[...]
        hf_upd = vf * hf_new + (1.0 - vf) * hf[...]
        hb_upd = vb * hb_new + (1.0 - vb) * hb[...]
        hf[...] = hf_upd
        hb[...] = hb_upd
        # Store the layer-0 sequence output (harmless redundant store on
        # layer 1: xg for layer 1 was already computed above).
        l0_scr[pl.ds(row_f, N), pl.ds(0, H)] = hf_upd
        l0_scr[pl.ds(row_b, N), pl.ds(H, H)] = hb_upd
        return carry

    lax.fori_loop(0, T, step, 0)

    # Fused pooling head after the last layer:
    #   leaky_relu([h1_fwd | h1_bwd] @ W_pool + b_pool)
    @pl.when(layer == 1)
    def _():
        pooled = (jnp.dot(hf[...].astype(jnp.bfloat16), pw_ref[0:H, :],
                          preferred_element_type=jnp.float32) +
                  jnp.dot(hb[...].astype(jnp.bfloat16), pw_ref[H:2 * H, :],
                          preferred_element_type=jnp.float32) + pb_ref[...])
        pooled = jnp.where(pooled >= 0, pooled, LEAK * pooled)
        out_ref[...] = pooled.astype(out_ref.dtype)


def bilstm2_pool(x, lens, lstm_p, pool_w, pool_b, N, T):
    """All spans (padded) of one parameter set in one call; weights streamed
    per layer over a 2-step 'arbitrary' grid."""
    H = LSTM_H
    const2 = lambda l: (0, 0)
    return pl.pallas_call(
        functools.partial(_bilstm2_pool_kernel, N=N, T=T, H=H),
        grid=(2,),
        out_shape=jax.ShapeDtypeStruct((N, HIDDEN), jnp.bfloat16),
        in_specs=[
            pl.BlockSpec((T * N, HIDDEN), const2),                       # x (bf16)
            pl.BlockSpec((N, 1), const2),                                # lens
            pl.BlockSpec((None, HIDDEN, 8 * H), lambda l: (l, 0, 0)),    # W_ih [f|b]
            pl.BlockSpec((None, H, 4 * H), lambda l: (l, 0, 0)),         # W_hh fwd
            pl.BlockSpec((None, H, 4 * H), lambda l: (l, 0, 0)),         # W_hh bwd
            pl.BlockSpec((None, 1, 8 * H), lambda l: (l, 0, 0)),         # bias [f|b]
            pl.BlockSpec((HIDDEN, HIDDEN), const2),                      # pool W
            pl.BlockSpec((1, HIDDEN), const2),                           # pool b
        ],
        out_specs=pl.BlockSpec((N, HIDDEN), const2),
        scratch_shapes=[
            pltpu.VMEM((T * N, 8 * H), jnp.float32),   # hoisted x@W_ih (both dirs)
            pltpu.VMEM((T * N, 2 * H), jnp.float32),   # layer-0 sequence output
            pltpu.VMEM((N, H), jnp.float32),           # h fwd
            pltpu.VMEM((N, H), jnp.float32),           # h bwd
            pltpu.VMEM((N, H), jnp.float32),           # c fwd
            pltpu.VMEM((N, H), jnp.float32),           # c bwd
        ],
        compiler_params=_CPARAMS_LSTM,
    )(x, lens, lstm_p["wih"], lstm_p["whh_f"], lstm_p["whh_b"], lstm_p["b"],
      pool_w, pool_b)


# ----------------------------------------------------------------------------
# Fused multi-head cross attention over ALL tables / columns of the batch.
# Q/K/V projections computed once; per-table routing via an additive mask bias;
# bf16 MXU operands; head outputs accumulated straight into the output
# projection; residual + L2 normalize fused; zero-column rows guarded.
# ----------------------------------------------------------------------------
def _cross_attn_kernel(tq_ref, kv_ref, bias_ref,
                       wq, wk, wv, wo, bq, bk, bv, bo,
                       o_ref, *, num_heads):
    tq = tq_ref[...]                                      # (Nt, E) bf16
    kv = kv_ref[...]                                      # (Nc, E) bf16
    q = jnp.dot(tq, wq[...], preferred_element_type=jnp.float32) + bq[...]
    k = jnp.dot(kv, wk[...], preferred_element_type=jnp.float32) + bk[...]
    v = jnp.dot(kv, wv[...], preferred_element_type=jnp.float32) + bv[...]
    nt, E = q.shape
    hd = E // num_heads
    scale = 1.0 / math.sqrt(hd)
    bias = bias_ref[...]                                  # (Nt, Nc): 0 / -1e9
    row_valid = (jnp.max(bias, axis=1, keepdims=True) > -1.0).astype(jnp.float32)
    qb = (q * scale).astype(jnp.bfloat16)
    kb = k.astype(jnp.bfloat16)
    vb = v.astype(jnp.bfloat16)
    attn = jnp.zeros((nt, E), jnp.float32)
    for h in range(num_heads):                            # static 128-lane slices
        lo = h * hd
        s = lax.dot_general(qb[:, lo:lo + hd], kb[:, lo:lo + hd],
                            (((1,), (1,)), ((), ())),
                            preferred_element_type=jnp.float32) + bias
        p = jax.nn.softmax(s, axis=-1).astype(jnp.bfloat16)
        ctx = jnp.dot(p, vb[:, lo:lo + hd], preferred_element_type=jnp.float32)
        attn = attn + jnp.dot(ctx.astype(jnp.bfloat16), wo[lo:lo + hd, :],
                              preferred_element_type=jnp.float32)
    attn = (attn + bo[...]) * row_valid                   # guard empty rows
    s_out = tq.astype(jnp.float32) + attn                 # residual
    inv = lax.rsqrt(jnp.maximum(jnp.sum(s_out * s_out, axis=1, keepdims=True),
                                1e-24))
    o_ref[...] = (s_out * inv).astype(o_ref.dtype)        # F.normalize(p=2, dim=1)


def cross_attention_all(table_embs, col_embs, bias, p):
    nt = table_embs.shape[0]
    return pl.pallas_call(
        functools.partial(_cross_attn_kernel, num_heads=NUM_HEADS),
        out_shape=jax.ShapeDtypeStruct((nt, HIDDEN), jnp.bfloat16),
        in_specs=[_VMEM_SPEC] * 11,
        out_specs=_VMEM_SPEC,
        compiler_params=_CPARAMS,
    )(table_embs, col_embs, bias, p["wq"], p["wk"], p["wv"], p["wo"],
      p["bq"], p["bk"], p["bv"], p["bo"])


# ----------------------------------------------------------------------------
# Fused classification heads (table + column in ONE kernel):
# linear(1024->256) -> LeakyReLU -> [dropout=id] -> linear(256->2, lane-padded
# to 128 for a dense store).
# ----------------------------------------------------------------------------
def _cls_heads_kernel(t_ref, c_ref,
                      tw1, tb1, tw2, tb2, cw1, cb1, cw2, cb2,
                      to_ref, co_ref):
    def head(x, w1, b1, w2, b2):
        h = jnp.dot(x, w1[...], preferred_element_type=jnp.float32) + b1[...]
        h = jnp.where(h >= 0, h, LEAK * h)
        # Dropout(p=0.2) == identity in eval mode.
        return jnp.dot(h.astype(jnp.bfloat16), w2[...],
                       preferred_element_type=jnp.float32) + b2[...]

    to_ref[...] = head(t_ref[...], tw1, tb1, tw2, tb2)
    co_ref[...] = head(c_ref[...], cw1, cb1, cw2, cb2)


def cls_heads(table_x, col_x, tp, cp):
    nt = table_x.shape[0]
    nc = col_x.shape[0]
    return pl.pallas_call(
        _cls_heads_kernel,
        out_shape=(jax.ShapeDtypeStruct((nt, LOGIT_PAD), jnp.float32),
                   jax.ShapeDtypeStruct((nc, LOGIT_PAD), jnp.float32)),
        in_specs=[_VMEM_SPEC] * 10,
        out_specs=(_VMEM_SPEC, _VMEM_SPEC),
        compiler_params=_CPARAMS,
    )(table_x, col_x, tp["w1"], tp["b1"], tp["w2"], tp["b2"],
      cp["w1"], cp["b1"], cp["w2"], cp["b2"])


# ----------------------------------------------------------------------------
# Host-side span gathering / mask construction (ragged python lists).
# Shapes are bucketed (T -> mult of 4, rows -> mult of 8) to limit recompiles.
# ----------------------------------------------------------------------------
def build_span_batch(hidden_flat, seq_len, span_lists):
    """Gather all spans of all batch items into a time-major padded batch."""
    entries = []
    for b, lists in enumerate(span_lists):
        for ids in lists:
            entries.append((b, list(ids)))
    n_real = len(entries)
    T = _round_up(max(len(ids) for _, ids in entries), 4)
    N = _round_up(max(n_real, 8), 8)
    idx = [[0] * N for _ in range(T)]
    lens = [0] * N
    for j, (b, ids) in enumerate(entries):
        lens[j] = len(ids)
        for t, tok in enumerate(ids):
            idx[t][j] = b * seq_len + int(tok)
    flat_idx = jnp.asarray(idx, jnp.int32).reshape(-1)          # (T*N,)
    x = jnp.take(hidden_flat, flat_idx, axis=0)                 # (T*N, 1024) bf16
    lens_arr = jnp.asarray(lens, jnp.int32).reshape(N, 1)
    return x, lens_arr, n_real, T, N


def build_attention_bias(batch_counts, tables_per_item, cols_per_item,
                         nt_pad, nc_pad):
    """Additive attention bias: 0 where a table may attend to a column of its
    own DB/table, -1e9 elsewhere (including padded rows / columns)."""
    m = [[NEG_BIAS] * nc_pad for _ in range(nt_pad)]
    t_off = 0
    c_off = 0
    for b, counts in enumerate(batch_counts):
        local_c = 0
        for cnt in counts:
            for c in range(local_c, local_c + cnt):
                m[t_off][c_off + c] = 0.0
            local_c += cnt
            t_off += 1
        c_off += cols_per_item[b]
    return jnp.asarray(m, jnp.float32)


# ----------------------------------------------------------------------------
# Parameter construction (deterministic, synthetic).  MXU weights are bf16.
# ----------------------------------------------------------------------------
def _dense_params(key, din, dout, scale=0.02):
    k1, k2 = jax.random.split(key)
    w = (scale * jax.random.normal(k1, (din, dout), jnp.float32)).astype(jnp.bfloat16)
    b = scale * jax.random.normal(k2, (1, dout), jnp.float32)
    return w, b


def _lstm_params(key):
    """Stacked per-layer weights: layer 0 / layer 1 both have din = 1024."""
    wih_layers, whhf_layers, whhb_layers, b_layers = [], [], [], []
    for _layer in range(2):
        ih_blocks, hh_blocks, b_blocks = [], [], []
        for _d in ("fwd", "bwd"):
            key, k1, k2, k3 = jax.random.split(key, 4)
            ih_blocks.append(0.02 * jax.random.normal(k1, (HIDDEN, 4 * LSTM_H),
                                                      jnp.float32))
            hh_blocks.append(0.02 * jax.random.normal(k2, (LSTM_H, 4 * LSTM_H),
                                                      jnp.float32))
            # single bias == precomputed (b_ih + b_hh)
            b_blocks.append(0.02 * jax.random.normal(k3, (1, 4 * LSTM_H),
                                                     jnp.float32))
        wih_layers.append(jnp.concatenate(ih_blocks, axis=1))    # (1024, 8H)
        whhf_layers.append(hh_blocks[0])                         # (H, 4H)
        whhb_layers.append(hh_blocks[1])                         # (H, 4H)
        b_layers.append(jnp.concatenate(b_blocks, axis=1))       # (1, 8H)
    return {"wih": jnp.stack(wih_layers).astype(jnp.bfloat16),   # (2, 1024, 4096)
            "whh_f": jnp.stack(whhf_layers).astype(jnp.bfloat16),  # (2, 512, 2048)
            "whh_b": jnp.stack(whhb_layers).astype(jnp.bfloat16),  # (2, 512, 2048)
            "b": jnp.stack(b_layers)}                            # (2, 1, 4096) f32


def _cls_head_params(key):
    k1, k2, k3 = jax.random.split(key, 3)
    w1, b1 = _dense_params(k1, HIDDEN, 256)
    w2 = 0.02 * jax.random.normal(k2, (256, 2), jnp.float32)
    b2 = 0.02 * jax.random.normal(k3, (1, 2), jnp.float32)
    w2p = jnp.zeros((256, LOGIT_PAD), jnp.float32).at[:, :2].set(w2).astype(jnp.bfloat16)
    b2p = jnp.zeros((1, LOGIT_PAD), jnp.float32).at[:, :2].set(b2)
    return {"w1": w1, "b1": b1, "w2": w2p, "b2": b2p}


def make_params(key, vocab_size):
    ks = jax.random.split(key, 12)
    p = {}
    p["embed"] = 0.02 * jax.random.normal(ks[0], (vocab_size, HIDDEN), jnp.float32)
    p["enc_w"], p["enc_b"] = _dense_params(ks[1], HIDDEN, HIDDEN)
    p["table_bilstm"] = _lstm_params(ks[2])
    p["column_bilstm"] = _lstm_params(ks[3])
    p["table_pool_w"], p["table_pool_b"] = _dense_params(ks[4], HIDDEN, HIDDEN)
    p["column_pool_w"], p["column_pool_b"] = _dense_params(ks[5], HIDDEN, HIDDEN)
    mha = {}
    mha["wq"], mha["bq"] = _dense_params(ks[6], HIDDEN, HIDDEN)
    mha["wk"], mha["bk"] = _dense_params(ks[7], HIDDEN, HIDDEN)
    mha["wv"], mha["bv"] = _dense_params(ks[8], HIDDEN, HIDDEN)
    mha["wo"], mha["bo"] = _dense_params(ks[9], HIDDEN, HIDDEN)
    p["mha"] = mha
    p["table_cls"] = _cls_head_params(ks[10])
    p["column_cls"] = _cls_head_params(ks[11])
    return p


# ----------------------------------------------------------------------------
# Forward pass (mirrors MyClassifier.forward / table_column_cls)
# ----------------------------------------------------------------------------
def my_classifier_forward(params,
                          encoder_input_ids,
                          encoder_attention_mask,             # unused (see TODO above)
                          batch_aligned_question_ids,         # dead code in reference
                          batch_aligned_column_info_ids,
                          batch_aligned_table_name_ids,
                          batch_column_number_in_each_table):
    del encoder_attention_mask
    del batch_aligned_question_ids
    B, S = encoder_input_ids.shape

    # --- substitute PLM encoder: embedding lookup + Pallas dense(tanh), bf16 out ---
    emb = params["embed"][encoder_input_ids.reshape(-1)]                 # (B*S, 1024)
    last_hidden_flat = linear(emb, params["enc_w"], params["enc_b"],
                              activation="tanh", out_dtype=jnp.bfloat16)

    # --- all table / column spans of the whole batch, one fused BiLSTM+pool each ---
    tx, tlens, n_tables, Tt, Nt = build_span_batch(
        last_hidden_flat, S, batch_aligned_table_name_ids)
    cx, clens, n_cols, Tc, Nc = build_span_batch(
        last_hidden_flat, S, batch_aligned_column_info_ids)

    table_embs = bilstm2_pool(tx, tlens, params["table_bilstm"],
                              params["table_pool_w"], params["table_pool_b"],
                              Nt, Tt)                                    # (Nt, 1024) bf16
    col_embs = bilstm2_pool(cx, clens, params["column_bilstm"],
                            params["column_pool_w"], params["column_pool_b"],
                            Nc, Tc)                                      # (Nc, 1024) bf16

    # --- table <- column cross attention (+ residual + L2 normalize), one call ---
    tables_per_item = [len(x) for x in batch_aligned_table_name_ids]
    cols_per_item = [len(x) for x in batch_aligned_column_info_ids]
    bias = build_attention_bias(batch_column_number_in_each_table,
                                tables_per_item, cols_per_item, Nt, Nc)
    table_attn = cross_attention_all(table_embs, col_embs, bias, params["mha"])

    # --- fused classification heads (table + column in one kernel) ---
    t_logits_pad, c_logits_pad = cls_heads(table_attn, col_embs,
                                           params["table_cls"],
                                           params["column_cls"])

    table_logits_all = t_logits_pad[:n_tables, :2]
    col_logits_all = c_logits_pad[:n_cols, :2]

    batch_table_logits, batch_column_logits = [], []
    t_off = c_off = 0
    for b in range(B):
        nt = tables_per_item[b]
        nc = cols_per_item[b]
        batch_table_logits.append(table_logits_all[t_off:t_off + nt])
        batch_column_logits.append(col_logits_all[c_off:c_off + nc])
        t_off += nt
        c_off += nc

    return {"batch_table_name_cls_logits": batch_table_logits,
            "batch_column_info_cls_logits": batch_column_logits}


# ----------------------------------------------------------------------------
if __name__ == "__main__":
    key = jax.random.PRNGKey(0)
    vocab_size = 100
    batch_size, seq_len = 2, 32

    kp, kd = jax.random.split(key)
    params = make_params(kp, vocab_size)

    encoder_input_ids = jax.random.randint(kd, (batch_size, seq_len), 0, vocab_size,
                                           dtype=jnp.int32)
    encoder_attention_mask = jnp.ones((batch_size, seq_len), jnp.int32)

    batch_aligned_question_ids = [[0, 1, 2, 3, 4, 5], [0, 1, 2, 3, 4]]
    batch_aligned_table_name_ids = [[[6, 7, 8], [9, 10, 11]],
                                    [[5, 6], [7, 8, 9]]]
    batch_aligned_column_info_ids = [[[12, 13], [14, 15], [16, 17, 18], [19]],
                                     [[10, 11, 12], [13], [14, 15], [16, 17]]]
    batch_column_number_in_each_table = [[2, 2], [1, 3]]

    out = my_classifier_forward(params,
                                encoder_input_ids,
                                encoder_attention_mask,
                                batch_aligned_question_ids,
                                batch_aligned_column_info_ids,
                                batch_aligned_table_name_ids,
                                batch_column_number_in_each_table)

    for arr in out["batch_table_name_cls_logits"] + out["batch_column_info_cls_logits"]:
        jax.block_until_ready(arr)

    # sanity: shapes [num_tables, 2] and [num_columns, 2] per batch item
    assert out["batch_table_name_cls_logits"][0].shape == (2, 2)
    assert out["batch_column_info_cls_logits"][0].shape == (4, 2)
    assert out["batch_table_name_cls_logits"][1].shape == (2, 2)
    assert out["batch_column_info_cls_logits"][1].shape == (4, 2)

    print("KERNEL_OK")
</pallas_src>

<mosaic_0001>
module attributes {stable_mosaic.version = 11 : i64} {
  func.func @_linear_kernel(%arg0: memref<64x1024xf32, #tpu.memory_space<vmem>>, %arg1: memref<1024x1024xbf16, #tpu.memory_space<vmem>>, %arg2: memref<1x1024xf32, #tpu.memory_space<vmem>>, %arg3: memref<64x1024xbf16, #tpu.memory_space<vmem>>) attributes {dimension_semantics = [], scalar_prefetch = 0 : i64, scratch_operands = 0 : i64, tpu.core_type = #tpu.core_type<tc>} {
    %c0 = arith.constant 0 : index
    %c0_0 = arith.constant 0 : index
    %0 = vector.load %arg0[%c0, %c0_0] : memref<64x1024xf32, #tpu.memory_space<vmem>>, vector<64x1024xf32>
    %1 = arith.truncf %0 : vector<64x1024xf32> to vector<64x1024xbf16>
    %c0_1 = arith.constant 0 : index
    %c0_2 = arith.constant 0 : index
    %2 = vector.load %arg1[%c0_1, %c0_2] : memref<1024x1024xbf16, #tpu.memory_space<vmem>>, vector<1024x1024xbf16>
    %cst = arith.constant dense<0.000000e+00> : vector<64x1024xf32>
    %3 = tpu.matmul %1, %2, %cst {dimension_numbers = #tpu.dot_dimension_numbers<[1], [0], [0], [1], [0, 0, 1, 1], [], []>} : vector<64x1024xbf16>, vector<1024x1024xbf16>, vector<64x1024xf32> -> vector<64x1024xf32>
    %c0_3 = arith.constant 0 : index
    %c0_4 = arith.constant 0 : index
    %4 = vector.load %arg2[%c0_3, %c0_4] : memref<1x1024xf32, #tpu.memory_space<vmem>>, vector<1x1024xf32>
    %5 = vector.broadcast %4 : vector<1x1024xf32> to vector<64x1024xf32>
    %6 = arith.addf %3, %5 : vector<64x1024xf32>
    %7 = math.tanh %6 : vector<64x1024xf32>
    %8 = arith.truncf %7 : vector<64x1024xf32> to vector<64x1024xbf16>
    %c0_5 = arith.constant 0 : index
    %c0_6 = arith.constant 0 : index
    %9 = vector.load %arg3[%c0_5, %c0_6] : memref<64x1024xbf16, #tpu.memory_space<vmem>>, vector<64x1024xbf16>
    tpu.vector_store %arg3[%c0_5, %c0_6], %8 {strides = array<i32>} : memref<64x1024xbf16, #tpu.memory_space<vmem>>, vector<64x1024xbf16>,
    return
  }
}

</mosaic_0001>

<bundles_post_ra>
// kernel: tpu_custom_call.1
= control target key start
LH: loop header
LB: loop body
LE: loop exit
PB: predicated region body
PF: predicated region fallthrough
CT: control target
= control target key end

     0   :  { %8 = vsyncpa [#allocation3], 0  ;;  %s6384_s0 = inlined_call_operand.hbm [shape: f32[64,1024], index: 0, kind: input, shape index: {}]   ;;  %s6385_s1 = inlined_call_operand.hbm [shape: bf16[1024,1024], index: 1, kind: input, shape index: {}]   ;;  %s6386_s2 = inlined_call_operand.hbm [shape: f32[1,1024], index: 2, kind: input, shape index: {}]   ;;  %s6387_s3 = inlined_call_operand.hbm [shape: bf16[64,1024], index: 3, kind: output, shape index: {}]  }
   0x1   :  { %9 = vsyncpa [#allocation6], 0 }
   0x2   :  { %10 = vsyncpa [#allocation4], 0  ;;  %s5538_s12 = smov [#allocation5]  }
   0x3   :  { %s28_s13 = sshll.u32 %s5538_s12, 4  ;;  %s29_s13 = int_to_ptr.vmem [resolvable:$true] %s28_s13 }
   0x4   :  { %s5460_s14 = scalar_lea.vmem %s29_s13, 65536  ;;  %p5465_p1 = scmp.lt.s32.totalorder %s29_s13, %s29_s13 }
   0x5   :  { %p5461_p0 = scmp.ne.s32.totalorder %s29_s13, %s5460_s14  ;;  %p5466_p2 = scmp.lt.s32.totalorder %s5460_s14, %s5460_s14 }
   0x7   :  { %p5467_p3 = por %p5466_p2, %p5465_p1 }
   0x9   :  { %p5468_p4 = pnand %p5467_p3, %p5461_p0 }
   0xb   :  { %5471 = shalt.err (!%p5468_p4)
}
   0xc   :  { %s5539_s15 = smov 512   ;;  %s5540_s16 = smov 32  }
   0xd   :  { %34 = dma.hbm_to_vmem [thread:$0]  %s6385_s1, 65536, %s29_s13, [#allocation6], %s5539_s15, %s5539_s15, %s5540_s16  }
   0xe   :  { %s5541_s19 = smov [#allocation2]  }
   0xf   :  { %s16_s20 = sshll.u32 %s5541_s19, 4  ;;  %s17_s20 = int_to_ptr.vmem [resolvable:$true] %s16_s20 }
  0x10   :  { %s5480_s21 = scalar_lea.vmem %s17_s20, 8192  ;;  %p5485_p6 = scmp.lt.s32.totalorder %s17_s20, %s17_s20 }
  0x11   :  { %p5481_p5 = scmp.ne.s32.totalorder %s17_s20, %s5480_s21  ;;  %p5486_p7 = scmp.lt.s32.totalorder %s5480_s21, %s5480_s21 }
  0x13   :  { %p5487_p8 = por %p5486_p7, %p5485_p6 }
  0x15   :  { %p5488_p9 = pnand %p5487_p8, %p5481_p5 }
  0x17   :  { %5491 = shalt.err (!%p5488_p9)
}
  0x18   :  { %s5542_s22 = smov 1024   ;;  %s5543_s23 = smov 64  }
  0x19   :  { %22 = dma.hbm_to_vmem [thread:$0]  %s6384_s0, 8192, %s17_s20, [#allocation3], %s5542_s22, %s5542_s22, %s5543_s23  }
  0x1a   :  { %s5544_s26 = smov [#allocation7]  }
  0x1b   :  { %s41_s27 = sshll.u32 %s5544_s26, 4  ;;  %s42_s27 = int_to_ptr.vmem [resolvable:$true] %s41_s27 }
  0x1c   :  { %s5500_s1 = scalar_lea.vmem %s42_s27, 128  ;;  %p5505_p11 = scmp.lt.s32.totalorder %s42_s27, %s42_s27 }
  0x1d   :  { %p5501_p10 = scmp.ne.s32.totalorder %s42_s27, %s5500_s1  ;;  %p5506_p12 = scmp.lt.s32.totalorder %s5500_s1, %s5500_s1 }
  0x1f   :  { %p5507_p13 = por %p5506_p12, %p5505_p11 }
  0x21   :  { %p5508_p0 = pnand %p5507_p13, %p5501_p10 }
  0x23   :  { %5511 = shalt.err (!%p5508_p0)
}
  0x24   :  { %44 = dma.hbm_to_vmem [thread:$0]  %s6386_s2, 128, %s42_s27, [#allocation6]  }
  0x25   :  { %5532 = dma.done.wait [#allocation3], 8192  }
  0x26   :  { %5533 = vsyncadd [#allocation3], 4294959104 }
  0x27   :  { %5534 = dma.done.wait [#allocation6], 65664  }
  0x28   :  { %5535 = vsyncadd [#allocation6], 4294901632  ;;  %v206_v0 = vld [vmem:[#allocation5 + $0x1c0] sm:$0xff]  ;;  %v55_v54 = vld [vmem:[#allocation2 + $0x8] sm:$0xff]  ;;  %s5545_s0 = smov [#allocation8]  }
  0x29   :  { %v210_v1 = vld [vmem:[#allocation5 + $0x1e0] sm:$0xff]  ;;  %v63_v55 = vld [vmem:[#allocation2 + $0x48] sm:$0xff]  ;;  %v57_v59 = vld [vmem:[#allocation2 + $0x18] sm:$0xff]  ;;  %s4725_s2 = sshll.u32 %s5545_s0, 4  ;;  %s4726_s2 = int_to_ptr.vmem [resolvable:$true] %s4725_s2 }
  0x2a   :  { %v334_v2 = vld [vmem:[#allocation5 + $0x5c0] sm:$0xff]  ;;  %v4795_v3 = vcombine.high %v206_v0, %v210_v1  ;;  %v4794_v5 = vcombine.low %v206_v0, %v210_v1  ;;  %v5578_v58 = vpack.c.bf16 %v63_v55, %v55_v54  ;;  %v65_v60 = vld [vmem:[#allocation2 + $0x58] sm:$0xff]  ;;  %s5512_s30 = scalar_lea.vmem %s4726_s2, 4096  ;;  %p5517_p2 = scmp.lt.s32.totalorder %s4726_s2, %s4726_s2 }
  0x2b   :  { %v338_v4 = vld [vmem:[#allocation5 + $0x5e0] sm:$0xff]  ;;  %v5580_v63 = vpack.c.bf16 %v65_v60, %v57_v59  ;;  %p5513_p1 = scmp.ne.s32.totalorder %s4726_s2, %s5512_s30  ;;  %p5518_p3 = scmp.lt.s32.totalorder %s5512_s30, %s5512_s30 }
  0x2c   :  { %v198_v6 = vld [vmem:[#allocation5 + $0x180] sm:$0xff]  ;;  %v4923_v8 = vcombine.high %v334_v2, %v338_v4  ;;  %v4922_v9 = vcombine.low %v334_v2, %v338_v4  ;;  %3264 = vmatprep.subr.bf16.mxu0 %v4795_v3  ;;  %6431 = vst [vmem:[#allocation12_spill] sm:$0xff] %v5578_v58  ;;  %3296 = vmatprep.mubr.bf16.mxu0 %v5578_v58 }
  0x2d   :  { %v202_v7 = vld [vmem:[#allocation5 + $0x1a0] sm:$0xff]  ;;  %3265 = vmatpush1.bf16.msra.mxu0 %v4794_v5  ;;  %6432 = vst [vmem:[#allocation13_spill] sm:$0xff] %v5580_v63  ;;  %3369 = vmatprep.mubr.bf16.mxu1 %v5580_v63  ;;  %p5519_p4 = por %p5518_p3, %p5517_p2 }
  0x2e   :  { %v4787_v10 = vcombine.high %v198_v6, %v202_v7  ;;  %v326_v11 = vld [vmem:[#allocation5 + $0x580] sm:$0xff]  ;;  %3337 = vmatprep.subr.bf16.mxu1 %v4923_v8  ;;  %v4786_v18 = vcombine.low %v198_v6, %v202_v7 }
  0x2f   :  { %v330_v12 = vld [vmem:[#allocation5 + $0x5a0] sm:$0xff]  ;;  %3338 = vmatpush1.bf16.msra.mxu1 %v4922_v9  ;;  %p5520_p5 = pnand %p5519_p4, %p5513_p1 }
  0x30   :  { %v190_v13 = vld [vmem:[#allocation5 + $0x140] sm:$0xff]  ;;  %v4915_v14 = vcombine.high %v326_v11, %v330_v12  ;;  %3266 = vmatprep.subr.bf16.mxu0 %v4787_v10  ;;  %v4914_v19 = vcombine.low %v326_v11, %v330_v12 }
  0x31   :  { %v194_v15 = vld [vmem:[#allocation5 + $0x160] sm:$0xff]  ;;  %3267 = vmatpush1.bf16.msra.mxu0 %v4786_v18 }
  0x32   :  { %v318_v16 = vld [vmem:[#allocation5 + $0x540] sm:$0xff]  ;;  %v4779_v20 = vcombine.high %v190_v13, %v194_v15  ;;  %3339 = vmatprep.subr.bf16.mxu1 %v4915_v14  ;;  %v4778_v26 = vcombine.low %v190_v13, %v194_v15 }
  0x33   :  { %v322_v17 = vld [vmem:[#allocation5 + $0x560] sm:$0xff]  ;;  %3340 = vmatpush1.bf16.msra.mxu1 %v4914_v19 }
  0x34   :  { %v4907_v21 = vcombine.high %v318_v16, %v322_v17  ;;  %v182_v22 = vld [vmem:[#allocation5 + $0x100] sm:$0xff]  ;;  %3268 = vmatprep.subr.bf16.mxu0 %v4779_v20  ;;  %v4906_v27 = vcombine.low %v318_v16, %v322_v17 }
  0x35   :  { %v186_v23 = vld [vmem:[#allocation5 + $0x120] sm:$0xff]  ;;  %3269 = vmatpush1.bf16.msra.mxu0 %v4778_v26 }
  0x36   :  { %v310_v24 = vld [vmem:[#allocation5 + $0x500] sm:$0xff]  ;;  %v4771_v28 = vcombine.high %v182_v22, %v186_v23  ;;  %3341 = vmatprep.subr.bf16.mxu1 %v4907_v21  ;;  %v4770_v34 = vcombine.low %v182_v22, %v186_v23 }
  0x37   :  { %v314_v25 = vld [vmem:[#allocation5 + $0x520] sm:$0xff]  ;;  %3342 = vmatpush1.bf16.msra.mxu1 %v4906_v27 }
  0x38   :  { %v4899_v29 = vcombine.high %v310_v24, %v314_v25  ;;  %v174_v30 = vld [vmem:[#allocation5 + $0xc0] sm:$0xff]  ;;  %3270 = vmatprep.subr.bf16.mxu0 %v4771_v28  ;;  %v4898_v35 = vcombine.low %v310_v24, %v314_v25 }
  0x39   :  { %v178_v31 = vld [vmem:[#allocation5 + $0xe0] sm:$0xff]  ;;  %3271 = vmatpush1.bf16.msra.mxu0 %v4770_v34 }
  0x3a   :  { %v302_v32 = vld [vmem:[#allocation5 + $0x4c0] sm:$0xff]  ;;  %v4763_v36 = vcombine.high %v174_v30, %v178_v31  ;;  %3343 = vmatprep.subr.bf16.mxu1 %v4899_v29  ;;  %v4762_v42 = vcombine.low %v174_v30, %v178_v31 }
  0x3b   :  { %v306_v33 = vld [vmem:[#allocation5 + $0x4e0] sm:$0xff]  ;;  %3344 = vmatpush1.bf16.msra.mxu1 %v4898_v35 }
  0x3c   :  { %v4891_v37 = vcombine.high %v302_v32, %v306_v33  ;;  %v166_v38 = vld [vmem:[#allocation5 + $0x80] sm:$0xff]  ;;  %3272 = vmatprep.subr.bf16.mxu0 %v4763_v36  ;;  %v4890_v43 = vcombine.low %v302_v32, %v306_v33 }
  0x3d   :  { %v170_v39 = vld [vmem:[#allocation5 + $0xa0] sm:$0xff]  ;;  %3273 = vmatpush1.bf16.msra.mxu0 %v4762_v42 }
  0x3e   :  { %v294_v40 = vld [vmem:[#allocation5 + $0x480] sm:$0xff]  ;;  %v4755_v44 = vcombine.high %v166_v38, %v170_v39  ;;  %3345 = vmatprep.subr.bf16.mxu1 %v4891_v37  ;;  %v4754_v50 = vcombine.low %v166_v38, %v170_v39 }
  0x3f   :  { %v298_v41 = vld [vmem:[#allocation5 + $0x4a0] sm:$0xff]  ;;  %3346 = vmatpush1.bf16.msra.mxu1 %v4890_v43 }
  0x40   :  { %v4883_v45 = vcombine.high %v294_v40, %v298_v41  ;;  %v158_v46 = vld [vmem:[#allocation5 + $0x40] sm:$0xff]  ;;  %3274 = vmatprep.subr.bf16.mxu0 %v4755_v44  ;;  %v4882_v51 = vcombine.low %v294_v40, %v298_v41 }
  0x41   :  { %v162_v47 = vld [vmem:[#allocation5 + $0x60] sm:$0xff]  ;;  %3275 = vmatpush1.bf16.msra.mxu0 %v4754_v50 }
  0x42   :  { %v286_v48 = vld [vmem:[#allocation5 + $0x440] sm:$0xff]  ;;  %v4747_v52 = vcombine.high %v158_v46, %v162_v47  ;;  %3347 = vmatprep.subr.bf16.mxu1 %v4883_v45  ;;  %v4746_v0 = vcombine.low %v158_v46, %v162_v47 }
  0x43   :  { %v290_v49 = vld [vmem:[#allocation5 + $0x460] sm:$0xff]  ;;  %3348 = vmatpush1.bf16.msra.mxu1 %v4882_v51 }
  0x44   :  { %v150_v53 = vld [vmem:[#allocation5] sm:$0xff]  ;;  %v4875_v56 = vcombine.high %v286_v48, %v290_v49  ;;  %3276 = vmatprep.subr.bf16.mxu0 %v4747_v52  ;;  %v4874_v1 = vcombine.low %v286_v48, %v290_v49 }
  0x45   :  { %v154_v57 = vld [vmem:[#allocation5 + $0x20] sm:$0xff]  ;;  %3277 = vmatpush1.bf16.msra.mxu0 %v4746_v0 }
  0x46   :  { %v278_v61 = vld [vmem:[#allocation5 + $0x400] sm:$0xff]  ;;  %v4739_v2 = vcombine.high %v150_v53, %v154_v57  ;;  %3349 = vmatprep.subr.bf16.mxu1 %v4875_v56  ;;  %v4738_v8 = vcombine.low %v150_v53, %v154_v57 }
  0x47   :  { %v282_v62 = vld [vmem:[#allocation5 + $0x420] sm:$0xff]  ;;  %3350 = vmatpush1.bf16.msra.mxu1 %v4874_v1 }
  0x48   :  { %v4867_v3 = vcombine.high %v278_v61, %v282_v62  ;;  %v270_v4 = vld [vmem:[#allocation5 + $0x3c0] sm:$0xff]  ;;  %3278 = vmatprep.subr.bf16.mxu0 %v4739_v2  ;;  %v4866_v9 = vcombine.low %v278_v61, %v282_v62 }
  0x49   :  { %v274_v5 = vld [vmem:[#allocation5 + $0x3e0] sm:$0xff]  ;;  %3279 = vmatpush1.bf16.msra.mxu0 %v4738_v8 }
  0x4a   :  { %v398_v6 = vld [vmem:[#allocation5 + $0x7c0] sm:$0xff]  ;;  %v4859_v10 = vcombine.high %v270_v4, %v274_v5  ;;  %3351 = vmatprep.subr.bf16.mxu1 %v4867_v3  ;;  %v4858_v16 = vcombine.low %v270_v4, %v274_v5 }
  0x4b   :  { %v402_v7 = vld [vmem:[#allocation5 + $0x7e0] sm:$0xff]  ;;  %3352 = vmatpush1.bf16.msra.mxu1 %v4866_v9 }
  0x4c   :  { %v4987_v11 = vcombine.high %v398_v6, %v402_v7  ;;  %v262_v12 = vld [vmem:[#allocation5 + $0x380] sm:$0xff]  ;;  %3280 = vmatprep.subr.bf16.mxu0 %v4859_v10  ;;  %v4986_v17 = vcombine.low %v398_v6, %v402_v7 }
  0x4d   :  { %v266_v13 = vld [vmem:[#allocation5 + $0x3a0] sm:$0xff]  ;;  %3281 = vmatpush2.bf16.msra.mxu0 %v4858_v16 }
  0x4e   :  { %v390_v14 = vld [vmem:[#allocation5 + $0x780] sm:$0xff]  ;;  %v4851_v18 = vcombine.high %v262_v12, %v266_v13  ;;  %3353 = vmatprep.subr.bf16.mxu1 %v4987_v11  ;;  %v4850_v24 = vcombine.low %v262_v12, %v266_v13 }
  0x4f   :  { %v394_v15 = vld [vmem:[#allocation5 + $0x7a0] sm:$0xff]  ;;  %3354 = vmatpush2.bf16.msra.mxu1 %v4986_v17 }
  0x50   :  { %v4979_v19 = vcombine.high %v390_v14, %v394_v15  ;;  %v254_v20 = vld [vmem:[#allocation5 + $0x340] sm:$0xff]  ;;  %3282 = vmatprep.subr.bf16.mxu0 %v4851_v18  ;;  %v4978_v25 = vcombine.low %v390_v14, %v394_v15  ;;  %v56_v14 = vld [vmem:[#allocation2 + $0x10] sm:$0xff] }
  0x51   :  { %v258_v21 = vld [vmem:[#allocation5 + $0x360] sm:$0xff]  ;;  %3283 = vmatpush2.bf16.msra.mxu0 %v4850_v24  ;;  %v64_v15 = vld [vmem:[#allocation2 + $0x50] sm:$0xff]  ;;  %v79_v24 = vld [vmem:[#allocation2 + $0xc8] sm:$0xff] }
  0x52   :  { %v382_v22 = vld [vmem:[#allocation5 + $0x740] sm:$0xff]  ;;  %v4843_v26 = vcombine.high %v254_v20, %v258_v21  ;;  %3355 = vmatprep.subr.bf16.mxu1 %v4979_v19  ;;  %v4842_v32 = vcombine.low %v254_v20, %v258_v21 }
  0x53   :  { %v386_v23 = vld [vmem:[#allocation5 + $0x760] sm:$0xff]  ;;  %3356 = vmatpush2.bf16.msra.mxu1 %v4978_v25  ;;  %v5586_v25 = vpack.c.bf16 %v64_v15, %v56_v14 }
  0x54   :  { %v4971_v27 = vcombine.high %v382_v22, %v386_v23  ;;  %v246_v28 = vld [vmem:[#allocation5 + $0x300] sm:$0xff]  ;;  %3284 = vmatprep.subr.bf16.mxu0 %v4843_v26  ;;  %v4970_v33 = vcombine.low %v382_v22, %v386_v23  ;;  %v71_v23 = vld [vmem:[#allocation2 + $0x88] sm:$0xff] }
  0x55   :  { %v250_v29 = vld [vmem:[#allocation5 + $0x320] sm:$0xff]  ;;  %3285 = vmatpush2.bf16.msra.mxu0 %v4842_v32 }
  0x56   :  { %v374_v30 = vld [vmem:[#allocation5 + $0x700] sm:$0xff]  ;;  %v4835_v34 = vcombine.high %v246_v28, %v250_v29  ;;  %3357 = vmatprep.subr.bf16.mxu1 %v4971_v27  ;;  %v4834_v40 = vcombine.low %v246_v28, %v250_v29  ;;  %v73_v27 = vld [vmem:[#allocation2 + $0x98] sm:$0xff] }
  0x57   :  { %v378_v31 = vld [vmem:[#allocation5 + $0x720] sm:$0xff]  ;;  %3358 = vmatpush2.bf16.msra.mxu1 %v4970_v33  ;;  %v81_v28 = vld [vmem:[#allocation2 + $0xd8] sm:$0xff] }
  0x58   :  { %v4963_v35 = vcombine.high %v374_v30, %v378_v31  ;;  %v238_v36 = vld [vmem:[#allocation5 + $0x2c0] sm:$0xff]  ;;  %3286 = vmatprep.subr.bf16.mxu0 %v4835_v34  ;;  %v4962_v41 = vcombine.low %v374_v30, %v378_v31  ;;  %v5588_v34 = vpack.c.bf16 %v79_v24, %v71_v23  ;;  %v113_v23 = vld [vmem:[#allocation2 + $0x1d8] sm:$0xff] }
  0x59   :  { %v242_v37 = vld [vmem:[#allocation5 + $0x2e0] sm:$0xff]  ;;  %3287 = vmatpush2.bf16.msra.mxu0 %v4834_v40 }
  0x5a   :  { %v366_v38 = vld [vmem:[#allocation5 + $0x6c0] sm:$0xff]  ;;  %v4827_v42 = vcombine.high %v238_v36, %v242_v37  ;;  %3359 = vmatprep.subr.bf16.mxu1 %v4963_v35  ;;  %v4826_v48 = vcombine.low %v238_v36, %v242_v37  ;;  %v5591_v37 = vpack.c.bf16 %v81_v28, %v73_v27 }
  0x5b   :  { %v370_v39 = vld [vmem:[#allocation5 + $0x6e0] sm:$0xff]  ;;  %3360 = vmatpush2.bf16.msra.mxu1 %v4962_v41 }
  0x5c   :  { %v4955_v43 = vcombine.high %v366_v38, %v370_v39  ;;  %v230_v44 = vld [vmem:[#allocation5 + $0x280] sm:$0xff]  ;;  %3288 = vmatprep.subr.bf16.mxu0 %v4827_v42  ;;  %v4954_v49 = vcombine.low %v366_v38, %v370_v39 }
  0x5d   :  { %v234_v45 = vld [vmem:[#allocation5 + $0x2a0] sm:$0xff]  ;;  %3289 = vmatpush2.bf16.msra.mxu0 %v4826_v48 }
  0x5e   :  { %v358_v46 = vld [vmem:[#allocation5 + $0x680] sm:$0xff]  ;;  %v4819_v50 = vcombine.high %v230_v44, %v234_v45  ;;  %3361 = vmatprep.subr.bf16.mxu1 %v4955_v43  ;;  %v4818_v56 = vcombine.low %v230_v44, %v234_v45  ;;  %v72_v43 = vld [vmem:[#allocation2 + $0x90] sm:$0xff] }
  0x5f   :  { %v362_v47 = vld [vmem:[#allocation5 + $0x6a0] sm:$0xff]  ;;  %3362 = vmatpush2.bf16.msra.mxu1 %v4954_v49  ;;  %v80_v44 = vld [vmem:[#allocation2 + $0xd0] sm:$0xff] }
  0x60   :  { %v4947_v51 = vcombine.high %v358_v46, %v362_v47  ;;  %v222_v52 = vld [vmem:[#allocation5 + $0x240] sm:$0xff]  ;;  %3290 = vmatprep.subr.bf16.mxu0 %v4819_v50  ;;  %v4946_v57 = vcombine.low %v358_v46, %v362_v47 }
  0x61   :  { %v226_v53 = vld [vmem:[#allocation5 + $0x260] sm:$0xff]  ;;  %3291 = vmatpush2.bf16.msra.mxu0 %v4818_v56  ;;  %v97_v56 = vld [vmem:[#allocation2 + $0x158] sm:$0xff] }
  0x62   :  { %v350_v54 = vld [vmem:[#allocation5 + $0x640] sm:$0xff]  ;;  %v4811_v59 = vcombine.high %v222_v52, %v226_v53  ;;  %3363 = vmatprep.subr.bf16.mxu1 %v4947_v51  ;;  %v4810_v2 = vcombine.low %v222_v52, %v226_v53  ;;  %v87_v51 = vld [vmem:[#allocation2 + $0x108] sm:$0xff] }
  0x63   :  { %v354_v55 = vld [vmem:[#allocation5 + $0x660] sm:$0xff]  ;;  %3364 = vmatpush2.bf16.msra.mxu1 %v4946_v57  ;;  %v95_v52 = vld [vmem:[#allocation2 + $0x148] sm:$0xff] }
  0x64   :  { %v4939_v60 = vcombine.high %v350_v54, %v354_v55  ;;  %v214_v61 = vld [vmem:[#allocation5 + $0x200] sm:$0xff]  ;;  %3292 = vmatprep.subr.bf16.mxu0 %v4811_v59  ;;  %v4938_v3 = vcombine.low %v350_v54, %v354_v55  ;;  %v5598_v54 = vpack.c.bf16 %v80_v44, %v72_v43  ;;  %v89_v55 = vld [vmem:[#allocation2 + $0x118] sm:$0xff] }
  0x65   :  { %v218_v62 = vld [vmem:[#allocation5 + $0x220] sm:$0xff]  ;;  %3293 = vmatpush2.bf16.msra.mxu0 %v4810_v2 }
  0x66   :  { %v342_v0 = vld [vmem:[#allocation5 + $0x600] sm:$0xff]  ;;  %v4803_v4 = vcombine.high %v214_v61, %v218_v62  ;;  %3365 = vmatprep.subr.bf16.mxu1 %v4939_v60  ;;  %v4802_v10 = vcombine.low %v214_v61, %v218_v62 }
  0x67   :  { %v346_v1 = vld [vmem:[#allocation5 + $0x620] sm:$0xff]  ;;  %3366 = vmatpush2.bf16.msra.mxu1 %v4938_v3  ;;  %v5603_v3 = vpack.c.bf16 %v97_v56, %v89_v55  ;;  %v61_v55 = vld [vmem:[#allocation2 + $0x38] sm:$0xff] }
  0x68   :  { %v4931_v5 = vcombine.high %v342_v0, %v346_v1  ;;  %v462_v6 = vld [vmem:[#allocation5 + $0x9c0] sm:$0xff]  ;;  %3294 = vmatprep.subr.bf16.mxu0 %v4803_v4  ;;  %v4930_v13 = vcombine.low %v342_v0, %v346_v1  ;;  %v5600_v0 = vpack.c.bf16 %v95_v52, %v87_v51  ;;  %v67_v51 = vld [vmem:[#allocation2 + $0x68] sm:$0xff]  ;;  %v69_v56 = vld [vmem:[#allocation2 + $0x78] sm:$0xff] }
  0x69   :  { %v466_v7 = vld [vmem:[#allocation5 + $0x9e0] sm:$0xff]  ;;  %3295 = vmatpush2.bf16.msra.mxu0 %v4802_v10  ;;  %v96_v10 = vld [vmem:[#allocation2 + $0x150] sm:$0xff] }
  0x6a   :  { %v590_v8 = vld [vmem:[#allocation5 + $0xdc0] sm:$0xff]  ;;  %v5051_v16 = vcombine.high %v462_v6, %v466_v7  ;;  %3367 = vmatprep.subr.bf16.mxu1 %v4931_v5  ;;  %v5050_v26 = vcombine.low %v462_v6, %v466_v7 }
  0x6b   :  { %v594_v9 = vld [vmem:[#allocation5 + $0xde0] sm:$0xff]  ;;  %3368 = vmatpush2.bf16.msra.mxu1 %v4930_v13 }
  0x6c   :  { %v54_v11 = vld [vmem:[#allocation2] sm:$0xff]  ;;  %v5179_v17 = vcombine.high %v590_v8, %v594_v9  ;;  %3410 = vmatprep.subr.bf16.mxu0 %v5051_v16  ;;  %v5178_v29 = vcombine.low %v590_v8, %v594_v9  ;;  %v88_v9 = vld [vmem:[#allocation2 + $0x110] sm:$0xff] }
  0x6d   :  { %v62_v12 = vld [vmem:[#allocation2 + $0x40] sm:$0xff] }
  0x6e   :  { %v454_v18 = vld [vmem:[#allocation5 + $0x980] sm:$0xff]  ;;  %v5584_v21 = vpack.c.bf16 %v62_v12, %v54_v11  ;;  %3483 = vmatprep.subr.bf16.mxu1 %v5179_v17  ;;  %3370 = vmatmul.mubr.bf16.vlgmr.msra.gmra.mxu1 %v5586_v25  ;;  %v103_v17 = vld [vmem:[#allocation2 + $0x188] sm:$0xff] }
  0x6f   :  { %v458_v19 = vld [vmem:[#allocation5 + $0x9a0] sm:$0xff]  ;;  %3484 = vmatpush1.bf16.msra.mxu1 %v5178_v29  ;;  %3379 = vmatprep.mubr.bf16.mxu1 %v5591_v37 }
  0x70   :  { %v582_v20 = vld [vmem:[#allocation5 + $0xd80] sm:$0xff]  ;;  %v5043_v30 = vcombine.high %v454_v18, %v458_v19  ;;  %3297 = vmatmul.mubr.bf16.vlgmr.msra.gmra.mxu0 %v5584_v21  ;;  %v5042_v38 = vcombine.low %v454_v18, %v458_v19  ;;  %v111_v18 = vld [vmem:[#allocation2 + $0x1c8] sm:$0xff] }
  0x71   :  { %v586_v22 = vld [vmem:[#allocation5 + $0xda0] sm:$0xff]  ;;  %3411 = vmatpush1.bf16.msra.mxu0 %v5050_v26  ;;  %3306 = vmatprep.mubr.bf16.mxu0 %v5588_v34 }
  0x72   :  { %v5171_v31 = vcombine.high %v582_v20, %v586_v22  ;;  %v446_v32 = vld [vmem:[#allocation5 + $0x940] sm:$0xff]  ;;  %3412 = vmatprep.subr.bf16.mxu0 %v5043_v30  ;;  %v5170_v41 = vcombine.low %v582_v20, %v586_v22  ;;  %v5610_v20 = vpack.c.bf16 %v96_v10, %v88_v9  ;;  %v105_v22 = vld [vmem:[#allocation2 + $0x198] sm:$0xff]  ;;  %v5612_v30 = vpack.c.bf16 %v111_v18, %v103_v17 }
  0x73   :  { %v450_v33 = vld [vmem:[#allocation5 + $0x960] sm:$0xff] }
  0x74   :  { %v574_v35 = vld [vmem:[#allocation5 + $0xd40] sm:$0xff]  ;;  %v5035_v42 = vcombine.high %v446_v32, %v450_v33  ;;  %3485 = vmatprep.subr.bf16.mxu1 %v5171_v31  ;;  %v5034_v53 = vcombine.low %v446_v32, %v450_v33  ;;  %v5615_v33 = vpack.c.bf16 %v113_v23, %v105_v22 }
  0x75   :  { %v578_v36 = vld [vmem:[#allocation5 + $0xd60] sm:$0xff]  ;;  %3413 = vmatpush1.bf16.msra.mxu0 %v5042_v38  ;;  %3486 = vmatpush1.bf16.msra.mxu1 %v5170_v41  ;;  %v104_v41 = vld [vmem:[#allocation2 + $0x190] sm:$0xff] }
  0x76   :  { %v70_v39 = vld [vmem:[#allocation2 + $0x80] sm:$0xff]  ;;  %v5163_v45 = vcombine.high %v574_v35, %v578_v36  ;;  %3414 = vmatprep.subr.bf16.mxu0 %v5035_v42  ;;  %v5162_v57 = vcombine.low %v574_v35, %v578_v36  ;;  %3380 = vmatmul.mubr.bf16.gmra.mxu1 %v5598_v54  ;;  %v112_v42 = vld [vmem:[#allocation2 + $0x1d0] sm:$0xff] }
  0x77   :  { %v78_v40 = vld [vmem:[#allocation2 + $0xc0] sm:$0xff]  ;;  %3389 = vmatprep.mubr.bf16.mxu1 %v5603_v3 }
  0x78   :  { %v438_v46 = vld [vmem:[#allocation5 + $0x900] sm:$0xff]  ;;  %v5595_v50 = vpack.c.bf16 %v78_v40, %v70_v39  ;;  %3487 = vmatprep.subr.bf16.mxu1 %v5163_v45 }
  0x79   :  { %v442_v47 = vld [vmem:[#allocation5 + $0x920] sm:$0xff]  ;;  %3415 = vmatpush1.bf16.msra.mxu0 %v5034_v53  ;;  %3488 = vmatpush1.bf16.msra.mxu1 %v5162_v57  ;;  %v5622_v53 = vpack.c.bf16 %v112_v42, %v104_v41 }
  0x7a   :  { %v566_v48 = vld [vmem:[#allocation5 + $0xd00] sm:$0xff]  ;;  %v5027_v59 = vcombine.high %v438_v46, %v442_v47  ;;  %3307 = vmatmul.mubr.bf16.gmra.mxu0 %v5595_v50  ;;  %v5026_v4 = vcombine.low %v438_v46, %v442_v47 }
  0x7b   :  { %v570_v49 = vld [vmem:[#allocation5 + $0xd20] sm:$0xff]  ;;  %3316 = vmatprep.mubr.bf16.mxu0 %v5600_v0  ;;  %6434 = vst [vmem:[#allocation15_spill] sm:$0xff] %v5622_v53 }
  0x7c   :  { %v5155_v60 = vcombine.high %v566_v48, %v570_v49  ;;  %v430_v61 = vld [vmem:[#allocation5 + $0x8c0] sm:$0xff]  ;;  %3416 = vmatprep.subr.bf16.mxu0 %v5027_v59  ;;  %v5154_v7 = vcombine.low %v566_v48, %v570_v49  ;;  %v59_v49 = vld [vmem:[#allocation2 + $0x28] sm:$0xff] }
  0x7d   :  { %v434_v62 = vld [vmem:[#allocation5 + $0x8e0] sm:$0xff]  ;;  %3417 = vmatpush1.bf16.msra.mxu0 %v5026_v4 }
  0x7e   :  { %v558_v1 = vld [vmem:[#allocation5 + $0xcc0] sm:$0xff]  ;;  %v5019_v8 = vcombine.high %v430_v61, %v434_v62  ;;  %3489 = vmatprep.subr.bf16.mxu1 %v5155_v60  ;;  %v5018_v19 = vcombine.low %v430_v61, %v434_v62  ;;  %3390 = vmatmul.mubr.bf16.gmra.mxu1 %v5610_v20 }
  0x7f   :  { %v562_v2 = vld [vmem:[#allocation5 + $0xce0] sm:$0xff]  ;;  %3490 = vmatpush1.bf16.msra.mxu1 %v5154_v7  ;;  %3399 = vmatprep.mubr.bf16.mxu1 %v5615_v33 }
  0x80   :  { %v86_v5 = vld [vmem:[#allocation2 + $0x100] sm:$0xff]  ;;  %v5147_v11 = vcombine.high %v558_v1, %v562_v2  ;;  %3418 = vmatprep.subr.bf16.mxu0 %v5019_v8  ;;  %v5146_v24 = vcombine.low %v558_v1, %v562_v2  ;;  %v5624_v1 = vpack.c.bf16 %v67_v51, %v59_v49 }
  0x81   :  { %v94_v6 = vld [vmem:[#allocation2 + $0x140] sm:$0xff]  ;;  %3419 = vmatpush1.bf16.msra.mxu0 %v5018_v19 }
  0x82   :  { %v422_v12 = vld [vmem:[#allocation5 + $0x880] sm:$0xff]  ;;  %v5607_v16 = vpack.c.bf16 %v94_v6, %v86_v5  ;;  %3491 = vmatprep.subr.bf16.mxu1 %v5147_v11  ;;  %6435 = vst [vmem:[#allocation16_spill] sm:$0xff] %v5624_v1  ;;  %v5627_v5 = vpack.c.bf16 %v69_v56, %v61_v55 }
  0x83   :  { %v426_v13 = vld [vmem:[#allocation5 + $0x8a0] sm:$0xff]  ;;  %3492 = vmatpush1.bf16.msra.mxu1 %v5146_v24 }
  0x84   :  { %v550_v14 = vld [vmem:[#allocation5 + $0xc80] sm:$0xff]  ;;  %v5011_v26 = vcombine.high %v422_v12, %v426_v13  ;;  %3317 = vmatmul.mubr.bf16.gmra.mxu0 %v5607_v16  ;;  %v5010_v35 = vcombine.low %v422_v12, %v426_v13  ;;  %6436 = vst [vmem:[#allocation17_spill] sm:$0xff] %v5627_v5 }
  0x85   :  { %v554_v15 = vld [vmem:[#allocation5 + $0xca0] sm:$0xff]  ;;  %3326 = vmatprep.mubr.bf16.mxu0 %v5612_v30 }
  0x86   :  { %v5139_v27 = vcombine.high %v550_v14, %v554_v15  ;;  %v414_v28 = vld [vmem:[#allocation5 + $0x840] sm:$0xff]  ;;  %3420 = vmatprep.subr.bf16.mxu0 %v5011_v26  ;;  %v5138_v39 = vcombine.low %v550_v14, %v554_v15  ;;  %3400 = vmatmul.mubr.bf16.gmra.mxu1 %v5622_v53 }
  0x87   :  { %v418_v29 = vld [vmem:[#allocation5 + $0x860] sm:$0xff]  ;;  %3421 = vmatpush1.bf16.msra.mxu0 %v5010_v35  ;;  %3515 = vmatprep.mubr.bf16.mxu1 %v5627_v5 }
  0x88   :  { %v542_v31 = vld [vmem:[#allocation5 + $0xc40] sm:$0xff]  ;;  %v5003_v40 = vcombine.high %v414_v28, %v418_v29  ;;  %3493 = vmatprep.subr.bf16.mxu1 %v5139_v27  ;;  %v5002_v52 = vcombine.low %v414_v28, %v418_v29 }
  0x89   :  { %v546_v32 = vld [vmem:[#allocation5 + $0xc60] sm:$0xff]  ;;  %3494 = vmatpush1.bf16.msra.mxu1 %v5138_v39 }
  0x8a   :  { %v102_v36 = vld [vmem:[#allocation2 + $0x180] sm:$0xff]  ;;  %v5131_v43 = vcombine.high %v542_v31, %v546_v32  ;;  %3422 = vmatprep.subr.bf16.mxu0 %v5003_v40  ;;  %v5130_v57 = vcombine.low %v542_v31, %v546_v32 }
  0x8b   :  { %v110_v38 = vld [vmem:[#allocation2 + $0x1c0] sm:$0xff]  ;;  %3423 = vmatpush1.bf16.msra.mxu0 %v5002_v52 }
  0x8c   :  { %v406_v44 = vld [vmem:[#allocation5 + $0x800] sm:$0xff]  ;;  %v5619_v48 = vpack.c.bf16 %v110_v38, %v102_v36  ;;  %3495 = vmatprep.subr.bf16.mxu1 %v5131_v43 }
  0x8d   :  { %v410_v45 = vld [vmem:[#allocation5 + $0x820] sm:$0xff]  ;;  %3496 = vmatpush1.bf16.msra.mxu1 %v5130_v57 }
  0x8e   :  { %v534_v46 = vld [vmem:[#allocation5 + $0xc00] sm:$0xff]  ;;  %6433 = vst [vmem:[#allocation14_spill] sm:$0xff] %v5619_v48  ;;  %v4995_v59 = vcombine.high %v406_v44, %v410_v45  ;;  %3327 = vmatmul.mubr.bf16.gmra.mxu0 %v5619_v48  ;;  %v4994_v6 = vcombine.low %v406_v44, %v410_v45 }
  0x8f   :  { %v538_v47 = vld [vmem:[#allocation5 + $0xc20] sm:$0xff]  ;;  %3442 = vmatprep.mubr.bf16.mxu0 %v5624_v1 }
  0x90   :  { %v5123_v60 = vcombine.high %v534_v46, %v538_v47  ;;  %v526_v61 = vld [vmem:[#allocation5 + $0xbc0] sm:$0xff]  ;;  %3424 = vmatprep.subr.bf16.mxu0 %v4995_v59  ;;  %v5122_v7 = vcombine.low %v534_v46, %v538_v47 }
  0x91   :  { %v530_v62 = vld [vmem:[#allocation5 + $0xbe0] sm:$0xff]  ;;  %3425 = vmatpush1.bf16.msra.mxu0 %v4994_v6 }
  0x92   :  { %v654_v2 = vld [vmem:[#allocation5 + $0xfc0] sm:$0xff]  ;;  %v5115_v8 = vcombine.high %v526_v61, %v530_v62  ;;  %3497 = vmatprep.subr.bf16.mxu1 %v5123_v60  ;;  %v5114_v14 = vcombine.low %v526_v61, %v530_v62 }
  0x93   :  { %v658_v4 = vld [vmem:[#allocation5 + $0xfe0] sm:$0xff]  ;;  %3498 = vmatpush1.bf16.msra.mxu1 %v5122_v7 }
  0x94   :  { %v5243_v9 = vcombine.high %v654_v2, %v658_v4  ;;  %v518_v10 = vld [vmem:[#allocation5 + $0xb80] sm:$0xff]  ;;  %3426 = vmatprep.subr.bf16.mxu0 %v5115_v8  ;;  %v5242_v15 = vcombine.low %v654_v2, %v658_v4 }
  0x95   :  { %v522_v11 = vld [vmem:[#allocation5 + $0xba0] sm:$0xff]  ;;  %3427 = vmatpush2.bf16.msra.mxu0 %v5114_v14 }
  0x96   :  { %v646_v12 = vld [vmem:[#allocation5 + $0xf80] sm:$0xff]  ;;  %v5107_v17 = vcombine.high %v518_v10, %v522_v11  ;;  %3499 = vmatprep.subr.bf16.mxu1 %v5243_v9  ;;  %v5106_v26 = vcombine.low %v518_v10, %v522_v11 }
  0x97   :  { %v650_v13 = vld [vmem:[#allocation5 + $0xfa0] sm:$0xff]  ;;  %3500 = vmatpush2.bf16.msra.mxu1 %v5242_v15 }
  0x98   :  { %v5235_v18 = vcombine.high %v646_v12, %v650_v13  ;;  %v510_v19 = vld [vmem:[#allocation5 + $0xb40] sm:$0xff]  ;;  %3428 = vmatprep.subr.bf16.mxu0 %v5107_v17  ;;  %v5234_v27 = vcombine.low %v646_v12, %v650_v13 }
  0x99   :  { %v514_v22 = vld [vmem:[#allocation5 + $0xb60] sm:$0xff]  ;;  %3429 = vmatpush2.bf16.msra.mxu0 %v5106_v26  ;;  %v335_v26 = vld [vmem:[#allocation5 + $0x5c8] sm:$0xff] }
  0x9a   :  { %v638_v23 = vld [vmem:[#allocation5 + $0xf40] sm:$0xff]  ;;  %v5099_v28 = vcombine.high %v510_v19, %v514_v22  ;;  %3501 = vmatprep.subr.bf16.mxu1 %v5235_v18  ;;  %v5098_v38 = vcombine.low %v510_v19, %v514_v22 }
  0x9b   :  { %v642_v24 = vld [vmem:[#allocation5 + $0xf60] sm:$0xff]  ;;  %3502 = vmatpush2.bf16.msra.mxu1 %v5234_v27  ;;  %v339_v27 = vld [vmem:[#allocation5 + $0x5e8] sm:$0xff] }
  0x9c   :  { %v5227_v29 = vcombine.high %v638_v23, %v642_v24  ;;  %v502_v31 = vld [vmem:[#allocation5 + $0xb00] sm:$0xff]  ;;  %3430 = vmatprep.subr.bf16.mxu0 %v5099_v28  ;;  %v5226_v39 = vcombine.low %v638_v23, %v642_v24  ;;  %v207_v23 = vld [vmem:[#allocation5 + $0x1c8] sm:$0xff] }
  0x9d   :  { %v506_v32 = vld [vmem:[#allocation5 + $0xb20] sm:$0xff]  ;;  %3431 = vmatpush2.bf16.msra.mxu0 %v5098_v38  ;;  %v211_v24 = vld [vmem:[#allocation5 + $0x1e8] sm:$0xff] }
  0x9e   :  { %v630_v35 = vld [vmem:[#allocation5 + $0xf00] sm:$0xff]  ;;  %v5091_v40 = vcombine.high %v502_v31, %v506_v32  ;;  %3503 = vmatprep.subr.bf16.mxu1 %v5227_v29  ;;  %v5090_v46 = vcombine.low %v502_v31, %v506_v32  ;;  %v4797_v38 = vcombine.high %v207_v23, %v211_v24 }
  0x9f   :  { %v634_v36 = vld [vmem:[#allocation5 + $0xf20] sm:$0xff]  ;;  %3504 = vmatpush2.bf16.msra.mxu1 %v5226_v39  ;;  %v4925_v39 = vcombine.high %v335_v26, %v339_v27 }
  0xa0   :  { %v5219_v41 = vcombine.high %v630_v35, %v634_v36  ;;  %v494_v42 = vld [vmem:[#allocation5 + $0xac0] sm:$0xff]  ;;  %3432 = vmatprep.subr.bf16.mxu0 %v5091_v40  ;;  %v5218_v47 = vcombine.low %v630_v35, %v634_v36  ;;  %v60_v35 = vld [vmem:[#allocation2 + $0x30] sm:$0xff]  ;;  %v199_v40 = vld [vmem:[#allocation5 + $0x188] sm:$0xff] }
  0xa1   :  { %v498_v43 = vld [vmem:[#allocation5 + $0xae0] sm:$0xff]  ;;  %3433 = vmatpush2.bf16.msra.mxu0 %v5090_v46  ;;  %v68_v36 = vld [vmem:[#allocation2 + $0x70] sm:$0xff]  ;;  %v83_v46 = vld [vmem:[#allocation2 + $0xe8] sm:$0xff] }
  0xa2   :  { %v622_v44 = vld [vmem:[#allocation5 + $0xec0] sm:$0xff]  ;;  %v5083_v49 = vcombine.high %v494_v42, %v498_v43  ;;  %3505 = vmatprep.subr.bf16.mxu1 %v5219_v41  ;;  %v5082_v59 = vcombine.low %v494_v42, %v498_v43  ;;  %v203_v41 = vld [vmem:[#allocation5 + $0x1a8] sm:$0xff] }
  0xa3   :  { %v626_v45 = vld [vmem:[#allocation5 + $0xee0] sm:$0xff]  ;;  %3506 = vmatpush2.bf16.msra.mxu1 %v5218_v47  ;;  %v327_v42 = vld [vmem:[#allocation5 + $0x588] sm:$0xff]  ;;  %v5634_v47 = vpack.c.bf16 %v68_v36, %v60_v35 }
  0xa4   :  { %v5211_v51 = vcombine.high %v622_v44, %v626_v45  ;;  %v486_v52 = vld [vmem:[#allocation5 + $0xa80] sm:$0xff]  ;;  %3434 = vmatprep.subr.bf16.mxu0 %v5083_v49  ;;  %v5210_v60 = vcombine.low %v622_v44, %v626_v45  ;;  %v331_v44 = vld [vmem:[#allocation5 + $0x5a8] sm:$0xff]  ;;  %v4796_v49 = vcombine.low %v207_v23, %v211_v24 }
  0xa5   :  { %v490_v55 = vld [vmem:[#allocation5 + $0xaa0] sm:$0xff]  ;;  %3435 = vmatpush2.bf16.msra.mxu0 %v5082_v59  ;;  %v75_v45 = vld [vmem:[#allocation2 + $0xa8] sm:$0xff]  ;;  %6438 = vst [vmem:[#allocation19_spill] sm:$0xff] %v5634_v47 }
  0xa6   :  { %v614_v56 = vld [vmem:[#allocation5 + $0xe80] sm:$0xff]  ;;  %v5075_v61 = vcombine.high %v486_v52, %v490_v55  ;;  %3507 = vmatprep.subr.bf16.mxu1 %v5211_v51  ;;  %v5074_v8 = vcombine.low %v486_v52, %v490_v55  ;;  %v77_v51 = vld [vmem:[#allocation2 + $0xb8] sm:$0xff]  ;;  %v4924_v55 = vcombine.low %v335_v26, %v339_v27  ;;  %v5636_v59 = vpack.c.bf16 %v83_v46, %v75_v45  ;;  %v99_v23 = vld [vmem:[#allocation2 + $0x168] sm:$0xff] }
  0xa7   :  { %v618_v57 = vld [vmem:[#allocation5 + $0xea0] sm:$0xff]  ;;  %3508 = vmatpush2.bf16.msra.mxu1 %v5210_v60  ;;  %v85_v52 = vld [vmem:[#allocation2 + $0xf8] sm:$0xff]  ;;  %v191_v60 = vld [vmem:[#allocation5 + $0x148] sm:$0xff] }
  0xa8   :  { %v5203_v62 = vcombine.high %v614_v56, %v618_v57  ;;  %v478_v2 = vld [vmem:[#allocation5 + $0xa40] sm:$0xff]  ;;  %3436 = vmatprep.subr.bf16.mxu0 %v5075_v61  ;;  %v5202_v9 = vcombine.low %v614_v56, %v618_v57  ;;  %v4789_v56 = vcombine.high %v199_v40, %v203_v41  ;;  %v4917_v57 = vcombine.high %v327_v42, %v331_v44  ;;  %v195_v61 = vld [vmem:[#allocation5 + $0x168] sm:$0xff]  ;;  %v93_v27 = vld [vmem:[#allocation2 + $0x138] sm:$0xff] }
  0xa9   :  { %v482_v4 = vld [vmem:[#allocation5 + $0xa60] sm:$0xff]  ;;  %3437 = vmatpush2.bf16.msra.mxu0 %v5074_v8  ;;  %6439 = vst [vmem:[#allocation20_spill] sm:$0xff] %v5636_v59  ;;  %v4780_v24 = vcombine.low %v191_v60, %v195_v61  ;;  %v175_v36 = vld [vmem:[#allocation5 + $0xc8] sm:$0xff] }
  0xaa   :  { %v606_v6 = vld [vmem:[#allocation5 + $0xe40] sm:$0xff]  ;;  %v5067_v10 = vcombine.high %v478_v2, %v482_v4  ;;  %3509 = vmatprep.subr.bf16.mxu1 %v5203_v62  ;;  %v5066_v17 = vcombine.low %v478_v2, %v482_v4  ;;  %v319_v62 = vld [vmem:[#allocation5 + $0x548] sm:$0xff]  ;;  %v5639_v4 = vpack.c.bf16 %v85_v52, %v77_v51  ;;  %v92_v51 = vld [vmem:[#allocation2 + $0x130] sm:$0xff] }
  0xab   :  { %v610_v7 = vld [vmem:[#allocation5 + $0xe60] sm:$0xff]  ;;  %3510 = vmatpush2.bf16.msra.mxu1 %v5202_v9  ;;  %v323_v2 = vld [vmem:[#allocation5 + $0x568] sm:$0xff]  ;;  %v4916_v9 = vcombine.low %v327_v42, %v331_v44  ;;  %v100_v52 = vld [vmem:[#allocation2 + $0x170] sm:$0xff] }
  0xac   :  { %v5195_v11 = vcombine.high %v606_v6, %v610_v7  ;;  %v470_v12 = vld [vmem:[#allocation5 + $0xa00] sm:$0xff]  ;;  %3438 = vmatprep.subr.bf16.mxu0 %v5067_v10  ;;  %v5194_v18 = vcombine.low %v606_v6, %v610_v7  ;;  %6440 = vst [vmem:[#allocation21_spill] sm:$0xff] %v5639_v4  ;;  %v4788_v6 = vcombine.low %v199_v40, %v203_v41  ;;  %v307_v40 = vld [vmem:[#allocation5 + $0x4e8] sm:$0xff] }
  0xad   :  { %v474_v13 = vld [vmem:[#allocation5 + $0xa20] sm:$0xff]  ;;  %3439 = vmatpush2.bf16.msra.mxu0 %v5066_v17  ;;  %v4781_v10 = vcombine.high %v191_v60, %v195_v61  ;;  %v311_v17 = vld [vmem:[#allocation5 + $0x508] sm:$0xff] }
  0xae   :  { %v598_v14 = vld [vmem:[#allocation5 + $0xe00] sm:$0xff]  ;;  %v5059_v19 = vcombine.high %v470_v12, %v474_v13  ;;  %3511 = vmatprep.subr.bf16.mxu1 %v5195_v11  ;;  %v5058_v28 = vcombine.low %v470_v12, %v474_v13  ;;  %v76_v11 = vld [vmem:[#allocation2 + $0xb0] sm:$0xff]  ;;  %v4909_v13 = vcombine.high %v319_v62, %v323_v2  ;;  %v295_v60 = vld [vmem:[#allocation5 + $0x488] sm:$0xff] }
  0xaf   :  { %v602_v15 = vld [vmem:[#allocation5 + $0xe20] sm:$0xff]  ;;  %3512 = vmatpush2.bf16.msra.mxu1 %v5194_v18  ;;  %v84_v12 = vld [vmem:[#allocation2 + $0xf0] sm:$0xff] }
  0xb0   :  { %v5187_v22 = vcombine.high %v598_v14, %v602_v15  ;;  %v58_v29 = vld [vmem:[#allocation2 + $0x20] sm:$0xff]  ;;  %3440 = vmatprep.subr.bf16.mxu0 %v5059_v19  ;;  %v5186_v32 = vcombine.low %v598_v14, %v602_v15  ;;  %v183_v14 = vld [vmem:[#allocation5 + $0x108] sm:$0xff]  ;;  %v5646_v26 = vpack.c.bf16 %v84_v12, %v76_v11 }
  0xb1   :  { %v66_v31 = vld [vmem:[#allocation2 + $0x60] sm:$0xff]  ;;  %3441 = vmatpush2.bf16.msra.mxu0 %v5058_v28  ;;  %v187_v15 = vld [vmem:[#allocation5 + $0x128] sm:$0xff]  ;;  %v101_v28 = vld [vmem:[#allocation2 + $0x178] sm:$0xff] }
  0xb2   :  { %3513 = vmatprep.subr.bf16.mxu1 %v5187_v22  ;;  %v5632_v43 = vpack.c.bf16 %v66_v31, %v58_v29  ;;  %3556 = vmatprep.subr.bf16.mxu0 %v4797_v38  ;;  %v74_v7 = vld [vmem:[#allocation2 + $0xa0] sm:$0xff]  ;;  %v315_v19 = vld [vmem:[#allocation5 + $0x528] sm:$0xff]  ;;  %6442 = vst [vmem:[#allocation23_spill] sm:$0xff] %v5646_v26  ;;  %v4908_v29 = vcombine.low %v319_v62, %v323_v2 }
  0xb3   :  { %3514 = vmatpush2.bf16.msra.mxu1 %v5186_v32  ;;  %v82_v8 = vld [vmem:[#allocation2 + $0xe0] sm:$0xff]  ;;  %v91_v22 = vld [vmem:[#allocation2 + $0x128] sm:$0xff]  ;;  %v4773_v31 = vcombine.high %v183_v14, %v187_v15  ;;  %v4901_v32 = vcombine.high %v311_v17, %v315_v19  ;;  %v5651_v41 = vpack.c.bf16 %v101_v28, %v93_v27  ;;  %v4772_v42 = vcombine.low %v183_v14, %v187_v15 }
  0xb4   :  { %6437 = vst [vmem:[#allocation18_spill] sm:$0xff] %v5632_v43  ;;  %3629 = vmatprep.subr.bf16.mxu1 %v4925_v39  ;;  %3443 = vmatmul.mubr.bf16.vlgmr.msra.gmra.mxu0 %v5632_v43  ;;  %v5643_v18 = vpack.c.bf16 %v82_v8, %v74_v7  ;;  %v5648_v35 = vpack.c.bf16 %v99_v23, %v91_v22  ;;  %v179_v38 = vld [vmem:[#allocation5 + $0xe8] sm:$0xff]  ;;  %v90_v44 = vld [vmem:[#allocation2 + $0x120] sm:$0xff] }
  0xb5   :  { %3557 = vmatpush1.bf16.msra.mxu0 %v4796_v49  ;;  %3452 = vmatprep.mubr.bf16.mxu0 %v5636_v59  ;;  %v303_v39 = vld [vmem:[#allocation5 + $0x4c8] sm:$0xff]  ;;  %6444 = vst [vmem:[#allocation25_spill] sm:$0xff] %v5651_v41  ;;  %v98_v45 = vld [vmem:[#allocation2 + $0x160] sm:$0xff]  ;;  %v4900_v46 = vcombine.low %v311_v17, %v315_v19  ;;  %v4765_v49 = vcombine.high %v175_v36, %v179_v38 }
  0xb6   :  { %3516 = vmatmul.mubr.bf16.vlgmr.msra.gmra.mxu1 %v5634_v47  ;;  %3558 = vmatprep.subr.bf16.mxu0 %v4789_v56  ;;  %6441 = vst [vmem:[#allocation22_spill] sm:$0xff] %v5643_v18  ;;  %6443 = vst [vmem:[#allocation24_spill] sm:$0xff] %v5648_v35  ;;  %v167_v56 = vld [vmem:[#allocation5 + $0x88] sm:$0xff]  ;;  %v5655_v61 = vpack.c.bf16 %v98_v45, %v90_v44  ;;  %v4764_v7 = vcombine.low %v175_v36, %v179_v38  ;;  %v106_v27 = vld [vmem:[#allocation2 + $0x1a0] sm:$0xff] }
  0xb7   :  { %3630 = vmatpush1.bf16.msra.mxu1 %v4924_v55  ;;  %3525 = vmatprep.mubr.bf16.mxu1 %v5639_v4  ;;  %v4893_v55 = vcombine.high %v303_v39, %v307_v40  ;;  %v299_v62 = vld [vmem:[#allocation5 + $0x4a8] sm:$0xff]  ;;  %v5658_v8 = vpack.c.bf16 %v100_v52, %v92_v51  ;;  %v4892_v11 = vcombine.low %v303_v39, %v307_v40  ;;  %v114_v28 = vld [vmem:[#allocation2 + $0x1e0] sm:$0xff]  ;;  %v116_v36 = vld [vmem:[#allocation2 + $0x1f0] sm:$0xff] }
  0xb8   :  { %3631 = vmatprep.subr.bf16.mxu1 %v4917_v57  ;;  %v171_v57 = vld [vmem:[#allocation5 + $0xa8] sm:$0xff]  ;;  %6445 = vst [vmem:[#allocation26_spill] sm:$0xff] %v5655_v61 }
  0xb9   :  { %3559 = vmatpush1.bf16.msra.mxu0 %v4788_v6  ;;  %v107_v2 = vld [vmem:[#allocation2 + $0x1a8] sm:$0xff]  ;;  %6446 = vst [vmem:[#allocation27_spill] sm:$0xff] %v5658_v8  ;;  %v4757_v12 = vcombine.high %v167_v56, %v171_v57 }
  0xba   :  { %3560 = vmatprep.subr.bf16.mxu0 %v4781_v10  ;;  %v115_v6 = vld [vmem:[#allocation2 + $0x1e8] sm:$0xff]  ;;  %v117_v10 = vld [vmem:[#allocation2 + $0x1f8] sm:$0xff] }
  0xbb   :  { %3632 = vmatpush1.bf16.msra.mxu1 %v4916_v9  ;;  %v109_v9 = vld [vmem:[#allocation2 + $0x1b8] sm:$0xff]  ;;  %v5660_v14 = vpack.c.bf16 %v115_v6, %v107_v2  ;;  %v159_v15 = vld [vmem:[#allocation5 + $0x48] sm:$0xff] }
  0xbc   :  { %3633 = vmatprep.subr.bf16.mxu1 %v4909_v13  ;;  %3453 = vmatmul.mubr.bf16.gmra.mxu0 %v5643_v18  ;;  %v4885_v13 = vcombine.high %v295_v60, %v299_v62  ;;  %v163_v17 = vld [vmem:[#allocation5 + $0x68] sm:$0xff]  ;;  %v5663_v23 = vpack.c.bf16 %v117_v10, %v109_v9 }
  0xbd   :  { %3561 = vmatpush1.bf16.msra.mxu0 %v4780_v24  ;;  %3462 = vmatprep.mubr.bf16.mxu0 %v5648_v35  ;;  %6447 = vst [vmem:[#allocation28_spill] sm:$0xff] %v5660_v14  ;;  %v287_v19 = vld [vmem:[#allocation5 + $0x448] sm:$0xff]  ;;  %v4756_v24 = vcombine.low %v167_v56, %v171_v57 }
  0xbe   :  { %3526 = vmatmul.mubr.bf16.gmra.mxu1 %v5646_v26  ;;  %3562 = vmatprep.subr.bf16.mxu0 %v4773_v31  ;;  %v291_v22 = vld [vmem:[#allocation5 + $0x468] sm:$0xff]  ;;  %6448 = vst [vmem:[#allocation29_spill] sm:$0xff] %v5663_v23  ;;  %v4749_v31 = vcombine.high %v159_v15, %v163_v17 }
  0xbf   :  { %3634 = vmatpush1.bf16.msra.mxu1 %v4908_v29  ;;  %3535 = vmatprep.mubr.bf16.mxu1 %v5651_v41  ;;  %v4884_v29 = vcombine.low %v295_v60, %v299_v62  ;;  %v4877_v38 = vcombine.high %v287_v19, %v291_v22  ;;  %v151_v39 = vld [vmem:[#allocation5 + $0x8] sm:$0xff]  ;;  %v4876_v51 = vcombine.low %v287_v19, %v291_v22 }
  0xc0   :  { %3635 = vmatprep.subr.bf16.mxu1 %v4901_v32  ;;  %v108_v32 = vld [vmem:[#allocation2 + $0x1b0] sm:$0xff]  ;;  %v155_v40 = vld [vmem:[#allocation5 + $0x28] sm:$0xff] }
  0xc1   :  { %3563 = vmatpush1.bf16.msra.mxu0 %v4772_v42  ;;  %v5667_v42 = vpack.c.bf16 %v114_v28, %v106_v27  ;;  %v279_v44 = vld [vmem:[#allocation5 + $0x408] sm:$0xff]  ;;  %v4741_v52 = vcombine.high %v151_v39, %v155_v40  ;;  %v4740_v2 = vcombine.low %v151_v39, %v155_v40 }
  0xc2   :  { %3564 = vmatprep.subr.bf16.mxu0 %v4765_v49  ;;  %v283_v45 = vld [vmem:[#allocation5 + $0x428] sm:$0xff]  ;;  %v5670_v49 = vpack.c.bf16 %v116_v36, %v108_v32 }
  0xc3   :  { %3636 = vmatpush1.bf16.msra.mxu1 %v4900_v46  ;;  %6449 = vst [vmem:[#allocation30_spill] sm:$0xff] %v5667_v42  ;;  %v4748_v46 = vcombine.low %v159_v15, %v163_v17  ;;  %v271_v56 = vld [vmem:[#allocation5 + $0x3c8] sm:$0xff]  ;;  %v4868_v6 = vcombine.low %v279_v44, %v283_v45 }
  0xc4   :  { %3637 = vmatprep.subr.bf16.mxu1 %v4893_v55  ;;  %3463 = vmatmul.mubr.bf16.gmra.mxu0 %v5655_v61  ;;  %6450 = vst [vmem:[#allocation31_spill] sm:$0xff] %v5670_v49  ;;  %v4869_v55 = vcombine.high %v279_v44, %v283_v45  ;;  %v275_v57 = vld [vmem:[#allocation5 + $0x3e8] sm:$0xff] }
  0xc5   :  { %3565 = vmatpush1.bf16.msra.mxu0 %v4764_v7  ;;  %3472 = vmatprep.mubr.bf16.mxu0 %v5660_v14  ;;  %v399_v60 = vld [vmem:[#allocation5 + $0x7c8] sm:$0xff]  ;;  %v4861_v7 = vcombine.high %v271_v56, %v275_v57  ;;  %v4860_v15 = vcombine.low %v271_v56, %v275_v57 }
  0xc6   :  { %3536 = vmatmul.mubr.bf16.gmra.mxu1 %v5658_v8  ;;  %3566 = vmatprep.subr.bf16.mxu0 %v4757_v12  ;;  %v403_v62 = vld [vmem:[#allocation5 + $0x7e8] sm:$0xff] }
  0xc7   :  { %3638 = vmatpush1.bf16.msra.mxu1 %v4892_v11  ;;  %3545 = vmatprep.mubr.bf16.mxu1 %v5663_v23  ;;  %v4989_v9 = vcombine.high %v399_v60, %v403_v62  ;;  %v263_v10 = vld [vmem:[#allocation5 + $0x388] sm:$0xff]  ;;  %v4988_v17 = vcombine.low %v399_v60, %v403_v62 }
  0xc8   :  { %3639 = vmatprep.subr.bf16.mxu1 %v4885_v13  ;;  %v267_v11 = vld [vmem:[#allocation5 + $0x3a8] sm:$0xff] }
  0xc9   :  { %3567 = vmatpush1.bf16.msra.mxu0 %v4756_v24  ;;  %v391_v12 = vld [vmem:[#allocation5 + $0x788] sm:$0xff]  ;;  %v4853_v19 = vcombine.high %v263_v10, %v267_v11 }
  0xca   :  { %3568 = vmatprep.subr.bf16.mxu0 %v4749_v31  ;;  %v395_v13 = vld [vmem:[#allocation5 + $0x7a8] sm:$0xff]  ;;  %v4852_v31 = vcombine.low %v263_v10, %v267_v11 }
  0xcb   :  { %3640 = vmatpush1.bf16.msra.mxu1 %v4884_v29  ;;  %v4981_v22 = vcombine.high %v391_v12, %v395_v13  ;;  %v255_v24 = vld [vmem:[#allocation5 + $0x348] sm:$0xff]  ;;  %v4980_v32 = vcombine.low %v391_v12, %v395_v13 }
  0xcc   :  { %3641 = vmatprep.subr.bf16.mxu1 %v4877_v38  ;;  %3473 = vmatmul.mubr.bf16.gmra.mxu0 %v5667_v42  ;;  %v259_v27 = vld [vmem:[#allocation5 + $0x368] sm:$0xff] }
  0xcd   :  { %3569 = vmatpush1.bf16.msra.mxu0 %v4748_v46  ;;  %3588 = vmatprep.mubr.bf16.mxu0 %v5578_v58  ;;  %v383_v28 = vld [vmem:[#allocation5 + $0x748] sm:$0xff]  ;;  %v4845_v36 = vcombine.high %v255_v24, %v259_v27  ;;  %v4844_v46 = vcombine.low %v255_v24, %v259_v27 }
  0xce   :  { %3546 = vmatmul.mubr.bf16.gmra.mxu1 %v5670_v49  ;;  %3570 = vmatprep.subr.bf16.mxu0 %v4741_v52  ;;  %v387_v29 = vld [vmem:[#allocation5 + $0x768] sm:$0xff] }
  0xcf   :  { %3642 = vmatpush1.bf16.msra.mxu1 %v4876_v51  ;;  %3661 = vmatprep.mubr.bf16.mxu1 %v5580_v63  ;;  %v4973_v38 = vcombine.high %v383_v28, %v387_v29  ;;  %v247_v39 = vld [vmem:[#allocation5 + $0x308] sm:$0xff]  ;;  %v4972_v51 = vcombine.low %v383_v28, %v387_v29 }
  0xd0   :  { %3643 = vmatprep.subr.bf16.mxu1 %v4869_v55  ;;  %v251_v40 = vld [vmem:[#allocation5 + $0x328] sm:$0xff] }
  0xd1   :  { %3571 = vmatpush1.bf16.msra.mxu0 %v4740_v2  ;;  %v375_v44 = vld [vmem:[#allocation5 + $0x708] sm:$0xff]  ;;  %v4837_v52 = vcombine.high %v247_v39, %v251_v40  ;;  %v4836_v2 = vcombine.low %v247_v39, %v251_v40 }
  0xd2   :  { %3572 = vmatprep.subr.bf16.mxu0 %v4861_v7  ;;  %v379_v45 = vld [vmem:[#allocation5 + $0x728] sm:$0xff] }
  0xd3   :  { %3644 = vmatpush1.bf16.msra.mxu1 %v4868_v6  ;;  %v4965_v55 = vcombine.high %v375_v44, %v379_v45  ;;  %v239_v56 = vld [vmem:[#allocation5 + $0x2c8] sm:$0xff]  ;;  %v4964_v6 = vcombine.low %v375_v44, %v379_v45 }
  0xd4   :  { %3645 = vmatprep.subr.bf16.mxu1 %v4989_v9  ;;  %v243_v57 = vld [vmem:[#allocation5 + $0x2e8] sm:$0xff] }
  0xd5   :  { %3573 = vmatpush2.bf16.msra.mxu0 %v4860_v15  ;;  %v367_v60 = vld [vmem:[#allocation5 + $0x6c8] sm:$0xff]  ;;  %v4829_v7 = vcombine.high %v239_v56, %v243_v57  ;;  %v4828_v15 = vcombine.low %v239_v56, %v243_v57 }
  0xd6   :  { %3574 = vmatprep.subr.bf16.mxu0 %v4853_v19  ;;  %v371_v62 = vld [vmem:[#allocation5 + $0x6e8] sm:$0xff] }
  0xd7   :  { %3646 = vmatpush2.bf16.msra.mxu1 %v4988_v17  ;;  %v4957_v9 = vcombine.high %v367_v60, %v371_v62  ;;  %v231_v10 = vld [vmem:[#allocation5 + $0x288] sm:$0xff]  ;;  %v4956_v17 = vcombine.low %v367_v60, %v371_v62 }
  0xd8   :  { %3647 = vmatprep.subr.bf16.mxu1 %v4981_v22  ;;  %v235_v11 = vld [vmem:[#allocation5 + $0x2a8] sm:$0xff] }
  0xd9   :  { %3575 = vmatpush2.bf16.msra.mxu0 %v4852_v31  ;;  %v359_v12 = vld [vmem:[#allocation5 + $0x688] sm:$0xff]  ;;  %v4821_v19 = vcombine.high %v231_v10, %v235_v11  ;;  %v4820_v31 = vcombine.low %v231_v10, %v235_v11 }
  0xda   :  { %3576 = vmatprep.subr.bf16.mxu0 %v4845_v36  ;;  %v363_v13 = vld [vmem:[#allocation5 + $0x6a8] sm:$0xff] }
  0xdb   :  { %3648 = vmatpush2.bf16.msra.mxu1 %v4980_v32  ;;  %v4949_v22 = vcombine.high %v359_v12, %v363_v13  ;;  %v223_v24 = vld [vmem:[#allocation5 + $0x248] sm:$0xff]  ;;  %v4948_v32 = vcombine.low %v359_v12, %v363_v13 }
  0xdc   :  { %3649 = vmatprep.subr.bf16.mxu1 %v4973_v38  ;;  %v227_v27 = vld [vmem:[#allocation5 + $0x268] sm:$0xff] }
  0xdd   :  { %3577 = vmatpush2.bf16.msra.mxu0 %v4844_v46  ;;  %v351_v28 = vld [vmem:[#allocation5 + $0x648] sm:$0xff]  ;;  %v4813_v36 = vcombine.high %v223_v24, %v227_v27  ;;  %v4812_v46 = vcombine.low %v223_v24, %v227_v27 }
  0xde   :  { %3578 = vmatprep.subr.bf16.mxu0 %v4837_v52  ;;  %v355_v29 = vld [vmem:[#allocation5 + $0x668] sm:$0xff] }
  0xdf   :  { %3650 = vmatpush2.bf16.msra.mxu1 %v4972_v51  ;;  %v4941_v38 = vcombine.high %v351_v28, %v355_v29  ;;  %v215_v39 = vld [vmem:[#allocation5 + $0x208] sm:$0xff]  ;;  %v4940_v51 = vcombine.low %v351_v28, %v355_v29 }
  0xe0   :  { %3651 = vmatprep.subr.bf16.mxu1 %v4965_v55  ;;  %v219_v40 = vld [vmem:[#allocation5 + $0x228] sm:$0xff] }
  0xe1   :  { %3579 = vmatpush2.bf16.msra.mxu0 %v4836_v2  ;;  %v343_v44 = vld [vmem:[#allocation5 + $0x608] sm:$0xff]  ;;  %v4805_v52 = vcombine.high %v215_v39, %v219_v40  ;;  %v4804_v2 = vcombine.low %v215_v39, %v219_v40 }
  0xe2   :  { %3580 = vmatprep.subr.bf16.mxu0 %v4829_v7  ;;  %v347_v45 = vld [vmem:[#allocation5 + $0x628] sm:$0xff] }
  0xe3   :  { %3652 = vmatpush2.bf16.msra.mxu1 %v4964_v6  ;;  %v4933_v55 = vcombine.high %v343_v44, %v347_v45  ;;  %v463_v56 = vld [vmem:[#allocation5 + $0x9c8] sm:$0xff]  ;;  %v4932_v6 = vcombine.low %v343_v44, %v347_v45 }
  0xe4   :  { %3653 = vmatprep.subr.bf16.mxu1 %v4957_v9  ;;  %v467_v57 = vld [vmem:[#allocation5 + $0x9e8] sm:$0xff] }
  0xe5   :  { %3581 = vmatpush2.bf16.msra.mxu0 %v4828_v15  ;;  %v591_v60 = vld [vmem:[#allocation5 + $0xdc8] sm:$0xff]  ;;  %v5053_v7 = vcombine.high %v463_v56, %v467_v57  ;;  %v5052_v15 = vcombine.low %v463_v56, %v467_v57 }
  0xe6   :  { %3582 = vmatprep.subr.bf16.mxu0 %v4821_v19  ;;  %v595_v62 = vld [vmem:[#allocation5 + $0xde8] sm:$0xff] }
  0xe7   :  { %3654 = vmatpush2.bf16.msra.mxu1 %v4956_v17  ;;  %v5181_v9 = vcombine.high %v591_v60, %v595_v62  ;;  %v455_v10 = vld [vmem:[#allocation5 + $0x988] sm:$0xff]  ;;  %v5180_v17 = vcombine.low %v591_v60, %v595_v62 }
  0xe8   :  { %3655 = vmatprep.subr.bf16.mxu1 %v4949_v22  ;;  %v459_v11 = vld [vmem:[#allocation5 + $0x9a8] sm:$0xff] }
  0xe9   :  { %3583 = vmatpush2.bf16.msra.mxu0 %v4820_v31  ;;  %v583_v12 = vld [vmem:[#allocation5 + $0xd88] sm:$0xff]  ;;  %v5045_v19 = vcombine.high %v455_v10, %v459_v11  ;;  %v5044_v31 = vcombine.low %v455_v10, %v459_v11 }
  0xea   :  { %3584 = vmatprep.subr.bf16.mxu0 %v4813_v36  ;;  %v587_v13 = vld [vmem:[#allocation5 + $0xda8] sm:$0xff] }
  0xeb   :  { %3656 = vmatpush2.bf16.msra.mxu1 %v4948_v32  ;;  %v5173_v22 = vcombine.high %v583_v12, %v587_v13  ;;  %v447_v24 = vld [vmem:[#allocation5 + $0x948] sm:$0xff]  ;;  %v5172_v32 = vcombine.low %v583_v12, %v587_v13 }
  0xec   :  { %3657 = vmatprep.subr.bf16.mxu1 %v4941_v38  ;;  %v451_v27 = vld [vmem:[#allocation5 + $0x968] sm:$0xff] }
  0xed   :  { %3585 = vmatpush2.bf16.msra.mxu0 %v4812_v46  ;;  %v575_v28 = vld [vmem:[#allocation5 + $0xd48] sm:$0xff]  ;;  %v5037_v36 = vcombine.high %v447_v24, %v451_v27  ;;  %v5036_v46 = vcombine.low %v447_v24, %v451_v27 }
  0xee   :  { %3586 = vmatprep.subr.bf16.mxu0 %v4805_v52  ;;  %v579_v29 = vld [vmem:[#allocation5 + $0xd68] sm:$0xff] }
  0xef   :  { %3658 = vmatpush2.bf16.msra.mxu1 %v4940_v51  ;;  %v5165_v38 = vcombine.high %v575_v28, %v579_v29  ;;  %v439_v39 = vld [vmem:[#allocation5 + $0x908] sm:$0xff]  ;;  %v5164_v51 = vcombine.low %v575_v28, %v579_v29 }
  0xf0   :  { %3659 = vmatprep.subr.bf16.mxu1 %v4933_v55  ;;  %v443_v40 = vld [vmem:[#allocation5 + $0x928] sm:$0xff] }
  0xf1   :  { %3587 = vmatpush2.bf16.msra.mxu0 %v4804_v2  ;;  %v567_v44 = vld [vmem:[#allocation5 + $0xd08] sm:$0xff]  ;;  %v5029_v52 = vcombine.high %v439_v39, %v443_v40  ;;  %v5028_v2 = vcombine.low %v439_v39, %v443_v40 }
  0xf2   :  { %3702 = vmatprep.subr.bf16.mxu0 %v5053_v7  ;;  %v571_v45 = vld [vmem:[#allocation5 + $0xd28] sm:$0xff] }
  0xf3   :  { %3660 = vmatpush2.bf16.msra.mxu1 %v4932_v6  ;;  %v5157_v55 = vcombine.high %v567_v44, %v571_v45  ;;  %v431_v56 = vld [vmem:[#allocation5 + $0x8c8] sm:$0xff]  ;;  %v5156_v6 = vcombine.low %v567_v44, %v571_v45 }
  0xf4   :  { %3775 = vmatprep.subr.bf16.mxu1 %v5181_v9  ;;  %3589 = vmatmul.mubr.bf16.vlgmr.msra.gmra.mxu0 %v5584_v21  ;;  %v435_v57 = vld [vmem:[#allocation5 + $0x8e8] sm:$0xff] }
  0xf5   :  { %3703 = vmatpush1.bf16.msra.mxu0 %v5052_v15  ;;  %3598 = vmatprep.mubr.bf16.mxu0 %v5588_v34  ;;  %v559_v60 = vld [vmem:[#allocation5 + $0xcc8] sm:$0xff]  ;;  %v5021_v7 = vcombine.high %v431_v56, %v435_v57  ;;  %v5020_v15 = vcombine.low %v431_v56, %v435_v57 }
  0xf6   :  { %3662 = vmatmul.mubr.bf16.vlgmr.msra.gmra.mxu1 %v5586_v25  ;;  %3704 = vmatprep.subr.bf16.mxu0 %v5045_v19  ;;  %v563_v62 = vld [vmem:[#allocation5 + $0xce8] sm:$0xff] }
  0xf7   :  { %3776 = vmatpush1.bf16.msra.mxu1 %v5180_v17  ;;  %3671 = vmatprep.mubr.bf16.mxu1 %v5591_v37  ;;  %v5149_v9 = vcombine.high %v559_v60, %v563_v62  ;;  %v423_v10 = vld [vmem:[#allocation5 + $0x888] sm:$0xff]  ;;  %v5148_v17 = vcombine.low %v559_v60, %v563_v62 }
  0xf8   :  { %3777 = vmatprep.subr.bf16.mxu1 %v5173_v22  ;;  %v427_v11 = vld [vmem:[#allocation5 + $0x8a8] sm:$0xff] }
  0xf9   :  { %3705 = vmatpush1.bf16.msra.mxu0 %v5044_v31  ;;  %v551_v12 = vld [vmem:[#allocation5 + $0xc88] sm:$0xff]  ;;  %v5013_v19 = vcombine.high %v423_v10, %v427_v11  ;;  %v5012_v31 = vcombine.low %v423_v10, %v427_v11 }
  0xfa   :  { %3706 = vmatprep.subr.bf16.mxu0 %v5037_v36  ;;  %v555_v13 = vld [vmem:[#allocation5 + $0xca8] sm:$0xff] }
  0xfb   :  { %3778 = vmatpush1.bf16.msra.mxu1 %v5172_v32  ;;  %v5141_v22 = vcombine.high %v551_v12, %v555_v13  ;;  %v415_v24 = vld [vmem:[#allocation5 + $0x848] sm:$0xff]  ;;  %v5140_v32 = vcombine.low %v551_v12, %v555_v13 }
  0xfc   :  { %3779 = vmatprep.subr.bf16.mxu1 %v5165_v38  ;;  %3599 = vmatmul.mubr.bf16.gmra.mxu0 %v5595_v50  ;;  %v419_v27 = vld [vmem:[#allocation5 + $0x868] sm:$0xff] }
  0xfd   :  { %3707 = vmatpush1.bf16.msra.mxu0 %v5036_v46  ;;  %3608 = vmatprep.mubr.bf16.mxu0 %v5600_v0  ;;  %v543_v28 = vld [vmem:[#allocation5 + $0xc48] sm:$0xff]  ;;  %v5005_v36 = vcombine.high %v415_v24, %v419_v27  ;;  %v5004_v46 = vcombine.low %v415_v24, %v419_v27 }
  0xfe   :  { %3672 = vmatmul.mubr.bf16.gmra.mxu1 %v5598_v54  ;;  %3708 = vmatprep.subr.bf16.mxu0 %v5029_v52  ;;  %v547_v29 = vld [vmem:[#allocation5 + $0xc68] sm:$0xff] }
  0xff   :  { %3780 = vmatpush1.bf16.msra.mxu1 %v5164_v51  ;;  %3681 = vmatprep.mubr.bf16.mxu1 %v5603_v3  ;;  %v5133_v38 = vcombine.high %v543_v28, %v547_v29  ;;  %v407_v39 = vld [vmem:[#allocation5 + $0x808] sm:$0xff]  ;;  %v5132_v51 = vcombine.low %v543_v28, %v547_v29 }
 0x100   :  { %3781 = vmatprep.subr.bf16.mxu1 %v5157_v55  ;;  %v411_v40 = vld [vmem:[#allocation5 + $0x828] sm:$0xff] }
 0x101   :  { %3709 = vmatpush1.bf16.msra.mxu0 %v5028_v2  ;;  %v535_v44 = vld [vmem:[#allocation5 + $0xc08] sm:$0xff]  ;;  %v4997_v52 = vcombine.high %v407_v39, %v411_v40  ;;  %v4996_v2 = vcombine.low %v407_v39, %v411_v40 }
 0x102   :  { %3710 = vmatprep.subr.bf16.mxu0 %v5021_v7  ;;  %v539_v45 = vld [vmem:[#allocation5 + $0xc28] sm:$0xff] }
 0x103   :  { %3782 = vmatpush1.bf16.msra.mxu1 %v5156_v6  ;;  %v5125_v55 = vcombine.high %v535_v44, %v539_v45  ;;  %v527_v56 = vld [vmem:[#allocation5 + $0xbc8] sm:$0xff]  ;;  %v5124_v6 = vcombine.low %v535_v44, %v539_v45 }
 0x104   :  { %3783 = vmatprep.subr.bf16.mxu1 %v5149_v9  ;;  %3609 = vmatmul.mubr.bf16.gmra.mxu0 %v5607_v16  ;;  %v531_v57 = vld [vmem:[#allocation5 + $0xbe8] sm:$0xff] }
 0x105   :  { %3711 = vmatpush1.bf16.msra.mxu0 %v5020_v15  ;;  %3618 = vmatprep.mubr.bf16.mxu0 %v5612_v30  ;;  %v655_v60 = vld [vmem:[#allocation5 + $0xfc8] sm:$0xff]  ;;  %v5117_v7 = vcombine.high %v527_v56, %v531_v57  ;;  %v5116_v15 = vcombine.low %v527_v56, %v531_v57 }
 0x106   :  { %3682 = vmatmul.mubr.bf16.gmra.mxu1 %v5610_v20  ;;  %3712 = vmatprep.subr.bf16.mxu0 %v5013_v19  ;;  %v659_v62 = vld [vmem:[#allocation5 + $0xfe8] sm:$0xff] }
 0x107   :  { %3784 = vmatpush1.bf16.msra.mxu1 %v5148_v17  ;;  %3691 = vmatprep.mubr.bf16.mxu1 %v5615_v33  ;;  %v5245_v9 = vcombine.high %v655_v60, %v659_v62  ;;  %v519_v10 = vld [vmem:[#allocation5 + $0xb88] sm:$0xff]  ;;  %v5244_v17 = vcombine.low %v655_v60, %v659_v62 }
 0x108   :  { %3785 = vmatprep.subr.bf16.mxu1 %v5141_v22  ;;  %v523_v11 = vld [vmem:[#allocation5 + $0xba8] sm:$0xff] }
 0x109   :  { %3713 = vmatpush1.bf16.msra.mxu0 %v5012_v31  ;;  %v647_v12 = vld [vmem:[#allocation5 + $0xf88] sm:$0xff]  ;;  %v5109_v19 = vcombine.high %v519_v10, %v523_v11  ;;  %v5108_v31 = vcombine.low %v519_v10, %v523_v11 }
 0x10a   :  { %3714 = vmatprep.subr.bf16.mxu0 %v5005_v36  ;;  %v651_v13 = vld [vmem:[#allocation5 + $0xfa8] sm:$0xff] }
 0x10b   :  { %3786 = vmatpush1.bf16.msra.mxu1 %v5140_v32  ;;  %v5237_v22 = vcombine.high %v647_v12, %v651_v13  ;;  %v511_v24 = vld [vmem:[#allocation5 + $0xb48] sm:$0xff]  ;;  %v5236_v32 = vcombine.low %v647_v12, %v651_v13 }
 0x10c   :  { %3787 = vmatprep.subr.bf16.mxu1 %v5133_v38  ;;  %3619 = vmatmul.mubr.bf16.gmra.mxu0 %v5619_v48  ;;  %v515_v27 = vld [vmem:[#allocation5 + $0xb68] sm:$0xff]  ;;  %v592_v48 = vld [vmem:[#allocation5 + $0xdd0] sm:$0xff] }
 0x10d   :  { %3715 = vmatpush1.bf16.msra.mxu0 %v5004_v46  ;;  %3734 = vmatprep.mubr.bf16.mxu0 %v5624_v1  ;;  %v639_v28 = vld [vmem:[#allocation5 + $0xf48] sm:$0xff]  ;;  %v5101_v36 = vcombine.high %v511_v24, %v515_v27  ;;  %v5100_v46 = vcombine.low %v511_v24, %v515_v27  ;;  %v464_v1 = vld [vmem:[#allocation5 + $0x9d0] sm:$0xff] }
 0x10e   :  { %3692 = vmatmul.mubr.bf16.gmra.mxu1 %v5622_v53  ;;  %3716 = vmatprep.subr.bf16.mxu0 %v4997_v52  ;;  %v643_v29 = vld [vmem:[#allocation5 + $0xf68] sm:$0xff]  ;;  %v468_v53 = vld [vmem:[#allocation5 + $0x9f0] sm:$0xff] }
 0x10f   :  { %3788 = vmatpush1.bf16.msra.mxu1 %v5132_v51  ;;  %3807 = vmatprep.mubr.bf16.mxu1 %v5627_v5  ;;  %v5229_v38 = vcombine.high %v639_v28, %v643_v29  ;;  %v503_v39 = vld [vmem:[#allocation5 + $0xb08] sm:$0xff]  ;;  %v5228_v51 = vcombine.low %v639_v28, %v643_v29  ;;  %v348_v5 = vld [vmem:[#allocation5 + $0x630] sm:$0xff] }
 0x110   :  { %3789 = vmatprep.subr.bf16.mxu1 %v5125_v55  ;;  %v507_v40 = vld [vmem:[#allocation5 + $0xb28] sm:$0xff] }
 0x111   :  { %3717 = vmatpush1.bf16.msra.mxu0 %v4996_v2  ;;  %v631_v44 = vld [vmem:[#allocation5 + $0xf08] sm:$0xff]  ;;  %v5093_v52 = vcombine.high %v503_v39, %v507_v40  ;;  %v5092_v2 = vcombine.low %v503_v39, %v507_v40 }
 0x112   :  { %3718 = vmatprep.subr.bf16.mxu0 %v5117_v7  ;;  %v635_v45 = vld [vmem:[#allocation5 + $0xf28] sm:$0xff] }
 0x113   :  { %3790 = vmatpush1.bf16.msra.mxu1 %v5124_v6  ;;  %v5221_v55 = vcombine.high %v631_v44, %v635_v45  ;;  %v495_v56 = vld [vmem:[#allocation5 + $0xac8] sm:$0xff]  ;;  %v5220_v6 = vcombine.low %v631_v44, %v635_v45 }
 0x114   :  { %3791 = vmatprep.subr.bf16.mxu1 %v5245_v9  ;;  %v499_v57 = vld [vmem:[#allocation5 + $0xae8] sm:$0xff] }
 0x115   :  { %3719 = vmatpush2.bf16.msra.mxu0 %v5116_v15  ;;  %v623_v60 = vld [vmem:[#allocation5 + $0xec8] sm:$0xff]  ;;  %v5085_v7 = vcombine.high %v495_v56, %v499_v57  ;;  %v5084_v15 = vcombine.low %v495_v56, %v499_v57  ;;  %v208_v56 = vld [vmem:[#allocation5 + $0x1d0] sm:$0xff] }
 0x116   :  { %3720 = vmatprep.subr.bf16.mxu0 %v5109_v19  ;;  %v627_v62 = vld [vmem:[#allocation5 + $0xee8] sm:$0xff]  ;;  %v212_v57 = vld [vmem:[#allocation5 + $0x1f0] sm:$0xff] }
 0x117   :  { %3792 = vmatpush2.bf16.msra.mxu1 %v5244_v17  ;;  %v5213_v9 = vcombine.high %v623_v60, %v627_v62  ;;  %v487_v10 = vld [vmem:[#allocation5 + $0xa88] sm:$0xff]  ;;  %v5212_v17 = vcombine.low %v623_v60, %v627_v62  ;;  %v336_v60 = vld [vmem:[#allocation5 + $0x5d0] sm:$0xff] }
 0x118   :  { %3793 = vmatprep.subr.bf16.mxu1 %v5237_v22  ;;  %v491_v11 = vld [vmem:[#allocation5 + $0xaa8] sm:$0xff]  ;;  %v340_v62 = vld [vmem:[#allocation5 + $0x5f0] sm:$0xff] }
 0x119   :  { %3721 = vmatpush2.bf16.msra.mxu0 %v5108_v31  ;;  %v615_v12 = vld [vmem:[#allocation5 + $0xe88] sm:$0xff]  ;;  %v5077_v19 = vcombine.high %v487_v10, %v491_v11  ;;  %v5076_v31 = vcombine.low %v487_v10, %v491_v11  ;;  %v200_v10 = vld [vmem:[#allocation5 + $0x190] sm:$0xff] }
 0x11a   :  { %3722 = vmatprep.subr.bf16.mxu0 %v5101_v36  ;;  %v619_v13 = vld [vmem:[#allocation5 + $0xea8] sm:$0xff]  ;;  %v204_v11 = vld [vmem:[#allocation5 + $0x1b0] sm:$0xff] }
 0x11b   :  { %3794 = vmatpush2.bf16.msra.mxu1 %v5236_v32  ;;  %v5205_v22 = vcombine.high %v615_v12, %v619_v13  ;;  %v479_v24 = vld [vmem:[#allocation5 + $0xa48] sm:$0xff]  ;;  %v5204_v32 = vcombine.low %v615_v12, %v619_v13  ;;  %v328_v12 = vld [vmem:[#allocation5 + $0x590] sm:$0xff] }
 0x11c   :  { %3795 = vmatprep.subr.bf16.mxu1 %v5229_v38  ;;  %v483_v27 = vld [vmem:[#allocation5 + $0xa68] sm:$0xff]  ;;  %v332_v13 = vld [vmem:[#allocation5 + $0x5b0] sm:$0xff] }
 0x11d   :  { %3723 = vmatpush2.bf16.msra.mxu0 %v5100_v46  ;;  %v607_v28 = vld [vmem:[#allocation5 + $0xe48] sm:$0xff]  ;;  %v5069_v36 = vcombine.high %v479_v24, %v483_v27  ;;  %v5068_v46 = vcombine.low %v479_v24, %v483_v27  ;;  %v192_v24 = vld [vmem:[#allocation5 + $0x150] sm:$0xff] }
 0x11e   :  { %3724 = vmatprep.subr.bf16.mxu0 %v5093_v52  ;;  %v611_v29 = vld [vmem:[#allocation5 + $0xe68] sm:$0xff]  ;;  %v196_v27 = vld [vmem:[#allocation5 + $0x170] sm:$0xff] }
 0x11f   :  { %3796 = vmatpush2.bf16.msra.mxu1 %v5228_v51  ;;  %v5197_v38 = vcombine.high %v607_v28, %v611_v29  ;;  %v471_v39 = vld [vmem:[#allocation5 + $0xa08] sm:$0xff]  ;;  %v5196_v51 = vcombine.low %v607_v28, %v611_v29  ;;  %v320_v28 = vld [vmem:[#allocation5 + $0x550] sm:$0xff] }
 0x120   :  { %3797 = vmatprep.subr.bf16.mxu1 %v5221_v55  ;;  %v475_v40 = vld [vmem:[#allocation5 + $0xa28] sm:$0xff]  ;;  %v324_v29 = vld [vmem:[#allocation5 + $0x570] sm:$0xff] }
 0x121   :  { %3725 = vmatpush2.bf16.msra.mxu0 %v5092_v2  ;;  %v599_v44 = vld [vmem:[#allocation5 + $0xe08] sm:$0xff]  ;;  %v5061_v52 = vcombine.high %v471_v39, %v475_v40  ;;  %v5060_v2 = vcombine.low %v471_v39, %v475_v40  ;;  %v184_v39 = vld [vmem:[#allocation5 + $0x110] sm:$0xff] }
 0x122   :  { %3726 = vmatprep.subr.bf16.mxu0 %v5085_v7  ;;  %v603_v45 = vld [vmem:[#allocation5 + $0xe28] sm:$0xff]  ;;  %v4799_v7 = vcombine.high %v208_v56, %v212_v57  ;;  %v188_v40 = vld [vmem:[#allocation5 + $0x130] sm:$0xff] }
 0x123   :  { %3798 = vmatpush2.bf16.msra.mxu1 %v5220_v6  ;;  %v5189_v55 = vcombine.high %v599_v44, %v603_v45  ;;  %v5188_v6 = vcombine.low %v599_v44, %v603_v45  ;;  %v312_v45 = vld [vmem:[#allocation5 + $0x510] sm:$0xff] }
 0x124   :  { %3799 = vmatprep.subr.bf16.mxu1 %v5213_v9  ;;  %v4927_v9 = vcombine.high %v336_v60, %v340_v62 }
 0x125   :  { %3727 = vmatpush2.bf16.msra.mxu0 %v5084_v15  ;;  %v4798_v15 = vcombine.low %v208_v56, %v212_v57  ;;  %v4775_v56 = vcombine.high %v184_v39, %v188_v40 }
 0x126   :  { %3728 = vmatprep.subr.bf16.mxu0 %v5077_v19  ;;  %v4791_v19 = vcombine.high %v200_v10, %v204_v11 }
 0x127   :  { %3800 = vmatpush2.bf16.msra.mxu1 %v5212_v17  ;;  %v4926_v17 = vcombine.low %v336_v60, %v340_v62  ;;  %v176_v60 = vld [vmem:[#allocation5 + $0xd0] sm:$0xff] }
 0x128   :  { %3801 = vmatprep.subr.bf16.mxu1 %v5205_v22  ;;  %v4919_v22 = vcombine.high %v328_v12, %v332_v13  ;;  %v180_v62 = vld [vmem:[#allocation5 + $0xf0] sm:$0xff] }
 0x129   :  { %3729 = vmatpush2.bf16.msra.mxu0 %v5076_v31  ;;  %v4790_v31 = vcombine.low %v200_v10, %v204_v11  ;;  %v4774_v10 = vcombine.low %v184_v39, %v188_v40  ;;  %v288_v40 = vld [vmem:[#allocation5 + $0x450] sm:$0xff] }
 0x12a   :  { %3730 = vmatprep.subr.bf16.mxu0 %v5069_v36  ;;  %v4783_v36 = vcombine.high %v192_v24, %v196_v27 }
 0x12b   :  { %3802 = vmatpush2.bf16.msra.mxu1 %v5204_v32  ;;  %v4918_v32 = vcombine.low %v328_v12, %v332_v13  ;;  %v4767_v12 = vcombine.high %v176_v60, %v180_v62 }
 0x12c   :  { %3803 = vmatprep.subr.bf16.mxu1 %v5197_v38  ;;  %v4911_v38 = vcombine.high %v320_v28, %v324_v29 }
 0x12d   :  { %3731 = vmatpush2.bf16.msra.mxu0 %v5068_v46  ;;  %v316_v46 = vld [vmem:[#allocation5 + $0x530] sm:$0xff] }
 0x12e   :  { %3732 = vmatprep.subr.bf16.mxu0 %v5061_v52  ;;  %v4782_v52 = vcombine.low %v192_v24, %v196_v27  ;;  %v4903_v57 = vcombine.high %v312_v45, %v316_v46  ;;  %v4902_v11 = vcombine.low %v312_v45, %v316_v46  ;;  %v300_v24 = vld [vmem:[#allocation5 + $0x4b0] sm:$0xff] }
 0x12f   :  { %3804 = vmatpush2.bf16.msra.mxu1 %v5196_v51  ;;  %v5698_v51 = vpop.f32.mrf.mxu1  ;;  %v292_v45 = vld [vmem:[#allocation5 + $0x470] sm:$0xff] }
 0x130   :  { %3805 = vmatprep.subr.bf16.mxu1 %v5189_v55  ;;  %v5695_v44 = vpop.f32.mrf.mxu0  ;;  %v4910_v55 = vcombine.low %v320_v28, %v324_v29  ;;  %v4766_v28 = vcombine.low %v176_v60, %v180_v62  ;;  %v4879_v60 = vcombine.high %v288_v40, %v292_v45  ;;  %v152_v62 = vld [vmem:[#allocation5 + $0x10] sm:$0xff] }
 0x131   :  { %3733 = vmatpush2.bf16.msra.mxu0 %v5060_v2 }
 0x132   :  { %3848 = vmatprep.subr.bf16.mxu0 %v4799_v7  ;;  %v5700_v2 = vpop.f32.mrf.mxu0  ;;  %v308_v7 = vld [vmem:[#allocation5 + $0x4f0] sm:$0xff] }
 0x133   :  { %3806 = vmatpush2.bf16.msra.mxu1 %v5188_v6  ;;  %v304_v6 = vld [vmem:[#allocation5 + $0x4d0] sm:$0xff] }
 0x134   :  { %3921 = vmatprep.subr.bf16.mxu1 %v4927_v9  ;;  %3735 = vmatmul.mubr.bf16.vlgmr.msra.gmra.mxu0 %v5632_v43  ;;  %v5703_v9 = vpop.f32.mrf.mxu1  ;;  %v4895_v13 = vcombine.high %v304_v6, %v308_v7  ;;  %v4894_v29 = vcombine.low %v304_v6, %v308_v7  ;;  %v156_v6 = vld [vmem:[#allocation5 + $0x30] sm:$0xff] }
 0x135   :  { %3849 = vmatpush1.bf16.msra.mxu0 %v4798_v15  ;;  %3744 = vmatprep.mubr.bf16.mxu0 %v5636_v59  ;;  %v168_v15 = vld [vmem:[#allocation5 + $0x90] sm:$0xff] }
 0x136   :  { %3808 = vmatmul.mubr.bf16.vlgmr.msra.gmra.mxu1 %v5634_v47  ;;  %3850 = vmatprep.subr.bf16.mxu0 %v4791_v19  ;;  %v5707_v19 = vpop.f32.mrf.mxu0  ;;  %v5710_v27 = vpop.f32.mrf.mxu1  ;;  %v356_v59 = vld [vmem:[#allocation5 + $0x670] sm:$0xff] }
 0x137   :  { %3922 = vmatpush1.bf16.msra.mxu1 %v4926_v17  ;;  %3817 = vmatprep.mubr.bf16.mxu1 %v5639_v4  ;;  %v172_v17 = vld [vmem:[#allocation5 + $0xb0] sm:$0xff] }
 0x138   :  { %3923 = vmatprep.subr.bf16.mxu1 %v4919_v22  ;;  %v296_v22 = vld [vmem:[#allocation5 + $0x490] sm:$0xff]  ;;  %v5712_v39 = vpop.f32.mrf.mxu0  ;;  %v5715_v46 = vpop.f32.mrf.mxu1 }
 0x139   :  { %3851 = vmatpush1.bf16.msra.mxu0 %v4790_v31  ;;  %v4759_v31 = vcombine.high %v168_v15, %v172_v17  ;;  %v352_v4 = vld [vmem:[#allocation5 + $0x650] sm:$0xff] }
 0x13a   :  { %3852 = vmatprep.subr.bf16.mxu0 %v4783_v36  ;;  %v160_v36 = vld [vmem:[#allocation5 + $0x50] sm:$0xff]  ;;  %v5721_v7 = vpop.f32.mrf.mxu1 }
 0x13b   :  { %3924 = vmatpush1.bf16.msra.mxu1 %v4918_v32  ;;  %v4887_v32 = vcombine.high %v296_v22, %v300_v24  ;;  %v344_v43 = vld [vmem:[#allocation5 + $0x610] sm:$0xff] }
 0x13c   :  { %3925 = vmatprep.subr.bf16.mxu1 %v4911_v38  ;;  %3745 = vmatmul.mubr.bf16.gmra.mxu0 %v5643_v18  ;;  %v164_v38 = vld [vmem:[#allocation5 + $0x70] sm:$0xff] }
 0x13d   :  { %3853 = vmatpush1.bf16.msra.mxu0 %v4782_v52  ;;  %3754 = vmatprep.mubr.bf16.mxu0 %v5648_v35  ;;  %v4758_v52 = vcombine.low %v168_v15, %v172_v17  ;;  %v4743_v15 = vcombine.high %v152_v62, %v156_v6  ;;  %v360_v35 = vld [vmem:[#allocation5 + $0x690] sm:$0xff] }
 0x13e   :  { %3818 = vmatmul.mubr.bf16.gmra.mxu1 %v5646_v26  ;;  %3854 = vmatprep.subr.bf16.mxu0 %v4775_v56  ;;  %v4751_v56 = vcombine.high %v160_v36, %v164_v38  ;;  %v364_v26 = vld [vmem:[#allocation5 + $0x6b0] sm:$0xff] }
 0x13f   :  { %3926 = vmatpush1.bf16.msra.mxu1 %v4910_v55  ;;  %3827 = vmatprep.mubr.bf16.mxu1 %v5651_v41  ;;  %v4886_v55 = vcombine.low %v296_v22, %v300_v24  ;;  %v272_v24 = vld [vmem:[#allocation5 + $0x3d0] sm:$0xff] }
 0x140   :  { %3927 = vmatprep.subr.bf16.mxu1 %v4903_v57  ;;  %v5718_v57 = vpop.f32.mrf.mxu0 }
 0x141   :  { %3855 = vmatpush1.bf16.msra.mxu0 %v4774_v10  ;;  %v280_v10 = vld [vmem:[#allocation5 + $0x410] sm:$0xff] }
 0x142   :  { %3856 = vmatprep.subr.bf16.mxu0 %v4767_v12  ;;  %v4750_v12 = vcombine.low %v160_v36, %v164_v38  ;;  %v5724_v17 = vpop.f32.mrf.mxu0  ;;  %v4742_v36 = vcombine.low %v152_v62, %v156_v6 }
 0x143   :  { %3928 = vmatpush1.bf16.msra.mxu1 %v4902_v11  ;;  %v284_v11 = vld [vmem:[#allocation5 + $0x430] sm:$0xff] }
 0x144   :  { %3929 = vmatprep.subr.bf16.mxu1 %v4895_v13  ;;  %3755 = vmatmul.mubr.bf16.gmra.mxu0 %v5655_v61  ;;  %v4878_v13 = vcombine.low %v288_v40, %v292_v45  ;;  %v4871_v22 = vcombine.high %v280_v10, %v284_v11  ;;  %v4870_v38 = vcombine.low %v280_v10, %v284_v11  ;;  %v5730_v45 = vpop.f32.mrf.mxu0  ;;  %v372_v61 = vld [vmem:[#allocation5 + $0x6f0] sm:$0xff] }
 0x145   :  { %3857 = vmatpush1.bf16.msra.mxu0 %v4766_v28  ;;  %3764 = vmatprep.mubr.bf16.mxu0 %v5660_v14  ;;  %v276_v28 = vld [vmem:[#allocation5 + $0x3f0] sm:$0xff] }
 0x146   :  { %3828 = vmatmul.mubr.bf16.gmra.mxu1 %v5658_v8  ;;  %3858 = vmatprep.subr.bf16.mxu0 %v4759_v31  ;;  %v400_v31 = vld [vmem:[#allocation5 + $0x7d0] sm:$0xff]  ;;  %v4863_v40 = vcombine.high %v272_v24, %v276_v28  ;;  %v4862_v62 = vcombine.low %v272_v24, %v276_v28  ;;  %v5736_v11 = vpop.f32.mrf.mxu0 }
 0x147   :  { %3930 = vmatpush1.bf16.msra.mxu1 %v4894_v29  ;;  %3837 = vmatprep.mubr.bf16.mxu1 %v5663_v23  ;;  %v5726_v29 = vpop.f32.mrf.mxu1  ;;  %v396_v23 = vld [vmem:[#allocation5 + $0x7b0] sm:$0xff] }
 0x148   :  { %3931 = vmatprep.subr.bf16.mxu1 %v4887_v32  ;;  %v404_v32 = vld [vmem:[#allocation5 + $0x7f0] sm:$0xff]  ;;  %v5740_v28 = vpop.f32.mrf.mxu0 }
 0x149   :  { %3859 = vmatpush1.bf16.msra.mxu0 %v4758_v52  ;;  %v4991_v52 = vcombine.high %v400_v31, %v404_v32  ;;  %v4990_v6 = vcombine.low %v400_v31, %v404_v32  ;;  %v248_v32 = vld [vmem:[#allocation5 + $0x310] sm:$0xff] }
 0x14a   :  { %3860 = vmatprep.subr.bf16.mxu0 %v4751_v56  ;;  %v268_v56 = vld [vmem:[#allocation5 + $0x3b0] sm:$0xff] }
 0x14b   :  { %3932 = vmatpush1.bf16.msra.mxu1 %v4886_v55  ;;  %v264_v55 = vld [vmem:[#allocation5 + $0x390] sm:$0xff] }
 0x14c   :  { %3933 = vmatprep.subr.bf16.mxu1 %v4879_v60  ;;  %3765 = vmatmul.mubr.bf16.gmra.mxu0 %v5667_v42  ;;  %v5732_v60 = vpop.f32.mrf.mxu1  ;;  %v392_v42 = vld [vmem:[#allocation5 + $0x790] sm:$0xff]  ;;  %v4855_v10 = vcombine.high %v264_v55, %v268_v56  ;;  %v4854_v14 = vcombine.low %v264_v55, %v268_v56  ;;  %v5744_v56 = vpop.f32.mrf.mxu0 }
 0x14d   :  { %3861 = vmatpush1.bf16.msra.mxu0 %v4750_v12  ;;  %3880 = vmatprep.mubr.bf16.mxu0 %v5578_v58  ;;  %v4983_v12 = vcombine.high %v392_v42, %v396_v23  ;;  %v388_v58 = vld [vmem:[#allocation5 + $0x770] sm:$0xff] }
 0x14e   :  { %3838 = vmatmul.mubr.bf16.gmra.mxu1 %v5670_v49  ;;  %3862 = vmatprep.subr.bf16.mxu0 %v4743_v15  ;;  %v260_v15 = vld [vmem:[#allocation5 + $0x370] sm:$0xff] }
 0x14f   :  { %3934 = vmatpush1.bf16.msra.mxu1 %v4878_v13  ;;  %3953 = vmatprep.mubr.bf16.mxu1 %v5580_v63  ;;  %v256_v13 = vld [vmem:[#allocation5 + $0x350] sm:$0xff] }
 0x150   :  { %3935 = vmatprep.subr.bf16.mxu1 %v4871_v22  ;;  %v5738_v22 = vpop.f32.mrf.mxu1  ;;  %v384_v49 = vld [vmem:[#allocation5 + $0x750] sm:$0xff]  ;;  %v4847_v24 = vcombine.high %v256_v13, %v260_v15  ;;  %v4846_v8 = vcombine.low %v256_v13, %v260_v15  ;;  %v5748_v13 = vpop.f32.mrf.mxu0 }
 0x151   :  { %3863 = vmatpush1.bf16.msra.mxu0 %v4742_v36  ;;  %v4982_v36 = vcombine.low %v392_v42, %v396_v23  ;;  %v4975_v31 = vcombine.high %v384_v49, %v388_v58  ;;  %v380_v63 = vld [vmem:[#allocation5 + $0x730] sm:$0xff] }
 0x152   :  { %3864 = vmatprep.subr.bf16.mxu0 %v4863_v40  ;;  %v5742_v40 = vpop.f32.mrf.mxu1 }
 0x153   :  { %3936 = vmatpush1.bf16.msra.mxu1 %v4870_v38  ;;  %v252_v38 = vld [vmem:[#allocation5 + $0x330] sm:$0xff] }
 0x154   :  { %3937 = vmatprep.subr.bf16.mxu1 %v4991_v52  ;;  %v376_v52 = vld [vmem:[#allocation5 + $0x710] sm:$0xff]  ;;  %v4839_v55 = vcombine.high %v248_v32, %v252_v38  ;;  %v5746_v42 = vpop.f32.mrf.mxu1  ;;  %v4838_v41 = vcombine.low %v248_v32, %v252_v38  ;;  %v5752_v32 = vpop.f32.mrf.mxu0 }
 0x155   :  { %3865 = vmatpush2.bf16.msra.mxu0 %v4862_v62  ;;  %v4974_v62 = vcombine.low %v384_v49, %v388_v58  ;;  %v4967_v23 = vcombine.high %v376_v52, %v380_v63  ;;  %v664_v58 = vlaneseq }
 0x156   :  { %3866 = vmatprep.subr.bf16.mxu0 %v4855_v10  ;;  %v244_v10 = vld [vmem:[#allocation5 + $0x2f0] sm:$0xff] }
 0x157   :  { %3938 = vmatpush2.bf16.msra.mxu1 %v4990_v6  ;;  %v240_v6 = vld [vmem:[#allocation5 + $0x2d0] sm:$0xff]  ;;  %v5754_v38 = vshrl.u32 %v664_v58, 7 }
 0x158   :  { %3939 = vmatprep.subr.bf16.mxu1 %v4983_v12  ;;  %v368_v12 = vld [vmem:[#allocation5 + $0x6d0] sm:$0xff]  ;;  %v4831_v15 = vcombine.high %v240_v6, %v244_v10  ;;  %v4830_v18 = vcombine.low %v240_v6, %v244_v10 }
 0x159   :  { %3867 = vmatpush2.bf16.msra.mxu0 %v4854_v14  ;;  %v4966_v14 = vcombine.low %v376_v52, %v380_v63  ;;  %v4959_v49 = vcombine.high %v368_v12, %v372_v61  ;;  %6451 = vst [vmem:[#allocation32_spill] sm:$0xff] %v5754_v38  ;;  %v666_v10 = vsub.s32 0, %v5754_v38  ;;  %v220_v58 = vld [vmem:[#allocation5 + $0x230] sm:$0xff] }
 0x15a   :  { %3868 = vmatprep.subr.bf16.mxu0 %v4847_v24  ;;  %v232_v24 = vld [vmem:[#allocation5 + $0x290] sm:$0xff] }
 0x15b   :  { %3940 = vmatpush2.bf16.msra.mxu1 %v4982_v36  ;;  %v5750_v36 = vpop.f32.mrf.mxu1 }
 0x15c   :  { %3941 = vmatprep.subr.bf16.mxu1 %v4975_v31  ;;  %v236_v31 = vld [vmem:[#allocation5 + $0x2b0] sm:$0xff] }
 0x15d   :  { %3869 = vmatpush2.bf16.msra.mxu0 %v4846_v8  ;;  %v4958_v8 = vcombine.low %v368_v12, %v372_v61  ;;  %v4823_v63 = vcombine.high %v232_v24, %v236_v31  ;;  %v5756_v52 = vpop.f32.mrf.mxu1  ;;  %v4822_v47 = vcombine.low %v232_v24, %v236_v31  ;;  %v4950_v61 = vcombine.low %v360_v35, %v364_v26 }
 0x15e   :  { %3870 = vmatprep.subr.bf16.mxu0 %v4839_v55  ;;  %6452 = vst [vmem:[#allocation33_spill] sm:$0xff] %v5756_v52  ;;  %v224_v55 = vld [vmem:[#allocation5 + $0x250] sm:$0xff] }
 0x15f   :  { %3942 = vmatpush2.bf16.msra.mxu1 %v4974_v62  ;;  %v4951_v62 = vcombine.high %v360_v35, %v364_v26  ;;  %v5761_v12 = vpop.f32.mrf.mxu1  ;;  %v4942_v26 = vcombine.low %v352_v4, %v356_v59 }
 0x160   :  { %3943 = vmatprep.subr.bf16.mxu1 %v4967_v23  ;;  %v228_v23 = vld [vmem:[#allocation5 + $0x270] sm:$0xff]  ;;  %6453 = vst [vmem:[#allocation34_spill] sm:$0xff] %v5761_v12 }
 0x161   :  { %3871 = vmatpush2.bf16.msra.mxu0 %v4838_v41  ;;  %v5758_v41 = vpop.f32.mrf.mxu0  ;;  %v4815_v6 = vcombine.high %v224_v55, %v228_v23  ;;  %v4814_v24 = vcombine.low %v224_v55, %v228_v23  ;;  %v596_v12 = vld [vmem:[#allocation5 + $0xdf0] sm:$0xff] }
 0x162   :  { %3872 = vmatprep.subr.bf16.mxu0 %v4831_v15  ;;  %v216_v15 = vld [vmem:[#allocation5 + $0x210] sm:$0xff] }
 0x163   :  { %3944 = vmatpush2.bf16.msra.mxu1 %v4966_v14  ;;  %v4943_v14 = vcombine.high %v352_v4, %v356_v59  ;;  %v5764_v31 = vpop.f32.mrf.mxu0  ;;  %v4807_v35 = vcombine.high %v216_v15, %v220_v58  ;;  %v4934_v59 = vcombine.low %v344_v43, %v348_v5  ;;  %v5055_v4 = vcombine.high %v464_v1, %v468_v53 }
 0x164   :  { %3945 = vmatprep.subr.bf16.mxu1 %v4959_v49  ;;  %v662_v49 = vld [vmem:[#allocation7] sm:$0xff] }
 0x165   :  { %3873 = vmatpush2.bf16.msra.mxu0 %v4830_v18  ;;  %v670_v18 = vsub.s32 1, %v5754_v38  ;;  %v5772_v55 = vpop.f32.mrf.mxu0  ;;  %v584_v38 = vld [vmem:[#allocation5 + $0xd90] sm:$0xff] }
 0x166   :  { %3874 = vmatprep.subr.bf16.mxu0 %v4823_v63  ;;  %v5768_v63 = vpop.f32.mrf.mxu1 }
 0x167   :  { %3946 = vmatpush2.bf16.msra.mxu1 %v4958_v8  ;;  %v5766_v8 = vrot.slane %v662_v49, %v666_v10  ;;  %v5770_v52 = vrot.slane %v662_v49, %v670_v18  ;;  %v456_v10 = vld [vmem:[#allocation5 + $0x990] sm:$0xff]  ;;  %v5780_v18 = vpop.f32.mrf.mxu0 }
 0x168   :  { %3947 = vmatprep.subr.bf16.mxu1 %v4951_v62  ;;  %v4935_v62 = vcombine.high %v344_v43, %v348_v5  ;;  %v588_v49 = vld [vmem:[#allocation5 + $0xdb0] sm:$0xff]  ;;  %v5182_v5 = vcombine.low %v592_v48, %v596_v12 }
 0x169   :  { %3875 = vmatpush2.bf16.msra.mxu0 %v4822_v47  ;;  %v4806_v47 = vcombine.low %v216_v15, %v220_v58  ;;  %v3299_v23 = vadd.f32 %v5695_v44, %v5766_v8  ;;  %v3301_v15 = vadd.f32 %v5700_v2, %v5770_v52  ;;  %v5054_v58 = vcombine.low %v464_v1, %v468_v53  ;;  %v5782_v44 = vld [vmem:[#allocation5 + $0x950] sm:$0xff] }
 0x16a   :  { %3876 = vmatprep.subr.bf16.mxu0 %v4815_v6  ;;  %v5183_v6 = vcombine.high %v592_v48, %v596_v12  ;;  %v5789_v2 = vld [vmem:[#allocation5 + $0x970] sm:$0xff]  ;;  %v5174_v12 = vcombine.low %v584_v38, %v588_v49 }
 0x16b   :  { %3948 = vmatpush2.bf16.msra.mxu1 %v4950_v61  ;;  %v5776_v61 = vpop.f32.mrf.mxu1  ;;  %v5791_v53 = vld [vmem:[#allocation5 + $0xd50] sm:$0xff] }
 0x16c   :  { %3949 = vmatprep.subr.bf16.mxu1 %v4943_v14  ;;  %v460_v14 = vld [vmem:[#allocation5 + $0x9b0] sm:$0xff] }
 0x16d   :  { %3877 = vmatpush2.bf16.msra.mxu0 %v4814_v24  ;;  %v5047_v43 = vcombine.high %v456_v10, %v460_v14  ;;  %v3372_v24 = vadd.f32 %v5698_v51, %v3299_v23  ;;  %v5793_v1 = vld [vmem:[#allocation5 + $0xd70] sm:$0xff]  ;;  %v5046_v48 = vcombine.low %v456_v10, %v460_v14  ;;  %v3374_v51 = vadd.f32 %v5703_v9, %v3301_v15 }
 0x16e   :  { %3878 = vmatprep.subr.bf16.mxu0 %v4807_v35  ;;  %v5787_v35 = vpop.f32.mrf.mxu1  ;;  %v3309_v23 = vadd.f32 %v5718_v57, %v5766_v8  ;;  %v5039_v10 = vcombine.high %v5782_v44, %v5789_v2  ;;  %v5167_v9 = vcombine.high %v5791_v53, %v5793_v1  ;;  %v5811_v57 = vld [vmem:[#allocation5 + $0xd10] sm:$0xff] }
 0x16f   :  { %3950 = vmatpush2.bf16.msra.mxu1 %v4942_v26  ;;  %v3303_v26 = vadd.f32 %v5707_v19, %v5766_v8  ;;  %v3305_v19 = vadd.f32 %v5712_v39, %v5770_v52 }
 0x170   :  { %3951 = vmatprep.subr.bf16.mxu1 %v4935_v62  ;;  %v5175_v62 = vcombine.high %v584_v38, %v588_v49  ;;  %v5806_v38 = vld [vmem:[#allocation5 + $0x910] sm:$0xff] }
 0x171   :  { %3879 = vmatpush2.bf16.msra.mxu0 %v4806_v47  ;;  %v3376_v39 = vadd.f32 %v5710_v27, %v3303_v26  ;;  %v3378_v27 = vadd.f32 %v5715_v46, %v3305_v19  ;;  %v5829_v46 = vld [vmem:[#allocation5 + $0x8d0] sm:$0xff] }
 0x172   :  { %3994 = vmatprep.subr.bf16.mxu0 %v5055_v4 }
 0x173   :  { %3952 = vmatpush2.bf16.msra.mxu1 %v4934_v59 }
 0x174   :  { %4067 = vmatprep.subr.bf16.mxu1 %v5183_v6  ;;  %v3444_v47 = vpop.f32.mrf.mxu0  ;;  %3881 = vmatmul.mubr.bf16.vlgmr.msra.gmra.mxu0 %v5584_v21 }
 0x175   :  { %v3445_v59 = vadd.f32 %v3444_v47, %v3372_v24  ;;  %3995 = vmatpush1.bf16.msra.mxu0 %v5054_v58  ;;  %v5809_v58 = vld [vmem:[#allocation5 + $0x930] sm:$0xff]  ;;  %3890 = vmatprep.mubr.bf16.mxu0 %v5588_v34  ;;  %v5038_v47 = vcombine.low %v5782_v44, %v5789_v2 }
 0x176   :  { %v3517_v4 = vpop.f32.mrf.mxu1  ;;  %3954 = vmatmul.mubr.bf16.vlgmr.msra.gmra.mxu1 %v5586_v25  ;;  %v3446_v6 = vpop.f32.mrf.mxu0  ;;  %3996 = vmatprep.subr.bf16.mxu0 %v5047_v43  ;;  %v3311_v43 = vadd.f32 %v5724_v17, %v5770_v52  ;;  %v5031_v44 = vcombine.high %v5806_v38, %v5809_v58 }
 0x177   :  { %4068 = vmatpush1.bf16.msra.mxu1 %v5182_v5  ;;  %v3518_v14 = vadd.f32 %v3517_v4, %v3445_v59  ;;  %v3447_v49 = vadd.f32 %v3446_v6, %v3374_v51  ;;  %v5813_v5 = vld [vmem:[#allocation5 + $0xd30] sm:$0xff]  ;;  %3963 = vmatprep.mubr.bf16.mxu1 %v5591_v37  ;;  %v5166_v59 = vcombine.low %v5791_v53, %v5793_v1 }
 0x178   :  { %v3519_v15 = vpop.f32.mrf.mxu1  ;;  %4069 = vmatprep.subr.bf16.mxu1 %v5175_v62  ;;  %v3448_v24 = vpop.f32.mrf.mxu0  ;;  %v3382_v4 = vadd.f32 %v5721_v7, %v3309_v23  ;;  %v5159_v2 = vcombine.high %v5811_v57, %v5813_v5  ;;  %v5833_v7 = vld [vmem:[#allocation5 + $0x8f0] sm:$0xff]  ;;  %v3384_v6 = vadd.f32 %v5726_v29, %v3311_v43  ;;  %v3319_v29 = vadd.f32 %v5740_v28, %v5766_v8 }
 0x179   :  { %v3520_v26 = vadd.f32 %v3519_v15, %v3447_v49  ;;  %v3449_v62 = vadd.f32 %v3448_v24, %v3376_v39  ;;  %3997 = vmatpush1.bf16.msra.mxu0 %v5046_v48  ;;  %5322 = vtanh.f32 %v3518_v14  ;;  %v3313_v48 = vadd.f32 %v5730_v45, %v5766_v8  ;;  %v5837_v23 = vld [vmem:[#allocation5 + $0xcf0] sm:$0xff] }
 0x17a   :  { %v3521_v51 = vpop.f32.mrf.mxu1  ;;  %v3450_v17 = vpop.f32.mrf.mxu0  ;;  %3998 = vmatprep.subr.bf16.mxu0 %v5039_v10  ;;  %v5030_v39 = vcombine.low %v5806_v38, %v5809_v58  ;;  %v5158_v45 = vcombine.low %v5811_v57, %v5813_v5  ;;  %v5023_v58 = vcombine.high %v5829_v46, %v5833_v7  ;;  %v5857_v28 = vld [vmem:[#allocation5 + $0x8b0] sm:$0xff] }
 0x17b   :  { %4070 = vmatpush1.bf16.msra.mxu1 %v5174_v12  ;;  %5324 = vtanh.f32 %v3520_v26  ;;  %v3522_v19 = vadd.f32 %v3521_v51, %v3449_v62  ;;  %v3451_v53 = vadd.f32 %v3450_v17, %v3378_v27  ;;  %v5835_v12 = vld [vmem:[#allocation5 + $0xcd0] sm:$0xff]  ;;  %v3386_v5 = vadd.f32 %v5732_v60, %v3313_v48 }
 0x17c   :  { %v3523_v1 = vpop.f32.mrf.mxu1  ;;  %4071 = vmatprep.subr.bf16.mxu1 %v5167_v9  ;;  %v3454_v10 = vpop.f32.mrf.mxu0  ;;  %3891 = vmatmul.mubr.bf16.gmra.mxu0 %v5595_v50  ;;  %v3315_v9 = vadd.f32 %v5736_v11, %v5770_v52  ;;  %v5151_v57 = vcombine.high %v5835_v12, %v5837_v23  ;;  %v5854_v11 = vld [vmem:[#allocation5 + $0x890] sm:$0xff]  ;;  %v3321_v62 = vadd.f32 %v5744_v56, %v5770_v52 }
 0x17d   :  { %v3524_v14 = vadd.f32 %v3523_v1, %v3451_v53  ;;  %v3455_v49 = vadd.f32 %v3454_v10, %v3382_v4  ;;  %3999 = vmatpush1.bf16.msra.mxu0 %v5038_v47  ;;  %5326 = vtanh.f32 %v3522_v19  ;;  %v5859_v27 = vld [vmem:[#allocation5 + $0xc90] sm:$0xff]  ;;  %3900 = vmatprep.mubr.bf16.mxu0 %v5600_v0  ;;  %v5022_v60 = vcombine.low %v5829_v46, %v5833_v7 }
 0x17e   :  { %v3527_v15 = vpop.f32.mrf.mxu1  ;;  %3964 = vmatmul.mubr.bf16.gmra.mxu1 %v5598_v54  ;;  %v3456_v38 = vpop.f32.mrf.mxu0  ;;  %4000 = vmatprep.subr.bf16.mxu0 %v5031_v44  ;;  %v5861_v26 = vld [vmem:[#allocation5 + $0xcb0] sm:$0xff]  ;;  %v3392_v48 = vadd.f32 %v5742_v40, %v3319_v29  ;;  %v5015_v46 = vcombine.high %v5854_v11, %v5857_v28  ;;  %v3323_v53 = vadd.f32 %v5748_v13, %v5766_v8 }
 0x17f   :  { %4072 = vmatpush1.bf16.msra.mxu1 %v5166_v59  ;;  %5328 = vtanh.f32 %v3524_v14  ;;  %v3457_v43 = vadd.f32 %v3456_v38, %v3384_v6  ;;  %v3528_v24 = vadd.f32 %v3527_v15, %v3455_v49  ;;  %3973 = vmatprep.mubr.bf16.mxu1 %v5603_v3  ;;  %v3388_v59 = vadd.f32 %v5738_v22, %v3315_v9  ;;  %v5877_v22 = vld [vmem:[#allocation5 + $0x850] sm:$0xff] }
 0x180   :  { %v3529_v47 = vpop.f32.mrf.mxu1  ;;  %4073 = vmatprep.subr.bf16.mxu1 %v5159_v2  ;;  %v3458_v51 = vpop.f32.mrf.mxu0  ;;  %v5150_v2 = vcombine.low %v5835_v12, %v5837_v23  ;;  %v5143_v19 = vcombine.high %v5859_v27, %v5861_v26  ;;  %v5881_v40 = vld [vmem:[#allocation5 + $0x870] sm:$0xff]  ;;  %v3394_v10 = vadd.f32 %v5746_v42, %v3321_v62  ;;  %v5142_v13 = vcombine.low %v5859_v27, %v5861_v26 }
 0x181   :  { %v3459_v4 = vadd.f32 %v3458_v51, %v3386_v5  ;;  %v3530_v17 = vadd.f32 %v3529_v47, %v3457_v43  ;;  %4001 = vmatpush1.bf16.msra.mxu0 %v5030_v39  ;;  %5330 = vtanh.f32 %v3528_v24  ;;  %v5883_v23 = vld [vmem:[#allocation5 + $0xc50] sm:$0xff]  ;;  %v3325_v9 = vadd.f32 %v5752_v32, %v5770_v52 }
 0x182   :  { %v3531_v44 = vpop.f32.mrf.mxu1  ;;  %v3460_v56 = vpop.f32.mrf.mxu0  ;;  %4002 = vmatprep.subr.bf16.mxu0 %v5023_v58  ;;  %v5885_v6 = vld [vmem:[#allocation5 + $0xc70] sm:$0xff]  ;;  %v3329_v42 = vadd.f32 %v5758_v41, %v5766_v8  ;;  %v5007_v38 = vcombine.high %v5877_v22, %v5881_v40  ;;  %v3331_v26 = vadd.f32 %v5764_v31, %v5770_v52 }
 0x183   :  { %4074 = vmatpush1.bf16.msra.mxu1 %v5158_v45  ;;  %5332 = vtanh.f32 %v3530_v17  ;;  %v3461_v1 = vadd.f32 %v3460_v56, %v3388_v59  ;;  %v3532_v7 = vadd.f32 %v3531_v44, %v3459_v4  ;;  %v5014_v45 = vcombine.low %v5854_v11, %v5857_v28  ;;  %v5902_v32 = vld [vmem:[#allocation5 + $0x810] sm:$0xff] }
 0x184   :  { %v3533_v12 = vpop.f32.mrf.mxu1  ;;  %4075 = vmatprep.subr.bf16.mxu1 %v5151_v57  ;;  %v3464_v39 = vpop.f32.mrf.mxu0  ;;  %3901 = vmatmul.mubr.bf16.gmra.mxu0 %v5607_v16  ;;  %v5135_v58 = vcombine.high %v5883_v23, %v5885_v6  ;;  %v3396_v11 = vadd.f32 %v5750_v36, %v3323_v53  ;;  %v5905_v41 = vld [vmem:[#allocation5 + $0x830] sm:$0xff]  ;;  %v5006_v36 = vcombine.low %v5877_v22, %v5881_v40 }
 0x185   :  { %v3465_v14 = vadd.f32 %v3464_v39, %v3392_v48  ;;  %v3534_v49 = vadd.f32 %v3533_v12, %v3461_v1  ;;  %4003 = vmatpush1.bf16.msra.mxu0 %v5022_v60  ;;  %5334 = vtanh.f32 %v3532_v7  ;;  %v5907_v47 = vld [vmem:[#allocation5 + $0xc10] sm:$0xff]  ;;  %3910 = vmatprep.mubr.bf16.mxu0 %v5612_v30  ;;  %v5134_v51 = vcombine.low %v5883_v23, %v5885_v6  ;;  %v6455_v48 = vld [vmem:[#allocation34_spill] sm:$0xff] }
 0x186   :  { %v3537_v15 = vpop.f32.mrf.mxu1  ;;  %3974 = vmatmul.mubr.bf16.gmra.mxu1 %v5610_v20  ;;  %v3466_v29 = vpop.f32.mrf.mxu0  ;;  %4004 = vmatprep.subr.bf16.mxu0 %v5015_v46  ;;  %v5909_v28 = vld [vmem:[#allocation5 + $0xc30] sm:$0xff]  ;;  %v3402_v56 = vadd.f32 %v6455_v48, %v3329_v42  ;;  %v4999_v46 = vcombine.high %v5902_v32, %v5905_v41  ;;  %v3333_v1 = vadd.f32 %v5772_v55, %v5766_v8  ;;  %v6456_v55 = vld [vmem:[#allocation14_spill] sm:$0xff] }
 0x187   :  { %4076 = vmatpush1.bf16.msra.mxu1 %v5150_v2  ;;  %v5323_v57 = vpop.eup %5322  ;;  %5336 = vtanh.f32 %v3534_v49  ;;  %v3467_v5 = vadd.f32 %v3466_v29, %v3394_v10  ;;  %v3538_v43 = vadd.f32 %v3537_v15, %v3465_v14  ;;  %3983 = vmatprep.mubr.bf16.mxu1 %v5615_v33  ;;  %v6454_v60 = vld [vmem:[#allocation33_spill] sm:$0xff]  ;;  %v4998_v8 = vcombine.low %v5902_v32, %v5905_v41  ;;  %v6457_v29 = vld [vmem:[#allocation15_spill] sm:$0xff]  ;;  %v6458_v41 = vld [vmem:[#allocation16_spill] sm:$0xff] }
 0x188   :  { %v3539_v24 = vpop.f32.mrf.mxu1  ;;  %4077 = vmatprep.subr.bf16.mxu1 %v5143_v19  ;;  %v5325_v27 = vpop.eup %5324  ;;  %v3398_v59 = vadd.f32 %v6454_v60, %v3325_v9  ;;  %v5127_v19 = vcombine.high %v5907_v47, %v5909_v28  ;;  %v5925_v22 = vld [vmem:[#allocation5 + $0xbd0] sm:$0xff]  ;;  %v3406_v32 = vadd.f32 %v5776_v61, %v3333_v1 }
 0x189   :  { %v3468_v62 = vpop.f32.mrf.mxu0  ;;  %v5282_v4 = vpack.c.bf16 %v5325_v27, %v5323_v57  ;;  %v3540_v44 = vadd.f32 %v3539_v24, %v3467_v5  ;;  %4005 = vmatpush1.bf16.msra.mxu0 %v5014_v45  ;;  %5338 = vtanh.f32 %v3538_v43  ;;  %v5929_v23 = vld [vmem:[#allocation5 + $0xbf0] sm:$0xff]  ;;  %v3404_v45 = vadd.f32 %v5768_v63, %v3331_v26 }
 0x18a   :  { %v3469_v17 = vadd.f32 %v3468_v62, %v3396_v11  ;;  %v3541_v2 = vpop.f32.mrf.mxu1  ;;  %4006 = vmatprep.subr.bf16.mxu0 %v5007_v38  ;;  %v5327_v53 = vpop.eup %5326  ;;  %v5931_v6 = vld [vmem:[#allocation5 + $0xfd0] sm:$0xff]  ;;  %v5119_v63 = vcombine.high %v5925_v22, %v5929_v23  ;;  %v5118_v27 = vcombine.low %v5925_v22, %v5929_v23 }
 0x18b   :  { %4078 = vmatpush1.bf16.msra.mxu1 %v5142_v13  ;;  %v3470_v31 = vpop.f32.mrf.mxu0  ;;  %4688 = vst [vmem:[#allocation8] sm:$0xff] %v5282_v4  ;;  %5340 = vtanh.f32 %v3540_v44  ;;  %v5933_v10 = vld [vmem:[#allocation5 + $0xff0] sm:$0xff]  ;;  %v3335_v13 = vadd.f32 %v5780_v18, %v5770_v52  ;;  %v5126_v52 = vcombine.low %v5907_v47, %v5909_v28 }
 0x18c   :  { %v3471_v7 = vadd.f32 %v3470_v31, %v3398_v59  ;;  %v3542_v12 = vadd.f32 %v3541_v2, %v3469_v17  ;;  %v3543_v40 = vpop.f32.mrf.mxu1  ;;  %4079 = vmatprep.subr.bf16.mxu1 %v5135_v58  ;;  %v5329_v39 = vpop.eup %5328  ;;  %3911 = vmatmul.mubr.bf16.gmra.mxu0 %v6456_v55  ;;  %v5247_v18 = vcombine.high %v5931_v6, %v5933_v10  ;;  %v520_v43 = vld [vmem:[#allocation5 + $0xb90] sm:$0xff]  ;;  %v457_v55 = vld [vmem:[#allocation5 + $0x998] sm:$0xff] }
 0x18d   :  { %v3474_v9 = vpop.f32.mrf.mxu0  ;;  %v5286_v14 = vpack.c.bf16 %v5329_v39, %v5327_v53  ;;  %4007 = vmatpush1.bf16.msra.mxu0 %v5006_v36  ;;  %v524_v24 = vld [vmem:[#allocation5 + $0xbb0] sm:$0xff]  ;;  %4026 = vmatprep.mubr.bf16.mxu0 %v6458_v41  ;;  %v3408_v61 = vadd.f32 %v5787_v35, %v3335_v13  ;;  %v5246_v44 = vcombine.low %v5931_v6, %v5933_v10  ;;  %v465_v41 = vld [vmem:[#allocation5 + $0x9d8] sm:$0xff] }
 0x18e   :  { %v3475_v49 = vadd.f32 %v3474_v9, %v3402_v56  ;;  %v3544_v15 = vadd.f32 %v3543_v40, %v3471_v7  ;;  %v3547_v42 = vpop.f32.mrf.mxu1  ;;  %3984 = vmatmul.mubr.bf16.gmra.mxu1 %v6457_v29  ;;  %5342 = vtanh.f32 %v3542_v12  ;;  %4008 = vmatprep.subr.bf16.mxu0 %v4999_v46  ;;  %v5331_v58 = vpop.eup %5330  ;;  %v648_v26 = vld [vmem:[#allocation5 + $0xf90] sm:$0xff]  ;;  %v5111_v2 = vcombine.high %v520_v43, %v524_v24  ;;  %v469_v29 = vld [vmem:[#allocation5 + $0x9f8] sm:$0xff] }
 0x18f   :  { %4080 = vmatpush1.bf16.msra.mxu1 %v5134_v51  ;;  %v3476_v38 = vpop.f32.mrf.mxu0  ;;  %4692 = vst [vmem:[#allocation8 + $0x20] sm:$0xff] %v5286_v14  ;;  %v652_v62 = vld [vmem:[#allocation5 + $0xfb0] sm:$0xff]  ;;  %v5110_v23 = vcombine.low %v520_v43, %v524_v24 }
 0x190   :  { %5344 = vtanh.f32 %v3544_v15  ;;  %v3477_v57 = vadd.f32 %v3476_v38, %v3404_v45  ;;  %v3548_v11 = vadd.f32 %v3547_v42, %v3475_v49  ;;  %v3549_v5 = vpop.f32.mrf.mxu1  ;;  %4081 = vmatprep.subr.bf16.mxu1 %v5127_v19  ;;  %v5333_v47 = vpop.eup %5332  ;;  %v6459_v36 = vld [vmem:[#allocation17_spill] sm:$0xff]  ;;  %v5239_v35 = vcombine.high %v648_v26, %v652_v62 }
 0x191   :  { %v3478_v28 = vpop.f32.mrf.mxu0  ;;  %4099 = vmatprep.mubr.bf16.mxu1 %v6459_v36  ;;  %v5290_v51 = vpack.c.bf16 %v5333_v47, %v5331_v58  ;;  %4009 = vmatpush1.bf16.msra.mxu0 %v4998_v8  ;;  %v512_v19 = vld [vmem:[#allocation5 + $0xb50] sm:$0xff]  ;;  %v5238_v6 = vcombine.low %v648_v26, %v652_v62 }
 0x192   :  { %v3479_v60 = vadd.f32 %v3478_v28, %v3406_v32  ;;  %v3550_v59 = vadd.f32 %v3549_v5, %v3477_v57  ;;  %v3551_v4 = vpop.f32.mrf.mxu1  ;;  %5346 = vtanh.f32 %v3548_v11  ;;  %4010 = vmatprep.subr.bf16.mxu0 %v5119_v63  ;;  %v5335_v48 = vpop.eup %5334  ;;  %v516_v22 = vld [vmem:[#allocation5 + $0xb70] sm:$0xff] }
 0x193   :  { %4082 = vmatpush1.bf16.msra.mxu1 %v5126_v52  ;;  %v3480_v17 = vpop.f32.mrf.mxu0  ;;  %4696 = vst [vmem:[#allocation8 + $0x40] sm:$0xff] %v5290_v51  ;;  %v640_v1 = vld [vmem:[#allocation5 + $0xf50] sm:$0xff]  ;;  %v5103_v10 = vcombine.high %v512_v19, %v516_v22  ;;  %v5102_v42 = vcombine.low %v512_v19, %v516_v22 }
 0x194   :  { %5348 = vtanh.f32 %v3550_v59  ;;  %v3481_v56 = vadd.f32 %v3480_v17, %v3408_v61  ;;  %v3552_v31 = vadd.f32 %v3551_v4, %v3479_v60  ;;  %v3553_v46 = vpop.f32.mrf.mxu1  ;;  %4083 = vmatprep.subr.bf16.mxu1 %v5247_v18  ;;  %v5337_v53 = vpop.eup %5336  ;;  %v644_v7 = vld [vmem:[#allocation5 + $0xf70] sm:$0xff] }
 0x195   :  { %v5294_v12 = vpack.c.bf16 %v5337_v53, %v5335_v48  ;;  %4011 = vmatpush2.bf16.msra.mxu0 %v5118_v27  ;;  %v5231_v45 = vcombine.high %v640_v1, %v644_v7  ;;  %v504_v13 = vld [vmem:[#allocation5 + $0xb10] sm:$0xff]  ;;  %v5230_v38 = vcombine.low %v640_v1, %v644_v7 }
 0x196   :  { %v3554_v40 = vadd.f32 %v3553_v46, %v3481_v56  ;;  %5350 = vtanh.f32 %v3552_v31  ;;  %4012 = vmatprep.subr.bf16.mxu0 %v5111_v2  ;;  %v5339_v39 = vpop.eup %5338  ;;  %v508_v9 = vld [vmem:[#allocation5 + $0xb30] sm:$0xff] }
 0x197   :  { %4084 = vmatpush2.bf16.msra.mxu1 %v5246_v44  ;;  %4700 = vst [vmem:[#allocation8 + $0x60] sm:$0xff] %v5294_v12  ;;  %v632_v14 = vld [vmem:[#allocation5 + $0xf10] sm:$0xff]  ;;  %v5095_v52 = vcombine.high %v504_v13, %v508_v9  ;;  %v5094_v24 = vcombine.low %v504_v13, %v508_v9 }
 0x198   :  { %5352 = vtanh.f32 %v3554_v40  ;;  %4085 = vmatprep.subr.bf16.mxu1 %v5239_v35  ;;  %v5341_v8 = vpop.eup %5340  ;;  %v636_v49 = vld [vmem:[#allocation5 + $0xf30] sm:$0xff] }
 0x199   :  { %v5298_v15 = vpack.c.bf16 %v5341_v8, %v5339_v39  ;;  %4013 = vmatpush2.bf16.msra.mxu0 %v5110_v23  ;;  %v5223_v18 = vcombine.high %v632_v14, %v636_v49  ;;  %v496_v58 = vld [vmem:[#allocation5 + $0xad0] sm:$0xff]  ;;  %v5222_v47 = vcombine.low %v632_v14, %v636_v49  ;;  %v209_v14 = vld [vmem:[#allocation5 + $0x1d8] sm:$0xff] }
 0x19a   :  { %4014 = vmatprep.subr.bf16.mxu0 %v5103_v10  ;;  %v500_v32 = vld [vmem:[#allocation5 + $0xaf0] sm:$0xff]  ;;  %v213_v49 = vld [vmem:[#allocation5 + $0x1f8] sm:$0xff] }
 0x19b   :  { %4086 = vmatpush2.bf16.msra.mxu1 %v5238_v6  ;;  %v5343_v63 = vpop.eup %5342  ;;  %4704 = vst [vmem:[#allocation8 + $0x80] sm:$0xff] %v5298_v15  ;;  %v624_v11 = vld [vmem:[#allocation5 + $0xed0] sm:$0xff]  ;;  %v5087_v28 = vcombine.high %v496_v58, %v500_v32  ;;  %v5086_v17 = vcombine.low %v496_v58, %v500_v32  ;;  %v337_v15 = vld [vmem:[#allocation5 + $0x5d8] sm:$0xff] }
 0x19c   :  { %4087 = vmatprep.subr.bf16.mxu1 %v5231_v45  ;;  %v628_v5 = vld [vmem:[#allocation5 + $0xef0] sm:$0xff]  ;;  %v201_v58 = vld [vmem:[#allocation5 + $0x198] sm:$0xff] }
 0x19d   :  { %v5345_v57 = vpop.eup %5344  ;;  %4015 = vmatpush2.bf16.msra.mxu0 %v5102_v42  ;;  %v5215_v26 = vcombine.high %v624_v11, %v628_v5  ;;  %v488_v62 = vld [vmem:[#allocation5 + $0xa90] sm:$0xff]  ;;  %v5214_v44 = vcombine.low %v624_v11, %v628_v5  ;;  %v341_v42 = vld [vmem:[#allocation5 + $0x5f8] sm:$0xff]  ;;  %v4800_v5 = vcombine.low %v209_v14, %v213_v49 }
 0x19e   :  { %v5302_v43 = vpack.c.bf16 %v5345_v57, %v5343_v63  ;;  %4016 = vmatprep.subr.bf16.mxu0 %v5095_v52  ;;  %v492_v61 = vld [vmem:[#allocation5 + $0xab0] sm:$0xff]  ;;  %v4801_v63 = vcombine.high %v209_v14, %v213_v49  ;;  %v205_v32 = vld [vmem:[#allocation5 + $0x1b8] sm:$0xff]  ;;  %v6466_v49 = vld [vmem:[#allocation24_spill] sm:$0xff] }
 0x19f   :  { %4088 = vmatpush2.bf16.msra.mxu1 %v5230_v38  ;;  %v5347_v27 = vpop.eup %5346  ;;  %v616_v60 = vld [vmem:[#allocation5 + $0xe90] sm:$0xff]  ;;  %v5079_v2 = vcombine.high %v488_v62, %v492_v61  ;;  %v5078_v1 = vcombine.low %v488_v62, %v492_v61  ;;  %v329_v57 = vld [vmem:[#allocation5 + $0x598] sm:$0xff] }
 0x1a0   :  { %4708 = vst [vmem:[#allocation8 + $0xa0] sm:$0xff] %v5302_v43  ;;  %4089 = vmatprep.subr.bf16.mxu1 %v5223_v18  ;;  %v620_v59 = vld [vmem:[#allocation5 + $0xeb0] sm:$0xff]  ;;  %v4929_v18 = vcombine.high %v337_v15, %v341_v42  ;;  %v333_v11 = vld [vmem:[#allocation5 + $0x5b8] sm:$0xff]  ;;  %v4928_v43 = vcombine.low %v337_v15, %v341_v42 }
 0x1a1   :  { %v5349_v51 = vpop.eup %5348  ;;  %4017 = vmatpush2.bf16.msra.mxu0 %v5094_v24  ;;  %v5207_v56 = vcombine.high %v616_v60, %v620_v59  ;;  %v480_v31 = vld [vmem:[#allocation5 + $0xa50] sm:$0xff]  ;;  %v5206_v7 = vcombine.low %v616_v60, %v620_v59  ;;  %v4793_v24 = vcombine.high %v201_v58, %v205_v32  ;;  %v321_v62 = vld [vmem:[#allocation5 + $0x558] sm:$0xff]  ;;  %v4792_v60 = vcombine.low %v201_v58, %v205_v32 }
 0x1a2   :  { %v5306_v4 = vpack.c.bf16 %v5349_v51, %v5347_v27  ;;  %4018 = vmatprep.subr.bf16.mxu0 %v5087_v28  ;;  %v484_v46 = vld [vmem:[#allocation5 + $0xa70] sm:$0xff]  ;;  %v193_v28 = vld [vmem:[#allocation5 + $0x158] sm:$0xff]  ;;  %v6461_v51 = vld [vmem:[#allocation19_spill] sm:$0xff]  ;;  %v4920_v59 = vcombine.low %v329_v57, %v333_v11 }
 0x1a3   :  { %4090 = vmatpush2.bf16.msra.mxu1 %v5222_v47  ;;  %v5351_v48 = vpop.eup %5350  ;;  %v608_v19 = vld [vmem:[#allocation5 + $0xe50] sm:$0xff]  ;;  %v5071_v12 = vcombine.high %v480_v31, %v484_v46  ;;  %v5070_v45 = vcombine.low %v480_v31, %v484_v46  ;;  %v4921_v47 = vcombine.high %v329_v57, %v333_v11  ;;  %v197_v27 = vld [vmem:[#allocation5 + $0x178] sm:$0xff] }
 0x1a4   :  { %4712 = vst [vmem:[#allocation8 + $0xc0] sm:$0xff] %v5306_v4  ;;  %4091 = vmatprep.subr.bf16.mxu1 %v5215_v26  ;;  %v612_v22 = vld [vmem:[#allocation5 + $0xe70] sm:$0xff]  ;;  %v6460_v26 = vld [vmem:[#allocation18_spill] sm:$0xff]  ;;  %v4785_v4 = vcombine.high %v193_v28, %v197_v27 }
 0x1a5   :  { %v5353_v35 = vpop.eup %5352  ;;  %4019 = vmatpush2.bf16.msra.mxu0 %v5086_v17  ;;  %v5199_v40 = vcombine.high %v608_v19, %v612_v22  ;;  %v472_v23 = vld [vmem:[#allocation5 + $0xa10] sm:$0xff]  ;;  %v5198_v13 = vcombine.low %v608_v19, %v612_v22  ;;  %v325_v61 = vld [vmem:[#allocation5 + $0x578] sm:$0xff]  ;;  %v6462_v17 = vld [vmem:[#allocation20_spill] sm:$0xff]  ;;  %v4784_v22 = vcombine.low %v193_v28, %v197_v27 }
 0x1a6   :  { %v5310_v53 = vpack.c.bf16 %v5353_v35, %v5351_v48  ;;  %4020 = vmatprep.subr.bf16.mxu0 %v5079_v2  ;;  %v476_v6 = vld [vmem:[#allocation5 + $0xa30] sm:$0xff]  ;;  %v185_v2 = vld [vmem:[#allocation5 + $0x118] sm:$0xff] }
 0x1a7   :  { %4092 = vmatpush2.bf16.msra.mxu1 %v5214_v44  ;;  %v600_v10 = vld [vmem:[#allocation5 + $0xe10] sm:$0xff]  ;;  %v5063_v9 = vcombine.high %v472_v23, %v476_v6  ;;  %v5062_v38 = vcombine.low %v472_v23, %v476_v6  ;;  %v4913_v44 = vcombine.high %v321_v62, %v325_v61  ;;  %v189_v48 = vld [vmem:[#allocation5 + $0x138] sm:$0xff] }
 0x1a8   :  { %4716 = vst [vmem:[#allocation8 + $0xe0] sm:$0xff] %v5310_v53  ;;  %4093 = vmatprep.subr.bf16.mxu1 %v5207_v56  ;;  %v604_v39 = vld [vmem:[#allocation5 + $0xe30] sm:$0xff]  ;;  %v313_v46 = vld [vmem:[#allocation5 + $0x518] sm:$0xff]  ;;  %v4912_v53 = vcombine.low %v321_v62, %v325_v61 }
 0x1a9   :  { %4021 = vmatpush2.bf16.msra.mxu0 %v5078_v1  ;;  %v5191_v8 = vcombine.high %v600_v10, %v604_v39  ;;  %v5190_v52 = vcombine.low %v600_v10, %v604_v39  ;;  %v6463_v31 = vld [vmem:[#allocation21_spill] sm:$0xff]  ;;  %v317_v35 = vld [vmem:[#allocation5 + $0x538] sm:$0xff]  ;;  %v4777_v1 = vcombine.high %v185_v2, %v189_v48 }
 0x1aa   :  { %4022 = vmatprep.subr.bf16.mxu0 %v5071_v12  ;;  %v177_v12 = vld [vmem:[#allocation5 + $0xd8] sm:$0xff] }
 0x1ab   :  { %4094 = vmatpush2.bf16.msra.mxu1 %v5206_v7  ;;  %v4905_v7 = vcombine.high %v313_v46, %v317_v35  ;;  %v6464_v6 = vld [vmem:[#allocation22_spill] sm:$0xff] }
 0x1ac   :  { %4095 = vmatprep.subr.bf16.mxu1 %v5199_v40  ;;  %v181_v40 = vld [vmem:[#allocation5 + $0xf8] sm:$0xff] }
 0x1ad   :  { %4023 = vmatpush2.bf16.msra.mxu0 %v5070_v45  ;;  %v305_v10 = vld [vmem:[#allocation5 + $0x4d8] sm:$0xff]  ;;  %v4769_v14 = vcombine.high %v177_v12, %v181_v40  ;;  %v4768_v57 = vcombine.low %v177_v12, %v181_v40 }
 0x1ae   :  { %4024 = vmatprep.subr.bf16.mxu0 %v5063_v9  ;;  %v309_v39 = vld [vmem:[#allocation5 + $0x4f8] sm:$0xff]  ;;  %v4776_v9 = vcombine.low %v185_v2, %v189_v48 }
 0x1af   :  { %4096 = vmatpush2.bf16.msra.mxu1 %v5198_v13  ;;  %v6465_v13 = vld [vmem:[#allocation23_spill] sm:$0xff]  ;;  %v4897_v15 = vcombine.high %v305_v10, %v309_v39  ;;  %v169_v42 = vld [vmem:[#allocation5 + $0x98] sm:$0xff]  ;;  %v4896_v11 = vcombine.low %v305_v10, %v309_v39 }
 0x1b0   :  { %4097 = vmatprep.subr.bf16.mxu1 %v5191_v8  ;;  %v4904_v8 = vcombine.low %v313_v46, %v317_v35  ;;  %v301_v58 = vld [vmem:[#allocation5 + $0x4b8] sm:$0xff]  ;;  %v6470_v46 = vld [vmem:[#allocation28_spill] sm:$0xff] }
 0x1b1   :  { %4025 = vmatpush2.bf16.msra.mxu0 %v5062_v38  ;;  %v173_v38 = vld [vmem:[#allocation5 + $0xb8] sm:$0xff] }
 0x1b2   :  { %4140 = vmatprep.subr.bf16.mxu0 %v4801_v63  ;;  %v6467_v63 = vld [vmem:[#allocation25_spill] sm:$0xff]  ;;  %v6468_v27 = vld [vmem:[#allocation26_spill] sm:$0xff] }
 0x1b3   :  { %4098 = vmatpush2.bf16.msra.mxu1 %v5190_v52  ;;  %v289_v62 = vld [vmem:[#allocation5 + $0x458] sm:$0xff] }
 0x1b4   :  { %4213 = vmatprep.subr.bf16.mxu1 %v4929_v18  ;;  %4027 = vmatmul.mubr.bf16.vlgmr.msra.gmra.mxu0 %v6460_v26  ;;  %v5959_v56 = vpop.f32.mrf.mxu0  ;;  %v297_v18 = vld [vmem:[#allocation5 + $0x498] sm:$0xff] }
 0x1b5   :  { %4141 = vmatpush1.bf16.msra.mxu0 %v4800_v5  ;;  %4036 = vmatprep.mubr.bf16.mxu0 %v6462_v17  ;;  %v4761_v5 = vcombine.high %v169_v42, %v173_v38  ;;  %v293_v61 = vld [vmem:[#allocation5 + $0x478] sm:$0xff] }
 0x1b6   :  { %4100 = vmatmul.mubr.bf16.vlgmr.msra.gmra.mxu1 %v6461_v51  ;;  %4142 = vmatprep.subr.bf16.mxu0 %v4793_v24  ;;  %v5962_v19 = vpop.f32.mrf.mxu1  ;;  %v5964_v23 = vpop.f32.mrf.mxu0  ;;  %v161_v24 = vld [vmem:[#allocation5 + $0x58] sm:$0xff]  ;;  %v4881_v35 = vcombine.high %v289_v62, %v293_v61  ;;  %v4880_v39 = vcombine.low %v289_v62, %v293_v61 }
 0x1b7   :  { %4214 = vmatpush1.bf16.msra.mxu1 %v4928_v43  ;;  %4109 = vmatprep.mubr.bf16.mxu1 %v6463_v31  ;;  %v4889_v43 = vcombine.high %v297_v18, %v301_v58  ;;  %v281_v12 = vld [vmem:[#allocation5 + $0x418] sm:$0xff] }
 0x1b8   :  { %4215 = vmatprep.subr.bf16.mxu1 %v4921_v47  ;;  %v5967_v45 = vpop.f32.mrf.mxu1  ;;  %v5971_v52 = vpop.f32.mrf.mxu0  ;;  %v165_v47 = vld [vmem:[#allocation5 + $0x78] sm:$0xff] }
 0x1b9   :  { %4143 = vmatpush1.bf16.msra.mxu0 %v4792_v60  ;;  %v4753_v2 = vcombine.high %v161_v24, %v165_v47  ;;  %v285_v40 = vld [vmem:[#allocation5 + $0x438] sm:$0xff]  ;;  %v4752_v10 = vcombine.low %v161_v24, %v165_v47 }
 0x1ba   :  { %4144 = vmatprep.subr.bf16.mxu0 %v4785_v4  ;;  %v5974_v32 = vpop.f32.mrf.mxu1  ;;  %v5976_v28 = vpop.f32.mrf.mxu0  ;;  %v4760_v4 = vcombine.low %v169_v42, %v173_v38  ;;  %v277_v42 = vld [vmem:[#allocation5 + $0x3f8] sm:$0xff] }
 0x1bb   :  { %4216 = vmatpush1.bf16.msra.mxu1 %v4920_v59  ;;  %v6469_v59 = vld [vmem:[#allocation27_spill] sm:$0xff]  ;;  %v265_v61 = vld [vmem:[#allocation5 + $0x398] sm:$0xff] }
 0x1bc   :  { %4217 = vmatprep.subr.bf16.mxu1 %v4913_v44  ;;  %4037 = vmatmul.mubr.bf16.gmra.mxu0 %v6464_v6  ;;  %v5979_v60 = vpop.f32.mrf.mxu1  ;;  %v4888_v44 = vcombine.low %v297_v18, %v301_v58  ;;  %v5982_v48 = vpop.f32.mrf.mxu0  ;;  %v6472_v18 = vld [vmem:[#allocation30_spill] sm:$0xff] }
 0x1bd   :  { %4145 = vmatpush1.bf16.msra.mxu0 %v4784_v22  ;;  %4046 = vmatprep.mubr.bf16.mxu0 %v6466_v49  ;;  %v153_v22 = vld [vmem:[#allocation5 + $0x18] sm:$0xff] }
 0x1be   :  { %4110 = vmatmul.mubr.bf16.gmra.mxu1 %v6465_v13  ;;  %4146 = vmatprep.subr.bf16.mxu0 %v4777_v1  ;;  %v5985_v1 = vpop.f32.mrf.mxu1  ;;  %v401_v58 = vld [vmem:[#allocation5 + $0x7d8] sm:$0xff] }
 0x1bf   :  { %4218 = vmatpush1.bf16.msra.mxu1 %v4912_v53  ;;  %4119 = vmatprep.mubr.bf16.mxu1 %v6467_v63  ;;  %v157_v53 = vld [vmem:[#allocation5 + $0x38] sm:$0xff] }
 0x1c0   :  { %4219 = vmatprep.subr.bf16.mxu1 %v4905_v7  ;;  %v6471_v7 = vld [vmem:[#allocation29_spill] sm:$0xff]  ;;  %v5990_v38 = vpop.f32.mrf.mxu1  ;;  %v365_v49 = vld [vmem:[#allocation5 + $0x6b8] sm:$0xff] }
 0x1c1   :  { %4147 = vmatpush1.bf16.msra.mxu0 %v4776_v9  ;;  %v4745_v9 = vcombine.high %v153_v22, %v157_v53  ;;  %v357_v6 = vld [vmem:[#allocation5 + $0x678] sm:$0xff] }
 0x1c2   :  { %4148 = vmatprep.subr.bf16.mxu0 %v4769_v14  ;;  %v4873_v14 = vcombine.high %v281_v12, %v285_v40  ;;  %v345_v51 = vld [vmem:[#allocation5 + $0x618] sm:$0xff] }
 0x1c3   :  { %4220 = vmatpush1.bf16.msra.mxu1 %v4904_v8  ;;  %v5988_v8 = vpop.f32.mrf.mxu0  ;;  %v349_v26 = vld [vmem:[#allocation5 + $0x638] sm:$0xff] }
 0x1c4   :  { %4221 = vmatprep.subr.bf16.mxu1 %v4897_v15  ;;  %4047 = vmatmul.mubr.bf16.gmra.mxu0 %v6468_v27  ;;  %v273_v15 = vld [vmem:[#allocation5 + $0x3d8] sm:$0xff] }
 0x1c5   :  { %4149 = vmatpush1.bf16.msra.mxu0 %v4768_v57  ;;  %4056 = vmatprep.mubr.bf16.mxu0 %v6470_v46  ;;  %v405_v57 = vld [vmem:[#allocation5 + $0x7f8] sm:$0xff]  ;;  %v4865_v24 = vcombine.high %v273_v15, %v277_v42  ;;  %v5994_v47 = vpop.f32.mrf.mxu0 }
 0x1c6   :  { %4120 = vmatmul.mubr.bf16.gmra.mxu1 %v6469_v59  ;;  %4150 = vmatprep.subr.bf16.mxu0 %v4761_v5  ;;  %v4744_v5 = vcombine.low %v153_v22, %v157_v53  ;;  %v4993_v62 = vcombine.high %v401_v58, %v405_v57  ;;  %v4864_v22 = vcombine.low %v273_v15, %v277_v42  ;;  %v373_v27 = vld [vmem:[#allocation5 + $0x6f8] sm:$0xff] }
 0x1c7   :  { %4222 = vmatpush1.bf16.msra.mxu1 %v4896_v11  ;;  %4129 = vmatprep.mubr.bf16.mxu1 %v6471_v7  ;;  %v6473_v11 = vld [vmem:[#allocation31_spill] sm:$0xff]  ;;  %v4992_v53 = vcombine.low %v401_v58, %v405_v57  ;;  %v385_v7 = vld [vmem:[#allocation5 + $0x758] sm:$0xff] }
 0x1c8   :  { %4223 = vmatprep.subr.bf16.mxu1 %v4889_v43  ;;  %v4872_v43 = vcombine.low %v281_v12, %v285_v40  ;;  %v6000_v40 = vpop.f32.mrf.mxu0  ;;  %v249_v57 = vld [vmem:[#allocation5 + $0x318] sm:$0xff] }
 0x1c9   :  { %4151 = vmatpush1.bf16.msra.mxu0 %v4760_v4  ;;  %v269_v4 = vld [vmem:[#allocation5 + $0x3b8] sm:$0xff] }
 0x1ca   :  { %4152 = vmatprep.subr.bf16.mxu0 %v4753_v2  ;;  %v6474_v2 = vld [vmem:[#allocation12_spill] sm:$0xff]  ;;  %v4857_v12 = vcombine.high %v265_v61, %v269_v4  ;;  %v4856_v46 = vcombine.low %v265_v61, %v269_v4  ;;  %v6004_v42 = vpop.f32.mrf.mxu0 }
 0x1cb   :  { %4224 = vmatpush1.bf16.msra.mxu1 %v4888_v44  ;;  %v5996_v44 = vpop.f32.mrf.mxu1 }
 0x1cc   :  { %4225 = vmatprep.subr.bf16.mxu1 %v4881_v35  ;;  %4057 = vmatmul.mubr.bf16.gmra.mxu0 %v6472_v18  ;;  %v393_v35 = vld [vmem:[#allocation5 + $0x798] sm:$0xff]  ;;  %v6008_v4 = vpop.f32.mrf.mxu0 }
 0x1cd   :  { %4153 = vmatpush1.bf16.msra.mxu0 %v4752_v10  ;;  %4172 = vmatprep.mubr.bf16.mxu0 %v6474_v2  ;;  %v397_v18 = vld [vmem:[#allocation5 + $0x7b8] sm:$0xff]  ;;  %v6475_v10 = vld [vmem:[#allocation13_spill] sm:$0xff] }
 0x1ce   :  { %4130 = vmatmul.mubr.bf16.gmra.mxu1 %v6473_v11  ;;  %4154 = vmatprep.subr.bf16.mxu0 %v4745_v9  ;;  %v257_v9 = vld [vmem:[#allocation5 + $0x358] sm:$0xff]  ;;  %v6002_v11 = vpop.f32.mrf.mxu1 }
 0x1cf   :  { %4226 = vmatpush1.bf16.msra.mxu1 %v4880_v39  ;;  %4245 = vmatprep.mubr.bf16.mxu1 %v6475_v10  ;;  %v4985_v39 = vcombine.high %v393_v35, %v397_v18  ;;  %v389_v2 = vld [vmem:[#allocation5 + $0x778] sm:$0xff] }
 0x1d0   :  { %4227 = vmatprep.subr.bf16.mxu1 %v4873_v14  ;;  %v261_v14 = vld [vmem:[#allocation5 + $0x378] sm:$0xff]  ;;  %v4977_v58 = vcombine.high %v385_v7, %v389_v2 }
 0x1d1   :  { %4155 = vmatpush1.bf16.msra.mxu0 %v4744_v5  ;;  %v4984_v5 = vcombine.low %v393_v35, %v397_v18  ;;  %v4849_v15 = vcombine.high %v257_v9, %v261_v14  ;;  %v381_v10 = vld [vmem:[#allocation5 + $0x738] sm:$0xff]  ;;  %v4848_v59 = vcombine.low %v257_v9, %v261_v14  ;;  %v6012_v9 = vpop.f32.mrf.mxu0 }
 0x1d2   :  { %4156 = vmatprep.subr.bf16.mxu0 %v4865_v24  ;;  %v6006_v24 = vpop.f32.mrf.mxu1 }
 0x1d3   :  { %4228 = vmatpush1.bf16.msra.mxu1 %v4872_v43  ;;  %v253_v43 = vld [vmem:[#allocation5 + $0x338] sm:$0xff] }
 0x1d4   :  { %4229 = vmatprep.subr.bf16.mxu1 %v4993_v62  ;;  %v377_v62 = vld [vmem:[#allocation5 + $0x718] sm:$0xff]  ;;  %v4841_v61 = vcombine.high %v249_v57, %v253_v43  ;;  %v6010_v35 = vpop.f32.mrf.mxu1  ;;  %v4840_v63 = vcombine.low %v249_v57, %v253_v43  ;;  %v6016_v57 = vpop.f32.mrf.mxu0 }
 0x1d5   :  { %4157 = vmatpush2.bf16.msra.mxu0 %v4864_v22  ;;  %v4976_v22 = vcombine.low %v385_v7, %v389_v2  ;;  %v4969_v18 = vcombine.high %v377_v62, %v381_v10 }
 0x1d6   :  { %4158 = vmatprep.subr.bf16.mxu0 %v4857_v12  ;;  %v245_v12 = vld [vmem:[#allocation5 + $0x2f8] sm:$0xff]  ;;  %v6014_v2 = vpop.f32.mrf.mxu1  ;;  %v6020_v17 = vpop.f32.mrf.mxu0 }
 0x1d7   :  { %4230 = vmatpush2.bf16.msra.mxu1 %v4992_v53  ;;  %v241_v53 = vld [vmem:[#allocation5 + $0x2d8] sm:$0xff] }
 0x1d8   :  { %4231 = vmatprep.subr.bf16.mxu1 %v4985_v39  ;;  %v369_v39 = vld [vmem:[#allocation5 + $0x6d8] sm:$0xff]  ;;  %v4833_v14 = vcombine.high %v241_v53, %v245_v12  ;;  %v4832_v13 = vcombine.low %v241_v53, %v245_v12 }
 0x1d9   :  { %4159 = vmatpush2.bf16.msra.mxu0 %v4856_v46  ;;  %v4968_v46 = vcombine.low %v377_v62, %v381_v10  ;;  %v4961_v7 = vcombine.high %v369_v39, %v373_v27  ;;  %v6018_v62 = vpop.f32.mrf.mxu1 }
 0x1da   :  { %4160 = vmatprep.subr.bf16.mxu0 %v4849_v15  ;;  %v237_v15 = vld [vmem:[#allocation5 + $0x2b8] sm:$0xff] }
 0x1db   :  { %4232 = vmatpush2.bf16.msra.mxu1 %v4984_v5  ;;  %v233_v5 = vld [vmem:[#allocation5 + $0x298] sm:$0xff] }
 0x1dc   :  { %4233 = vmatprep.subr.bf16.mxu1 %v4977_v58  ;;  %v361_v58 = vld [vmem:[#allocation5 + $0x698] sm:$0xff]  ;;  %v4825_v43 = vcombine.high %v233_v5, %v237_v15  ;;  %v4824_v31 = vcombine.low %v233_v5, %v237_v15  ;;  %v6026_v5 = vpop.f32.mrf.mxu0 }
 0x1dd   :  { %4161 = vmatpush2.bf16.msra.mxu0 %v4848_v59  ;;  %v4960_v59 = vcombine.low %v369_v39, %v373_v27  ;;  %v4953_v10 = vcombine.high %v361_v58, %v365_v49  ;;  %v6476_v27 = vld [vmem:[#allocation32_spill] sm:$0xff]  ;;  %v6023_v39 = vpop.f32.mrf.mxu1 }
 0x1de   :  { %4162 = vmatprep.subr.bf16.mxu0 %v4841_v61  ;;  %v229_v61 = vld [vmem:[#allocation5 + $0x278] sm:$0xff]  ;;  %v674_v12 = vsub.s32 2, %v6476_v27  ;;  %6477 = vst [vmem:[#allocation33_spill] sm:$0xff] %v6023_v39  ;;  %v678_v36 = vsub.s32 3, %v6476_v27 }
 0x1df   :  { %4234 = vmatpush2.bf16.msra.mxu1 %v4976_v22  ;;  %v225_v22 = vld [vmem:[#allocation5 + $0x258] sm:$0xff] }
 0x1e0   :  { %4235 = vmatprep.subr.bf16.mxu1 %v4969_v18  ;;  %v353_v18 = vld [vmem:[#allocation5 + $0x658] sm:$0xff]  ;;  %v4817_v53 = vcombine.high %v225_v22, %v229_v61 }
 0x1e1   :  { %4163 = vmatpush2.bf16.msra.mxu0 %v4840_v63  ;;  %v4952_v63 = vcombine.low %v361_v58, %v365_v49  ;;  %v4944_v49 = vcombine.low %v353_v18, %v357_v6  ;;  %v6028_v58 = vld [vmem:[#allocation7] sm:$0xff]  ;;  %v593_v27 = vld [vmem:[#allocation5 + $0xdd8] sm:$0xff] }
 0x1e2   :  { %4164 = vmatprep.subr.bf16.mxu0 %v4833_v14  ;;  %v217_v14 = vld [vmem:[#allocation5 + $0x218] sm:$0xff]  ;;  %6478 = vst [vmem:[#allocation34_spill] sm:$0xff] %v6028_v58 }
 0x1e3   :  { %4236 = vmatpush2.bf16.msra.mxu1 %v4968_v46  ;;  %v4945_v46 = vcombine.high %v353_v18, %v357_v6  ;;  %v6038_v6 = vpop.f32.mrf.mxu0  ;;  %v4936_v18 = vcombine.low %v345_v51, %v349_v26  ;;  %v585_v39 = vld [vmem:[#allocation5 + $0xd98] sm:$0xff] }
 0x1e4   :  { %4237 = vmatprep.subr.bf16.mxu1 %v4961_v7  ;;  %v221_v7 = vld [vmem:[#allocation5 + $0x238] sm:$0xff] }
 0x1e5   :  { %4165 = vmatpush2.bf16.msra.mxu0 %v4832_v13  ;;  %v4816_v13 = vcombine.low %v225_v22, %v229_v61  ;;  %v4809_v15 = vcombine.high %v217_v14, %v221_v7  ;;  %v6036_v22 = vrot.slane %v6028_v58, %v678_v36  ;;  %v4808_v61 = vcombine.low %v217_v14, %v221_v7  ;;  %v589_v36 = vld [vmem:[#allocation5 + $0xdb8] sm:$0xff] }
 0x1e6   :  { %4166 = vmatprep.subr.bf16.mxu0 %v4825_v43  ;;  %v6033_v43 = vpop.f32.mrf.mxu1  ;;  %v5056_v7 = vcombine.low %v465_v41, %v469_v29 }
 0x1e7   :  { %4238 = vmatpush2.bf16.msra.mxu1 %v4960_v59  ;;  %v6031_v59 = vrot.slane %v6028_v58, %v674_v12  ;;  %6479 = vst [vmem:[#allocation12_spill] sm:$0xff] %v6033_v43  ;;  %v461_v43 = vld [vmem:[#allocation5 + $0x9b8] sm:$0xff]  ;;  %v3593_v14 = vadd.f32 %v5964_v23, %v6036_v22  ;;  %v5177_v58 = vcombine.high %v585_v39, %v589_v36 }
 0x1e8   :  { %4239 = vmatprep.subr.bf16.mxu1 %v4953_v10  ;;  %v4937_v10 = vcombine.high %v345_v51, %v349_v26  ;;  %v6042_v12 = vpop.f32.mrf.mxu1  ;;  %v5049_v51 = vcombine.high %v457_v55, %v461_v43  ;;  %v6055_v23 = vld [vmem:[#allocation5 + $0x978] sm:$0xff] }
 0x1e9   :  { %4167 = vmatpush2.bf16.msra.mxu0 %v4824_v31  ;;  %v597_v31 = vld [vmem:[#allocation5 + $0xdf8] sm:$0xff] }
 0x1ea   :  { %4168 = vmatprep.subr.bf16.mxu0 %v4817_v53  ;;  %v3591_v53 = vadd.f32 %v5959_v56, %v6031_v59  ;;  %v5184_v26 = vcombine.low %v593_v27, %v597_v31  ;;  %v6048_v56 = vld [vmem:[#allocation5 + $0x958] sm:$0xff] }
 0x1eb   :  { %4240 = vmatpush2.bf16.msra.mxu1 %v4952_v63  ;;  %v5057_v63 = vcombine.high %v465_v41, %v469_v29  ;;  %v6057_v29 = vld [vmem:[#allocation5 + $0xd58] sm:$0xff] }
 0x1ec   :  { %4241 = vmatprep.subr.bf16.mxu1 %v4945_v46  ;;  %v5185_v46 = vcombine.high %v593_v27, %v597_v31  ;;  %v6059_v41 = vld [vmem:[#allocation5 + $0xd78] sm:$0xff]  ;;  %v5048_v27 = vcombine.low %v457_v55, %v461_v43  ;;  %v5176_v31 = vcombine.low %v585_v39, %v589_v36 }
 0x1ed   :  { %4169 = vmatpush2.bf16.msra.mxu0 %v4816_v13  ;;  %v6046_v13 = vpop.f32.mrf.mxu0  ;;  %v5169_v55 = vcombine.high %v6057_v29, %v6059_v41  ;;  %v6075_v36 = vld [vmem:[#allocation5 + $0x938] sm:$0xff] }
 0x1ee   :  { %4170 = vmatprep.subr.bf16.mxu0 %v4809_v15  ;;  %v3595_v15 = vadd.f32 %v5971_v52, %v6031_v59  ;;  %v3597_v52 = vadd.f32 %v5976_v28, %v6036_v22 }
 0x1ef   :  { %4242 = vmatpush2.bf16.msra.mxu1 %v4944_v49  ;;  %v3664_v49 = vadd.f32 %v5962_v19, %v3591_v53  ;;  %v3666_v19 = vadd.f32 %v5967_v45, %v3593_v14  ;;  %v3601_v53 = vadd.f32 %v5982_v48, %v6031_v59  ;;  %v6072_v45 = vld [vmem:[#allocation5 + $0x918] sm:$0xff] }
 0x1f0   :  { %4243 = vmatprep.subr.bf16.mxu1 %v4937_v10  ;;  %v6053_v10 = vpop.f32.mrf.mxu1  ;;  %v3668_v28 = vadd.f32 %v5974_v32, %v3595_v15  ;;  %v6077_v48 = vld [vmem:[#allocation5 + $0xd18] sm:$0xff]  ;;  %v3670_v32 = vadd.f32 %v5979_v60, %v3597_v52 }
 0x1f1   :  { %4171 = vmatpush2.bf16.msra.mxu0 %v4808_v61  ;;  %v6079_v14 = vld [vmem:[#allocation5 + $0xd38] sm:$0xff] }
 0x1f2   :  { %4286 = vmatprep.subr.bf16.mxu0 %v5057_v63  ;;  %v6095_v60 = vld [vmem:[#allocation5 + $0x8d8] sm:$0xff] }
 0x1f3   :  { %4244 = vmatpush2.bf16.msra.mxu1 %v4936_v18 }
 0x1f4   :  { %4359 = vmatprep.subr.bf16.mxu1 %v5185_v46  ;;  %v3736_v61 = vpop.f32.mrf.mxu0  ;;  %4173 = vmatmul.mubr.bf16.vlgmr.msra.gmra.mxu0 %v5584_v21  ;;  %v5041_v21 = vcombine.high %v6048_v56, %v6055_v23 }
 0x1f5   :  { %v3737_v18 = vadd.f32 %v3736_v61, %v3664_v49  ;;  %4287 = vmatpush1.bf16.msra.mxu0 %v5056_v7  ;;  %4182 = vmatprep.mubr.bf16.mxu0 %v5588_v34  ;;  %v3603_v7 = vadd.f32 %v5988_v8, %v6036_v22  ;;  %v5168_v61 = vcombine.low %v6057_v29, %v6059_v41 }
 0x1f6   :  { %v3809_v63 = vpop.f32.mrf.mxu1  ;;  %4246 = vmatmul.mubr.bf16.vlgmr.msra.gmra.mxu1 %v5586_v25  ;;  %v3738_v46 = vpop.f32.mrf.mxu0  ;;  %4288 = vmatprep.subr.bf16.mxu0 %v5049_v51  ;;  %v5040_v51 = vcombine.low %v6048_v56, %v6055_v23  ;;  %v3674_v34 = vadd.f32 %v5985_v1, %v3601_v53  ;;  %v5033_v56 = vcombine.high %v6072_v45, %v6075_v36  ;;  %v6099_v1 = vld [vmem:[#allocation5 + $0x8f8] sm:$0xff] }
 0x1f7   :  { %4360 = vmatpush1.bf16.msra.mxu1 %v5184_v26  ;;  %v3810_v39 = vadd.f32 %v3809_v63, %v3737_v18  ;;  %v3739_v43 = vadd.f32 %v3738_v46, %v3666_v19  ;;  %4255 = vmatprep.mubr.bf16.mxu1 %v5591_v37  ;;  %v5161_v37 = vcombine.high %v6077_v48, %v6079_v14  ;;  %v6103_v19 = vld [vmem:[#allocation5 + $0xcf8] sm:$0xff] }
 0x1f8   :  { %v3811_v25 = vpop.f32.mrf.mxu1  ;;  %4361 = vmatprep.subr.bf16.mxu1 %v5177_v58  ;;  %v3740_v26 = vpop.f32.mrf.mxu0  ;;  %v3605_v23 = vadd.f32 %v5994_v47, %v6031_v59  ;;  %v3676_v52 = vadd.f32 %v5990_v38, %v3603_v7  ;;  %v5032_v63 = vcombine.low %v6072_v45, %v6075_v36  ;;  %v5160_v47 = vcombine.low %v6077_v48, %v6079_v14  ;;  %v6125_v36 = vld [vmem:[#allocation5 + $0xc98] sm:$0xff] }
 0x1f9   :  { %v3812_v58 = vadd.f32 %v3811_v25, %v3739_v43  ;;  %v3741_v49 = vadd.f32 %v3740_v26, %v3668_v28  ;;  %4289 = vmatpush1.bf16.msra.mxu0 %v5048_v27  ;;  %5354 = vtanh.f32 %v3810_v39  ;;  %v3607_v53 = vadd.f32 %v6000_v40, %v6036_v22  ;;  %v6120_v40 = vld [vmem:[#allocation5 + $0x898] sm:$0xff] }
 0x1fa   :  { %v3813_v15 = vpop.f32.mrf.mxu1  ;;  %v3742_v8 = vpop.f32.mrf.mxu0  ;;  %4290 = vmatprep.subr.bf16.mxu0 %v5041_v21  ;;  %v3611_v38 = vadd.f32 %v6004_v42, %v6031_v59  ;;  %v5025_v28 = vcombine.high %v6095_v60, %v6099_v1  ;;  %v3678_v39 = vadd.f32 %v5996_v44, %v3605_v23  ;;  %v6123_v42 = vld [vmem:[#allocation5 + $0x8b8] sm:$0xff]  ;;  %v3613_v14 = vadd.f32 %v6008_v4, %v6036_v22 }
 0x1fb   :  { %4362 = vmatpush1.bf16.msra.mxu1 %v5176_v31  ;;  %5356 = vtanh.f32 %v3812_v58  ;;  %v3814_v27 = vadd.f32 %v3813_v15, %v3741_v49  ;;  %v3743_v29 = vadd.f32 %v3742_v8, %v3670_v32  ;;  %v6101_v31 = vld [vmem:[#allocation5 + $0xcd8] sm:$0xff]  ;;  %v5024_v44 = vcombine.low %v6095_v60, %v6099_v1 }
 0x1fc   :  { %v3815_v41 = vpop.f32.mrf.mxu1  ;;  %4363 = vmatprep.subr.bf16.mxu1 %v5169_v55  ;;  %v3746_v18 = vpop.f32.mrf.mxu0  ;;  %4183 = vmatmul.mubr.bf16.gmra.mxu0 %v5595_v50  ;;  %v5153_v50 = vcombine.high %v6101_v31, %v6103_v19  ;;  %v6127_v48 = vld [vmem:[#allocation5 + $0xcb8] sm:$0xff]  ;;  %v3680_v26 = vadd.f32 %v6002_v11, %v3607_v53  ;;  %v5152_v49 = vcombine.low %v6101_v31, %v6103_v19 }
 0x1fd   :  { %v3816_v46 = vadd.f32 %v3815_v41, %v3743_v29  ;;  %v3747_v21 = vadd.f32 %v3746_v18, %v3674_v34  ;;  %4291 = vmatpush1.bf16.msra.mxu0 %v5040_v51  ;;  %5358 = vtanh.f32 %v3814_v27  ;;  %4192 = vmatprep.mubr.bf16.mxu0 %v5600_v0  ;;  %v3684_v0 = vadd.f32 %v6006_v24, %v3611_v38  ;;  %v6143_v11 = vld [vmem:[#allocation5 + $0x858] sm:$0xff] }
 0x1fe   :  { %v3819_v55 = vpop.f32.mrf.mxu1  ;;  %4256 = vmatmul.mubr.bf16.gmra.mxu1 %v5598_v54  ;;  %v3748_v45 = vpop.f32.mrf.mxu0  ;;  %4292 = vmatprep.subr.bf16.mxu0 %v5033_v56  ;;  %v5017_v15 = vcombine.high %v6120_v40, %v6123_v42  ;;  %v6147_v24 = vld [vmem:[#allocation5 + $0x878] sm:$0xff]  ;;  %v3686_v23 = vadd.f32 %v6010_v35, %v3613_v14  ;;  %v5016_v29 = vcombine.low %v6120_v40, %v6123_v42 }
 0x1ff   :  { %4364 = vmatpush1.bf16.msra.mxu1 %v5168_v61  ;;  %5360 = vtanh.f32 %v3816_v46  ;;  %v3749_v43 = vadd.f32 %v3748_v45, %v3676_v52  ;;  %v3820_v54 = vadd.f32 %v3819_v55, %v3747_v21  ;;  %4265 = vmatprep.mubr.bf16.mxu1 %v5603_v3  ;;  %v5145_v3 = vcombine.high %v6125_v36, %v6127_v48  ;;  %v6151_v60 = vld [vmem:[#allocation5 + $0xc78] sm:$0xff] }
 0x200   :  { %v3821_v25 = vpop.f32.mrf.mxu1  ;;  %4365 = vmatprep.subr.bf16.mxu1 %v5161_v37  ;;  %v3750_v7 = vpop.f32.mrf.mxu0  ;;  %v3615_v61 = vadd.f32 %v6012_v9, %v6031_v59  ;;  %v6149_v37 = vld [vmem:[#allocation5 + $0xc58] sm:$0xff]  ;;  %v5144_v9 = vcombine.low %v6125_v36, %v6127_v48  ;;  %v3617_v41 = vadd.f32 %v6016_v57, %v6036_v22  ;;  %v3621_v35 = vadd.f32 %v6020_v17, %v6031_v59 }
 0x201   :  { %v3751_v51 = vadd.f32 %v3750_v7, %v3678_v39  ;;  %v3822_v32 = vadd.f32 %v3821_v25, %v3749_v43  ;;  %4293 = vmatpush1.bf16.msra.mxu0 %v5032_v63  ;;  %5362 = vtanh.f32 %v3820_v54  ;;  %v5009_v18 = vcombine.high %v6143_v11, %v6147_v24  ;;  %v6168_v57 = vld [vmem:[#allocation5 + $0x818] sm:$0xff]  ;;  %v6480_v25 = vld [vmem:[#allocation33_spill] sm:$0xff] }
 0x202   :  { %v3823_v58 = vpop.f32.mrf.mxu1  ;;  %v3752_v4 = vpop.f32.mrf.mxu0  ;;  %4294 = vmatprep.subr.bf16.mxu0 %v5025_v28  ;;  %v6171_v17 = vld [vmem:[#allocation5 + $0x838] sm:$0xff]  ;;  %v3623_v45 = vadd.f32 %v6026_v5, %v6036_v22  ;;  %v3690_v40 = vadd.f32 %v6018_v62, %v3617_v41  ;;  %v3694_v42 = vadd.f32 %v6480_v25, %v3621_v35  ;;  %v3625_v14 = vadd.f32 %v6038_v6, %v6031_v59 }
 0x203   :  { %4366 = vmatpush1.bf16.msra.mxu1 %v5160_v47  ;;  %5364 = vtanh.f32 %v3822_v32  ;;  %v3753_v34 = vadd.f32 %v3752_v4, %v3680_v26  ;;  %v3824_v8 = vadd.f32 %v3823_v58, %v3751_v51  ;;  %v3688_v47 = vadd.f32 %v6014_v2, %v3615_v61  ;;  %v6173_v21 = vld [vmem:[#allocation5 + $0xc18] sm:$0xff] }
 0x204   :  { %v3825_v56 = vpop.f32.mrf.mxu1  ;;  %4367 = vmatprep.subr.bf16.mxu1 %v5153_v50  ;;  %v3756_v27 = vpop.f32.mrf.mxu0  ;;  %4193 = vmatmul.mubr.bf16.gmra.mxu0 %v5607_v16  ;;  %v5137_v16 = vcombine.high %v6149_v37, %v6151_v60  ;;  %v6175_v55 = vld [vmem:[#allocation5 + $0xc38] sm:$0xff]  ;;  %v5008_v2 = vcombine.low %v6143_v11, %v6147_v24  ;;  %v5136_v50 = vcombine.low %v6149_v37, %v6151_v60 }
 0x205   :  { %v3757_v1 = vadd.f32 %v3756_v27, %v3684_v0  ;;  %v3826_v31 = vadd.f32 %v3825_v56, %v3753_v34  ;;  %4295 = vmatpush1.bf16.msra.mxu0 %v5024_v44  ;;  %5366 = vtanh.f32 %v3824_v8  ;;  %4202 = vmatprep.mubr.bf16.mxu0 %v5612_v30  ;;  %v5001_v36 = vcombine.high %v6168_v57, %v6171_v17  ;;  %v6195_v51 = vld [vmem:[#allocation5 + $0xbf8] sm:$0xff]  ;;  %v6481_v0 = vld [vmem:[#allocation12_spill] sm:$0xff]  ;;  %v6483_v56 = vld [vmem:[#allocation15_spill] sm:$0xff] }
 0x206   :  { %v3829_v19 = vpop.f32.mrf.mxu1  ;;  %4266 = vmatmul.mubr.bf16.gmra.mxu1 %v5610_v20  ;;  %v3758_v52 = vpop.f32.mrf.mxu0  ;;  %4296 = vmatprep.subr.bf16.mxu0 %v5017_v15  ;;  %v5129_v48 = vcombine.high %v6173_v21, %v6175_v55  ;;  %v6197_v32 = vld [vmem:[#allocation5 + $0xfd8] sm:$0xff]  ;;  %v3696_v4 = vadd.f32 %v6481_v0, %v3623_v45  ;;  %v3627_v15 = vadd.f32 %v6046_v13, %v6036_v22 }
 0x207   :  { %4368 = vmatpush1.bf16.msra.mxu1 %v5152_v49  ;;  %v5355_v63 = vpop.eup %5354  ;;  %5368 = vtanh.f32 %v3826_v31  ;;  %v3759_v20 = vadd.f32 %v3758_v52, %v3686_v23  ;;  %v3830_v53 = vadd.f32 %v3829_v19, %v3757_v1  ;;  %4275 = vmatprep.mubr.bf16.mxu1 %v5615_v33  ;;  %v6191_v33 = vld [vmem:[#allocation5 + $0xbd8] sm:$0xff]  ;;  %v5000_v59 = vcombine.low %v6168_v57, %v6171_v17  ;;  %v6484_v31 = vld [vmem:[#allocation16_spill] sm:$0xff]  ;;  %v6485_v57 = vld [vmem:[#allocation17_spill] sm:$0xff] }
 0x208   :  { %v3831_v46 = vpop.f32.mrf.mxu1  ;;  %4369 = vmatprep.subr.bf16.mxu1 %v5145_v3  ;;  %v5357_v38 = vpop.eup %5356  ;;  %v6199_v58 = vld [vmem:[#allocation5 + $0xff8] sm:$0xff]  ;;  %v5128_v22 = vcombine.low %v6173_v21, %v6175_v55  ;;  %v5121_v13 = vcombine.high %v6191_v33, %v6195_v51  ;;  %v3698_v23 = vadd.f32 %v6042_v12, %v3625_v14  ;;  %v5120_v52 = vcombine.low %v6191_v33, %v6195_v51 }
 0x209   :  { %v3760_v28 = vpop.f32.mrf.mxu0  ;;  %v5283_v39 = vpack.c.bf16 %v5357_v38, %v5355_v63  ;;  %v3832_v54 = vadd.f32 %v3831_v46, %v3759_v20  ;;  %4297 = vmatpush1.bf16.msra.mxu0 %v5016_v29  ;;  %5370 = vtanh.f32 %v3830_v53  ;;  %v6482_v6 = vld [vmem:[#allocation14_spill] sm:$0xff]  ;;  %v5249_v37 = vcombine.high %v6197_v32, %v6199_v58 }
 0x20a   :  { %v3761_v43 = vadd.f32 %v3760_v28, %v3688_v47  ;;  %v3833_v30 = vpop.f32.mrf.mxu1  ;;  %4298 = vmatprep.subr.bf16.mxu0 %v5009_v18  ;;  %v5359_v62 = vpop.eup %5358  ;;  %v521_v41 = vld [vmem:[#allocation5 + $0xb98] sm:$0xff]  ;;  %v3700_v12 = vadd.f32 %v6053_v10, %v3627_v15  ;;  %v5248_v17 = vcombine.low %v6197_v32, %v6199_v58 }
 0x20b   :  { %4370 = vmatpush1.bf16.msra.mxu1 %v5144_v9  ;;  %v3762_v5 = vpop.f32.mrf.mxu0  ;;  %4689 = vst [vmem:[#allocation8 + $0x8] sm:$0xff] %v5283_v39  ;;  %5372 = vtanh.f32 %v3832_v54  ;;  %v525_v1 = vld [vmem:[#allocation5 + $0xbb8] sm:$0xff] }
 0x20c   :  { %v3763_v7 = vadd.f32 %v3762_v5, %v3690_v40  ;;  %v3834_v44 = vadd.f32 %v3833_v30, %v3761_v43  ;;  %v3835_v26 = vpop.f32.mrf.mxu1  ;;  %4371 = vmatprep.subr.bf16.mxu1 %v5137_v16  ;;  %v5361_v49 = vpop.eup %5360  ;;  %4203 = vmatmul.mubr.bf16.gmra.mxu0 %v6482_v6  ;;  %v649_v18 = vld [vmem:[#allocation5 + $0xf98] sm:$0xff]  ;;  %v5113_v21 = vcombine.high %v521_v41, %v525_v1 }
 0x20d   :  { %v3766_v3 = vpop.f32.mrf.mxu0  ;;  %v5287_v11 = vpack.c.bf16 %v5361_v49, %v5359_v62  ;;  %4299 = vmatpush1.bf16.msra.mxu0 %v5008_v2  ;;  %4318 = vmatprep.mubr.bf16.mxu0 %v6484_v31  ;;  %v653_v16 = vld [vmem:[#allocation5 + $0xfb8] sm:$0xff]  ;;  %v5112_v25 = vcombine.low %v521_v41, %v525_v1 }
 0x20e   :  { %v3767_v61 = vadd.f32 %v3766_v3, %v3694_v42  ;;  %v3836_v34 = vadd.f32 %v3835_v26, %v3763_v7  ;;  %v3839_v8 = vpop.f32.mrf.mxu1  ;;  %4276 = vmatmul.mubr.bf16.gmra.mxu1 %v6483_v56  ;;  %5374 = vtanh.f32 %v3834_v44  ;;  %4300 = vmatprep.subr.bf16.mxu0 %v5001_v36  ;;  %v5363_v60 = vpop.eup %5362  ;;  %v5241_v10 = vcombine.high %v649_v18, %v653_v16  ;;  %v513_v2 = vld [vmem:[#allocation5 + $0xb58] sm:$0xff] }
 0x20f   :  { %4372 = vmatpush1.bf16.msra.mxu1 %v5136_v50  ;;  %v3768_v24 = vpop.f32.mrf.mxu0  ;;  %4693 = vst [vmem:[#allocation8 + $0x28] sm:$0xff] %v5287_v11  ;;  %4391 = vmatprep.mubr.bf16.mxu1 %v6485_v57  ;;  %v517_v50 = vld [vmem:[#allocation5 + $0xb78] sm:$0xff]  ;;  %v5240_v42 = vcombine.low %v649_v18, %v653_v16 }
 0x210   :  { %5376 = vtanh.f32 %v3836_v34  ;;  %v3769_v27 = vadd.f32 %v3768_v24, %v3696_v4  ;;  %v3840_v29 = vadd.f32 %v3839_v8, %v3767_v61  ;;  %v3841_v9 = vpop.f32.mrf.mxu1  ;;  %4373 = vmatprep.subr.bf16.mxu1 %v5129_v48  ;;  %v5365_v19 = vpop.eup %5364  ;;  %v641_v39 = vld [vmem:[#allocation5 + $0xf58] sm:$0xff]  ;;  %v5105_v5 = vcombine.high %v513_v2, %v517_v50 }
 0x211   :  { %v3770_v35 = vpop.f32.mrf.mxu0  ;;  %v5291_v63 = vpack.c.bf16 %v5365_v19, %v5363_v60  ;;  %4301 = vmatpush1.bf16.msra.mxu0 %v5000_v59  ;;  %v645_v43 = vld [vmem:[#allocation5 + $0xf78] sm:$0xff]  ;;  %v5104_v51 = vcombine.low %v513_v2, %v517_v50 }
 0x212   :  { %v3771_v47 = vadd.f32 %v3770_v35, %v3698_v23  ;;  %v3842_v20 = vadd.f32 %v3841_v9, %v3769_v27  ;;  %v3843_v53 = vpop.f32.mrf.mxu1  ;;  %5378 = vtanh.f32 %v3840_v29  ;;  %4302 = vmatprep.subr.bf16.mxu0 %v5121_v13  ;;  %v5367_v55 = vpop.eup %5366  ;;  %v5233_v48 = vcombine.high %v641_v39, %v645_v43  ;;  %v505_v33 = vld [vmem:[#allocation5 + $0xb18] sm:$0xff] }
 0x213   :  { %4374 = vmatpush1.bf16.msra.mxu1 %v5128_v22  ;;  %v3772_v46 = vpop.f32.mrf.mxu0  ;;  %4697 = vst [vmem:[#allocation8 + $0x48] sm:$0xff] %v5291_v63  ;;  %v509_v62 = vld [vmem:[#allocation5 + $0xb38] sm:$0xff]  ;;  %v5232_v32 = vcombine.low %v641_v39, %v645_v43  ;;  %v6488_v39 = vld [vmem:[#allocation20_spill] sm:$0xff]  ;;  %v6489_v43 = vld [vmem:[#allocation21_spill] sm:$0xff] }
 0x214   :  { %5380 = vtanh.f32 %v3842_v20  ;;  %v3773_v38 = vadd.f32 %v3772_v46, %v3700_v12  ;;  %v3844_v45 = vadd.f32 %v3843_v53, %v3771_v47  ;;  %v3845_v28 = vpop.f32.mrf.mxu1  ;;  %4375 = vmatprep.subr.bf16.mxu1 %v5249_v37  ;;  %v5369_v40 = vpop.eup %5368  ;;  %v633_v7 = vld [vmem:[#allocation5 + $0xf18] sm:$0xff]  ;;  %v5097_v58 = vcombine.high %v505_v33, %v509_v62 }
 0x215   :  { %v5295_v54 = vpack.c.bf16 %v5369_v40, %v5367_v55  ;;  %4303 = vmatpush2.bf16.msra.mxu0 %v5120_v52  ;;  %v637_v44 = vld [vmem:[#allocation5 + $0xf38] sm:$0xff]  ;;  %v5096_v61 = vcombine.low %v505_v33, %v509_v62  ;;  %v6487_v40 = vld [vmem:[#allocation19_spill] sm:$0xff]  ;;  %v6493_v33 = vld [vmem:[#allocation25_spill] sm:$0xff] }
 0x216   :  { %v3846_v30 = vadd.f32 %v3845_v28, %v3773_v38  ;;  %5382 = vtanh.f32 %v3844_v45  ;;  %4304 = vmatprep.subr.bf16.mxu0 %v5113_v21  ;;  %v5371_v36 = vpop.eup %5370  ;;  %v5225_v0 = vcombine.high %v633_v7, %v637_v44  ;;  %v497_v4 = vld [vmem:[#allocation5 + $0xad8] sm:$0xff]  ;;  %v5224_v34 = vcombine.low %v633_v7, %v637_v44 }
 0x217   :  { %4376 = vmatpush2.bf16.msra.mxu1 %v5248_v17  ;;  %4701 = vst [vmem:[#allocation8 + $0x68] sm:$0xff] %v5295_v54  ;;  %v501_v15 = vld [vmem:[#allocation5 + $0xaf8] sm:$0xff] }
 0x218   :  { %5384 = vtanh.f32 %v3846_v30  ;;  %4377 = vmatprep.subr.bf16.mxu1 %v5241_v10  ;;  %v5373_v14 = vpop.eup %5372  ;;  %v625_v59 = vld [vmem:[#allocation5 + $0xed8] sm:$0xff]  ;;  %v5089_v8 = vcombine.high %v497_v4, %v501_v15  ;;  %v5088_v29 = vcombine.low %v497_v4, %v501_v15 }
 0x219   :  { %v5299_v26 = vpack.c.bf16 %v5373_v14, %v5371_v36  ;;  %4305 = vmatpush2.bf16.msra.mxu0 %v5112_v25  ;;  %v629_v6 = vld [vmem:[#allocation5 + $0xef8] sm:$0xff]  ;;  %v6491_v36 = vld [vmem:[#allocation23_spill] sm:$0xff] }
 0x21a   :  { %4306 = vmatprep.subr.bf16.mxu0 %v5105_v5  ;;  %v5217_v24 = vcombine.high %v625_v59, %v629_v6  ;;  %v489_v22 = vld [vmem:[#allocation5 + $0xa98] sm:$0xff]  ;;  %v5216_v9 = vcombine.low %v625_v59, %v629_v6  ;;  %v6499_v59 = vld [vmem:[#allocation31_spill] sm:$0xff] }
 0x21b   :  { %4378 = vmatpush2.bf16.msra.mxu1 %v5240_v42  ;;  %v5375_v49 = vpop.eup %5374  ;;  %4705 = vst [vmem:[#allocation8 + $0x88] sm:$0xff] %v5299_v26  ;;  %v493_v13 = vld [vmem:[#allocation5 + $0xab8] sm:$0xff] }
 0x21c   :  { %4379 = vmatprep.subr.bf16.mxu1 %v5233_v48  ;;  %v617_v60 = vld [vmem:[#allocation5 + $0xe98] sm:$0xff]  ;;  %v5081_v41 = vcombine.high %v489_v22, %v493_v13  ;;  %v5080_v12 = vcombine.low %v489_v22, %v493_v13  ;;  %v6492_v48 = vld [vmem:[#allocation24_spill] sm:$0xff] }
 0x21d   :  { %v5377_v3 = vpop.eup %5376  ;;  %4307 = vmatpush2.bf16.msra.mxu0 %v5104_v51  ;;  %v621_v23 = vld [vmem:[#allocation5 + $0xeb8] sm:$0xff]  ;;  %v6495_v51 = vld [vmem:[#allocation27_spill] sm:$0xff] }
 0x21e   :  { %v5303_v11 = vpack.c.bf16 %v5377_v3, %v5375_v49  ;;  %4308 = vmatprep.subr.bf16.mxu0 %v5097_v58  ;;  %v5209_v31 = vcombine.high %v617_v60, %v621_v23  ;;  %v481_v19 = vld [vmem:[#allocation5 + $0xa58] sm:$0xff]  ;;  %v5208_v63 = vcombine.low %v617_v60, %v621_v23  ;;  %v6497_v58 = vld [vmem:[#allocation29_spill] sm:$0xff] }
 0x21f   :  { %4380 = vmatpush2.bf16.msra.mxu1 %v5232_v32  ;;  %v5379_v56 = vpop.eup %5378  ;;  %v485_v35 = vld [vmem:[#allocation5 + $0xa78] sm:$0xff]  ;;  %v6496_v32 = vld [vmem:[#allocation28_spill] sm:$0xff] }
 0x220   :  { %4709 = vst [vmem:[#allocation8 + $0xa8] sm:$0xff] %v5303_v11  ;;  %4381 = vmatprep.subr.bf16.mxu1 %v5225_v0  ;;  %v609_v18 = vld [vmem:[#allocation5 + $0xe58] sm:$0xff]  ;;  %v5073_v47 = vcombine.high %v481_v19, %v485_v35  ;;  %v5072_v55 = vcombine.low %v481_v19, %v485_v35 }
 0x221   :  { %v5381_v37 = vpop.eup %5380  ;;  %4309 = vmatpush2.bf16.msra.mxu0 %v5096_v61  ;;  %v613_v16 = vld [vmem:[#allocation5 + $0xe78] sm:$0xff] }
 0x222   :  { %v5307_v27 = vpack.c.bf16 %v5381_v37, %v5379_v56  ;;  %4310 = vmatprep.subr.bf16.mxu0 %v5089_v8  ;;  %v5201_v20 = vcombine.high %v609_v18, %v613_v16  ;;  %v473_v53 = vld [vmem:[#allocation5 + $0xa18] sm:$0xff]  ;;  %v5200_v38 = vcombine.low %v609_v18, %v613_v16 }
 0x223   :  { %4382 = vmatpush2.bf16.msra.mxu1 %v5224_v34  ;;  %v5383_v1 = vpop.eup %5382  ;;  %v477_v46 = vld [vmem:[#allocation5 + $0xa38] sm:$0xff] }
 0x224   :  { %4713 = vst [vmem:[#allocation8 + $0xc8] sm:$0xff] %v5307_v27  ;;  %4383 = vmatprep.subr.bf16.mxu1 %v5217_v24  ;;  %v601_v17 = vld [vmem:[#allocation5 + $0xe18] sm:$0xff]  ;;  %v5065_v45 = vcombine.high %v473_v53, %v477_v46  ;;  %v5064_v10 = vcombine.low %v473_v53, %v477_v46 }
 0x225   :  { %v5385_v52 = vpop.eup %5384  ;;  %4311 = vmatpush2.bf16.msra.mxu0 %v5088_v29  ;;  %v605_v21 = vld [vmem:[#allocation5 + $0xe38] sm:$0xff]  ;;  %v6500_v29 = vld [vmem:[#allocation32_spill] sm:$0xff] }
 0x226   :  { %v5311_v57 = vpack.c.bf16 %v5385_v52, %v5383_v1  ;;  %4312 = vmatprep.subr.bf16.mxu0 %v5081_v41  ;;  %v5193_v28 = vcombine.high %v601_v17, %v605_v21  ;;  %v5192_v2 = vcombine.low %v601_v17, %v605_v21  ;;  %v6486_v50 = vld [vmem:[#allocation18_spill] sm:$0xff]  ;;  %v686_v1 = vsub.s32 5, %v6500_v29 }
 0x227   :  { %4384 = vmatpush2.bf16.msra.mxu1 %v5216_v9  ;;  %v6490_v42 = vld [vmem:[#allocation22_spill] sm:$0xff]  ;;  %v682_v9 = vsub.s32 4, %v6500_v29 }
 0x228   :  { %4717 = vst [vmem:[#allocation8 + $0xe8] sm:$0xff] %v5311_v57  ;;  %4385 = vmatprep.subr.bf16.mxu1 %v5209_v31  ;;  %v6494_v44 = vld [vmem:[#allocation26_spill] sm:$0xff] }
 0x229   :  { %4313 = vmatpush2.bf16.msra.mxu0 %v5080_v12  ;;  %v6498_v3 = vld [vmem:[#allocation30_spill] sm:$0xff] }
 0x22a   :  { %4314 = vmatprep.subr.bf16.mxu0 %v5073_v47  ;;  %v6501_v19 = vld [vmem:[#allocation34_spill] sm:$0xff] }
 0x22b   :  { %4386 = vmatpush2.bf16.msra.mxu1 %v5208_v63  ;;  %v6261_v35 = vrot.slane %v6501_v19, %v682_v9  ;;  %v6266_v18 = vrot.slane %v6501_v19, %v686_v1 }
 0x22c   :  { %4387 = vmatprep.subr.bf16.mxu1 %v5201_v20 }
 0x22d   :  { %4315 = vmatpush2.bf16.msra.mxu0 %v5072_v55 }
 0x22e   :  { %4316 = vmatprep.subr.bf16.mxu0 %v5065_v45 }
 0x22f   :  { %4388 = vmatpush2.bf16.msra.mxu1 %v5200_v38 }
 0x230   :  { %4389 = vmatprep.subr.bf16.mxu1 %v5193_v28 }
 0x231   :  { %4317 = vmatpush2.bf16.msra.mxu0 %v5064_v10 }
 0x233   :  { %4390 = vmatpush2.bf16.msra.mxu1 %v5192_v2 }
 0x234   :  { %4319 = vmatmul.mubr.bf16.vlgmr.msra.gmra.mxu0 %v6486_v50  ;;  %v3882_v54 = vpop.f32.mrf.mxu0 }
 0x235   :  { %4328 = vmatprep.mubr.bf16.mxu0 %v6488_v39  ;;  %v3883_v57 = vadd.f32 %v3882_v54, %v6261_v35 }
 0x236   :  { %4392 = vmatmul.mubr.bf16.vlgmr.msra.gmra.mxu1 %v6487_v40  ;;  %v3955_v30 = vpop.f32.mrf.mxu1  ;;  %v3884_v25 = vpop.f32.mrf.mxu0 }
 0x237   :  { %4401 = vmatprep.mubr.bf16.mxu1 %v6489_v43  ;;  %v3885_v63 = vadd.f32 %v3884_v25, %v6266_v18  ;;  %v3956_v20 = vadd.f32 %v3955_v30, %v3883_v57 }
 0x238   :  { %v3957_v5 = vpop.f32.mrf.mxu1  ;;  %v3886_v62 = vpop.f32.mrf.mxu0 }
 0x239   :  { %v3887_v53 = vadd.f32 %v3886_v62, %v6261_v35  ;;  %v3958_v21 = vadd.f32 %v3957_v5, %v3885_v63 }
 0x23a   :  { %v3959_v14 = vpop.f32.mrf.mxu1  ;;  %v3888_v7 = vpop.f32.mrf.mxu0 }
 0x23b   :  { %v3889_v55 = vadd.f32 %v3888_v7, %v6266_v18  ;;  %v3960_v2 = vadd.f32 %v3959_v14, %v3887_v53 }
 0x23c   :  { %4329 = vmatmul.mubr.bf16.gmra.mxu0 %v6490_v42  ;;  %v3961_v26 = vpop.f32.mrf.mxu1  ;;  %v3892_v49 = vpop.f32.mrf.mxu0 }
 0x23d   :  { %4338 = vmatprep.mubr.bf16.mxu0 %v6492_v48  ;;  %v3893_v28 = vadd.f32 %v3892_v49, %v6261_v35  ;;  %v3962_v54 = vadd.f32 %v3961_v26, %v3889_v55 }
 0x23e   :  { %4402 = vmatmul.mubr.bf16.gmra.mxu1 %v6491_v36  ;;  %v3965_v0 = vpop.f32.mrf.mxu1  ;;  %v3894_v4 = vpop.f32.mrf.mxu0 }
 0x23f   :  { %4411 = vmatprep.mubr.bf16.mxu1 %v6493_v33  ;;  %v3895_v30 = vadd.f32 %v3894_v4, %v6266_v18  ;;  %v3966_v48 = vadd.f32 %v3965_v0, %v3893_v28 }
 0x240   :  { %v3967_v15 = vpop.f32.mrf.mxu1  ;;  %v3896_v6 = vpop.f32.mrf.mxu0 }
 0x241   :  { %v3897_v33 = vadd.f32 %v3896_v6, %v6261_v35 }
 0x242   :  { %v3969_v11 = vpop.f32.mrf.mxu1  ;;  %v3898_v61 = vpop.f32.mrf.mxu0 }
 0x243   :  { %v3970_v0 = vadd.f32 %v3969_v11, %v3897_v33 }
 0x244   :  { %4339 = vmatmul.mubr.bf16.gmra.mxu0 %v6494_v44  ;;  %v6236_v34 = vpop.f32.mrf.mxu1  ;;  %v3902_v8 = vpop.f32.mrf.mxu0 }
 0x245   :  { %4348 = vmatprep.mubr.bf16.mxu0 %v6496_v32  ;;  %v3899_v32 = vadd.f32 %v3898_v61, %v6266_v18  ;;  %v3903_v4 = vadd.f32 %v3902_v8, %v6261_v35 }
 0x246   :  { %4412 = vmatmul.mubr.bf16.gmra.mxu1 %v6495_v51  ;;  %v6238_v56 = vpop.f32.mrf.mxu1  ;;  %v6240_v24 = vpop.f32.mrf.mxu0  ;;  %v3968_v51 = vadd.f32 %v3967_v15, %v3895_v30 }
 0x247   :  { %4421 = vmatprep.mubr.bf16.mxu1 %v6497_v58  ;;  %v3972_v19 = vadd.f32 %v6236_v34, %v3899_v32  ;;  %v3905_v15 = vadd.f32 %v6240_v24, %v6266_v18 }
 0x248   :  { %v6242_v22 = vpop.f32.mrf.mxu1  ;;  %v6244_v13 = vpop.f32.mrf.mxu0 }
 0x249   :  { %v3907_v11 = vadd.f32 %v6244_v13, %v6261_v35  ;;  %v3978_v34 = vadd.f32 %v6242_v22, %v3905_v15 }
 0x24a   :  { %v6246_v37 = vpop.f32.mrf.mxu1  ;;  %v6248_v60 = vpop.f32.mrf.mxu0 }
 0x24b   :  { %v3909_v24 = vadd.f32 %v6248_v60, %v6266_v18  ;;  %v3980_v13 = vadd.f32 %v6246_v37, %v3907_v11 }
 0x24c   :  { %4349 = vmatmul.mubr.bf16.gmra.mxu0 %v6498_v3  ;;  %v6250_v23 = vpop.f32.mrf.mxu1  ;;  %v6252_v27 = vpop.f32.mrf.mxu0 }
 0x24e   :  { %4422 = vmatmul.mubr.bf16.gmra.mxu1 %v6499_v59  ;;  %v6255_v41 = vpop.f32.mrf.mxu1  ;;  %v6258_v31 = vpop.f32.mrf.mxu0 }
 0x24f   :  { %v3915_v22 = vadd.f32 %v6258_v31, %v6266_v18 }
 0x250   :  { %v6263_v52 = vpop.f32.mrf.mxu1  ;;  %v6268_v16 = vpop.f32.mrf.mxu0 }
 0x252   :  { %v6271_v12 = vpop.f32.mrf.mxu1  ;;  %v6274_v47 = vpop.f32.mrf.mxu0 }
 0x254   :  { %v6277_v46 = vpop.f32.mrf.mxu1 }
 0x274   :  { %v4028_v17 = vpop.f32.mrf.mxu0 }
 0x275   :  { %v4029_v38 = vadd.f32 %v4028_v17, %v3956_v20  ;;  %v3976_v20 = vadd.f32 %v6238_v56, %v3903_v4  ;;  %v3913_v56 = vadd.f32 %v6252_v27, %v6261_v35 }
 0x276   :  { %v4101_v45 = vpop.f32.mrf.mxu1  ;;  %v4030_v10 = vpop.f32.mrf.mxu0 }
 0x277   :  { %v4102_v50 = vadd.f32 %v4101_v45, %v4029_v38  ;;  %v4031_v40 = vadd.f32 %v4030_v10, %v3958_v21 }
 0x278   :  { %v4103_v39 = vpop.f32.mrf.mxu1  ;;  %v4032_v43 = vpop.f32.mrf.mxu0 }
 0x279   :  { %v4104_v25 = vadd.f32 %v4103_v39, %v4031_v40  ;;  %v4033_v42 = vadd.f32 %v4032_v43, %v3960_v2  ;;  %5386 = vtanh.f32 %v4102_v50 }
 0x27a   :  { %v4105_v36 = vpop.f32.mrf.mxu1  ;;  %v4034_v5 = vpop.f32.mrf.mxu0 }
 0x27b   :  { %5388 = vtanh.f32 %v4104_v25  ;;  %v4106_v62 = vadd.f32 %v4105_v36, %v4033_v42  ;;  %v4035_v7 = vadd.f32 %v4034_v5, %v3962_v54  ;;  %v3982_v54 = vadd.f32 %v6250_v23, %v3909_v24 }
 0x27c   :  { %v4107_v44 = vpop.f32.mrf.mxu1  ;;  %v4038_v14 = vpop.f32.mrf.mxu0  ;;  %v3986_v36 = vadd.f32 %v6255_v41, %v3913_v56  ;;  %v3917_v5 = vadd.f32 %v6268_v16, %v6261_v35  ;;  %v3988_v23 = vadd.f32 %v6263_v52, %v3915_v22 }
 0x27d   :  { %v4108_v58 = vadd.f32 %v4107_v44, %v4035_v7  ;;  %v4039_v26 = vadd.f32 %v4038_v14, %v3966_v48  ;;  %5390 = vtanh.f32 %v4106_v62  ;;  %v3919_v14 = vadd.f32 %v6274_v47, %v6266_v18 }
 0x27e   :  { %v4111_v49 = vpop.f32.mrf.mxu1  ;;  %v4040_v3 = vpop.f32.mrf.mxu0  ;;  %v3990_v35 = vadd.f32 %v6271_v12, %v3917_v5 }
 0x27f   :  { %5392 = vtanh.f32 %v4108_v58  ;;  %v4041_v59 = vadd.f32 %v4040_v3, %v3968_v51  ;;  %v4112_v9 = vadd.f32 %v4111_v49, %v4039_v26 }
 0x280   :  { %v4113_v6 = vpop.f32.mrf.mxu1  ;;  %v4042_v1 = vpop.f32.mrf.mxu0 }
 0x281   :  { %v4043_v57 = vadd.f32 %v4042_v1, %v3970_v0  ;;  %v4114_v61 = vadd.f32 %v4113_v6, %v4041_v59  ;;  %5394 = vtanh.f32 %v4112_v9  ;;  %v3992_v59 = vadd.f32 %v6277_v46, %v3919_v14 }
 0x282   :  { %v4115_v63 = vpop.f32.mrf.mxu1  ;;  %v4044_v8 = vpop.f32.mrf.mxu0  ;;  %v690_v14 = vsub.s32 6, %v6500_v29 }
 0x283   :  { %5396 = vtanh.f32 %v4114_v61  ;;  %v4045_v53 = vadd.f32 %v4044_v8, %v3972_v19  ;;  %v4116_v17 = vadd.f32 %v4115_v63, %v4043_v57 }
 0x284   :  { %v4117_v21 = vpop.f32.mrf.mxu1  ;;  %v4048_v55 = vpop.f32.mrf.mxu0 }
 0x285   :  { %v4049_v38 = vadd.f32 %v4048_v55, %v3976_v20  ;;  %v4118_v45 = vadd.f32 %v4117_v21, %v4045_v53  ;;  %5398 = vtanh.f32 %v4116_v17 }
 0x286   :  { %v4121_v28 = vpop.f32.mrf.mxu1  ;;  %v4050_v10 = vpop.f32.mrf.mxu0 }
 0x287   :  { %v5387_v2 = vpop.eup %5386  ;;  %5400 = vtanh.f32 %v4118_v45  ;;  %v4051_v50 = vadd.f32 %v4050_v10, %v3978_v34  ;;  %v4122_v40 = vadd.f32 %v4121_v28, %v4049_v38 }
 0x288   :  { %v4123_v39 = vpop.f32.mrf.mxu1  ;;  %v5389_v43 = vpop.eup %5388 }
 0x289   :  { %v4052_v60 = vpop.f32.mrf.mxu0  ;;  %v5284_v30 = vpack.c.bf16 %v5389_v43, %v5387_v2  ;;  %v4124_v42 = vadd.f32 %v4123_v39, %v4051_v50  ;;  %5402 = vtanh.f32 %v4122_v40 }
 0x28a   :  { %v4053_v25 = vadd.f32 %v4052_v60, %v3980_v13  ;;  %v4125_v27 = vpop.f32.mrf.mxu1  ;;  %v5391_v37 = vpop.eup %5390 }
 0x28b   :  { %v4054_v48 = vpop.f32.mrf.mxu0  ;;  %4690 = vst [vmem:[#allocation8 + $0x10] sm:$0xff] %v5284_v30  ;;  %5404 = vtanh.f32 %v4124_v42 }
 0x28c   :  { %v4055_v33 = vadd.f32 %v4054_v48, %v3982_v54  ;;  %v4126_v62 = vadd.f32 %v4125_v27, %v4053_v25  ;;  %v4127_v31 = vpop.f32.mrf.mxu1  ;;  %v5393_v7 = vpop.eup %5392 }
 0x28d   :  { %v4058_v44 = vpop.f32.mrf.mxu0  ;;  %v5288_v51 = vpack.c.bf16 %v5393_v7, %v5391_v37 }
 0x28e   :  { %v4059_v41 = vadd.f32 %v4058_v44, %v3986_v36  ;;  %v4128_v32 = vadd.f32 %v4127_v31, %v4055_v33  ;;  %v4131_v58 = vpop.f32.mrf.mxu1  ;;  %5406 = vtanh.f32 %v4126_v62  ;;  %v5395_v49 = vpop.eup %5394 }
 0x28f   :  { %v4060_v26 = vpop.f32.mrf.mxu0  ;;  %4694 = vst [vmem:[#allocation8 + $0x30] sm:$0xff] %v5288_v51 }
 0x290   :  { %5408 = vtanh.f32 %v4128_v32  ;;  %v4061_v16 = vadd.f32 %v4060_v26, %v3988_v23  ;;  %v4132_v4 = vadd.f32 %v4131_v58, %v4059_v41  ;;  %v4133_v3 = vpop.f32.mrf.mxu1  ;;  %v5397_v0 = vpop.eup %5396  ;;  %v694_v41 = vsub.s32 7, %v6500_v29  ;;  %v5451_v58 = vld [vmem:[#allocation7] sm:$0xff] }
 0x291   :  { %v4062_v52 = vpop.f32.mrf.mxu0  ;;  %v5292_v9 = vpack.c.bf16 %v5397_v0, %v5395_v49  ;;  %v6332_v26 = vrot.slane %v5451_v58, %v690_v14 }
 0x292   :  { %v4063_v18 = vadd.f32 %v4062_v52, %v3990_v35  ;;  %v4134_v47 = vadd.f32 %v4133_v3, %v4061_v16  ;;  %v4135_v6 = vpop.f32.mrf.mxu1  ;;  %5410 = vtanh.f32 %v4132_v4  ;;  %v5399_v19 = vpop.eup %5398  ;;  %v6336_v35 = vrot.slane %v5451_v58, %v694_v41 }
 0x293   :  { %v4064_v1 = vpop.f32.mrf.mxu0  ;;  %4698 = vst [vmem:[#allocation8 + $0x50] sm:$0xff] %v5292_v9 }
 0x294   :  { %5412 = vtanh.f32 %v4134_v47  ;;  %v4065_v15 = vadd.f32 %v4064_v1, %v3992_v59  ;;  %v4136_v12 = vadd.f32 %v4135_v6, %v4063_v18  ;;  %v4137_v57 = vpop.f32.mrf.mxu1  ;;  %v5401_v61 = vpop.eup %5400 }
 0x295   :  { %v5296_v63 = vpack.c.bf16 %v5401_v61, %v5399_v19 }
 0x296   :  { %v4138_v20 = vadd.f32 %v4137_v57, %v4065_v15  ;;  %5414 = vtanh.f32 %v4136_v12  ;;  %v5403_v8 = vpop.eup %5402 }
 0x297   :  { %4702 = vst [vmem:[#allocation8 + $0x70] sm:$0xff] %v5296_v63 }
 0x298   :  { %5416 = vtanh.f32 %v4138_v20  ;;  %v5405_v46 = vpop.eup %5404 }
 0x299   :  { %v5300_v11 = vpack.c.bf16 %v5405_v46, %v5403_v8 }
 0x29b   :  { %v5407_v53 = vpop.eup %5406  ;;  %4706 = vst [vmem:[#allocation8 + $0x90] sm:$0xff] %v5300_v11 }
 0x29d   :  { %v5409_v17 = vpop.eup %5408 }
 0x29e   :  { %v5304_v21 = vpack.c.bf16 %v5409_v17, %v5407_v53 }
 0x29f   :  { %v5411_v55 = vpop.eup %5410 }
 0x2a0   :  { %4710 = vst [vmem:[#allocation8 + $0xb0] sm:$0xff] %v5304_v21 }
 0x2a1   :  { %v5413_v34 = vpop.eup %5412 }
 0x2a2   :  { %v5308_v24 = vpack.c.bf16 %v5413_v34, %v5411_v55 }
 0x2a3   :  { %v5415_v38 = vpop.eup %5414 }
 0x2a4   :  { %4714 = vst [vmem:[#allocation8 + $0xd0] sm:$0xff] %v5308_v24 }
 0x2a5   :  { %v5417_v45 = vpop.eup %5416 }
 0x2a6   :  { %v5312_v28 = vpack.c.bf16 %v5417_v45, %v5415_v38 }
 0x2a8   :  { %4718 = vst [vmem:[#allocation8 + $0xf0] sm:$0xff] %v5312_v28 }
 0x2b4   :  { %v4174_v56 = vpop.f32.mrf.mxu0 }
 0x2b5   :  { %v4175_v4 = vadd.f32 %v4174_v56, %v6332_v26 }
 0x2b6   :  { %v4247_v10 = vpop.f32.mrf.mxu1  ;;  %v4176_v2 = vpop.f32.mrf.mxu0 }
 0x2b7   :  { %v4177_v0 = vadd.f32 %v4176_v2, %v6336_v35  ;;  %v4248_v29 = vadd.f32 %v4247_v10, %v4175_v4 }
 0x2b8   :  { %v4249_v13 = vpop.f32.mrf.mxu1  ;;  %v4178_v50 = vpop.f32.mrf.mxu0 }
 0x2b9   :  { %v4179_v59 = vadd.f32 %v4178_v50, %v6332_v26  ;;  %v4250_v47 = vadd.f32 %v4249_v13, %v4177_v0 }
 0x2ba   :  { %v4251_v40 = vpop.f32.mrf.mxu1  ;;  %v4180_v39 = vpop.f32.mrf.mxu0 }
 0x2bb   :  { %v4181_v6 = vadd.f32 %v4180_v39, %v6336_v35  ;;  %v4252_v57 = vadd.f32 %v4251_v40, %v4179_v59 }
 0x2bc   :  { %v4253_v43 = vpop.f32.mrf.mxu1  ;;  %v4184_v22 = vpop.f32.mrf.mxu0 }
 0x2bd   :  { %v4185_v15 = vadd.f32 %v4184_v22, %v6332_v26  ;;  %v4254_v46 = vadd.f32 %v4253_v43, %v4181_v6 }
 0x2be   :  { %v4257_v60 = vpop.f32.mrf.mxu1  ;;  %v4186_v54 = vpop.f32.mrf.mxu0 }
 0x2bf   :  { %v4187_v11 = vadd.f32 %v4186_v54, %v6336_v35  ;;  %v4258_v55 = vadd.f32 %v4257_v60, %v4185_v15 }
 0x2c0   :  { %v4259_v30 = vpop.f32.mrf.mxu1  ;;  %v4188_v25 = vpop.f32.mrf.mxu0 }
 0x2c1   :  { %v4189_v24 = vadd.f32 %v4188_v25, %v6332_v26  ;;  %v4260_v10 = vadd.f32 %v4259_v30, %v4187_v11 }
 0x2c2   :  { %v4261_v42 = vpop.f32.mrf.mxu1  ;;  %v4190_v27 = vpop.f32.mrf.mxu0 }
 0x2c3   :  { %v4191_v2 = vadd.f32 %v4190_v27, %v6336_v35  ;;  %v4262_v22 = vadd.f32 %v4261_v42, %v4189_v24 }
 0x2c4   :  { %v6308_v36 = vpop.f32.mrf.mxu1  ;;  %v4194_v48 = vpop.f32.mrf.mxu0 }
 0x2c5   :  { %v4195_v39 = vadd.f32 %v4194_v48, %v6332_v26  ;;  %v4264_v41 = vadd.f32 %v6308_v36, %v4191_v2 }
 0x2c6   :  { %v6310_v37 = vpop.f32.mrf.mxu1  ;;  %v6312_v5 = vpop.f32.mrf.mxu0 }
 0x2c7   :  { %v4197_v30 = vadd.f32 %v6312_v5, %v6336_v35  ;;  %v4268_v0 = vadd.f32 %v6310_v37, %v4195_v39 }
 0x2c8   :  { %v6314_v33 = vpop.f32.mrf.mxu1  ;;  %v6316_v62 = vpop.f32.mrf.mxu0 }
 0x2c9   :  { %v4199_v42 = vadd.f32 %v6316_v62, %v6332_v26  ;;  %v4270_v36 = vadd.f32 %v6314_v33, %v4197_v30 }
 0x2ca   :  { %v6318_v31 = vpop.f32.mrf.mxu1  ;;  %v6320_v7 = vpop.f32.mrf.mxu0 }
 0x2cb   :  { %v4201_v5 = vadd.f32 %v6320_v7, %v6336_v35  ;;  %v4272_v62 = vadd.f32 %v6318_v31, %v4199_v42 }
 0x2cc   :  { %v6322_v23 = vpop.f32.mrf.mxu1  ;;  %v6324_v44 = vpop.f32.mrf.mxu0 }
 0x2cd   :  { %v4205_v37 = vadd.f32 %v6324_v44, %v6332_v26 }
 0x2ce   :  { %v6327_v51 = vpop.f32.mrf.mxu1  ;;  %v6330_v32 = vpop.f32.mrf.mxu0 }
 0x2cf   :  { %v4207_v33 = vadd.f32 %v6330_v32, %v6336_v35 }
 0x2d0   :  { %v6334_v49 = vpop.f32.mrf.mxu1  ;;  %v6338_v16 = vpop.f32.mrf.mxu0 }
 0x2d2   :  { %v6341_v3 = vpop.f32.mrf.mxu1  ;;  %v6344_v52 = vpop.f32.mrf.mxu0 }
 0x2d4   :  { %v6347_v9 = vpop.f32.mrf.mxu1 }
 0x2f4   :  { %v4320_v18 = vpop.f32.mrf.mxu0 }
 0x2f5   :  { %v4321_v1 = vadd.f32 %v4320_v18, %v4248_v29 }
 0x2f6   :  { %v4393_v19 = vpop.f32.mrf.mxu1  ;;  %v4322_v12 = vpop.f32.mrf.mxu0 }
 0x2f7   :  { %v4394_v61 = vadd.f32 %v4393_v19, %v4321_v1  ;;  %v4323_v63 = vadd.f32 %v4322_v12, %v4250_v47 }
 0x2f8   :  { %v4395_v20 = vpop.f32.mrf.mxu1  ;;  %v4324_v8 = vpop.f32.mrf.mxu0 }
 0x2f9   :  { %v4396_v53 = vadd.f32 %v4395_v20, %v4323_v63  ;;  %v4325_v17 = vadd.f32 %v4324_v8, %v4252_v57  ;;  %5418 = vtanh.f32 %v4394_v61  ;;  %v4274_v8 = vadd.f32 %v6322_v23, %v4201_v5 }
 0x2fa   :  { %v4397_v21 = vpop.f32.mrf.mxu1  ;;  %v4326_v34 = vpop.f32.mrf.mxu0  ;;  %v4280_v23 = vadd.f32 %v6334_v49, %v4207_v33 }
 0x2fb   :  { %5420 = vtanh.f32 %v4396_v53  ;;  %v4398_v38 = vadd.f32 %v4397_v21, %v4325_v17  ;;  %v4327_v45 = vadd.f32 %v4326_v34, %v4254_v46  ;;  %v4278_v17 = vadd.f32 %v6327_v51, %v4205_v37 }
 0x2fc   :  { %v4399_v28 = vpop.f32.mrf.mxu1  ;;  %v4330_v56 = vpop.f32.mrf.mxu0 }
 0x2fd   :  { %v4400_v13 = vadd.f32 %v4399_v28, %v4327_v45  ;;  %v4331_v50 = vadd.f32 %v4330_v56, %v4258_v55  ;;  %5422 = vtanh.f32 %v4398_v38  ;;  %v4209_v55 = vadd.f32 %v6338_v16, %v6332_v26 }
 0x2fe   :  { %v4403_v40 = vpop.f32.mrf.mxu1  ;;  %v4332_v43 = vpop.f32.mrf.mxu0  ;;  %v4211_v28 = vadd.f32 %v6344_v52, %v6336_v35 }
 0x2ff   :  { %5424 = vtanh.f32 %v4400_v13  ;;  %v4404_v60 = vadd.f32 %v4403_v40, %v4331_v50  ;;  %v4333_v54 = vadd.f32 %v4332_v43, %v4260_v10  ;;  %v4282_v26 = vadd.f32 %v6341_v3, %v4209_v55 }
 0x300   :  { %v4405_v25 = vpop.f32.mrf.mxu1  ;;  %v4334_v14 = vpop.f32.mrf.mxu0 }
 0x301   :  { %v4406_v58 = vadd.f32 %v4405_v25, %v4333_v54  ;;  %v4335_v27 = vadd.f32 %v4334_v14, %v4262_v22  ;;  %5426 = vtanh.f32 %v4404_v60  ;;  %v4284_v22 = vadd.f32 %v6347_v9, %v4211_v28 }
 0x302   :  { %v4407_v4 = vpop.f32.mrf.mxu1  ;;  %v4336_v48 = vpop.f32.mrf.mxu0 }
 0x303   :  { %5428 = vtanh.f32 %v4406_v58  ;;  %v4408_v29 = vadd.f32 %v4407_v4, %v4335_v27  ;;  %v4337_v59 = vadd.f32 %v4336_v48, %v4264_v41 }
 0x304   :  { %v4409_v18 = vpop.f32.mrf.mxu1  ;;  %v4340_v47 = vpop.f32.mrf.mxu0 }
 0x305   :  { %v4410_v6 = vadd.f32 %v4409_v18, %v4337_v59  ;;  %v4341_v1 = vadd.f32 %v4340_v47, %v4268_v0  ;;  %5430 = vtanh.f32 %v4408_v29 }
 0x306   :  { %v4413_v19 = vpop.f32.mrf.mxu1  ;;  %v4342_v15 = vpop.f32.mrf.mxu0 }
 0x307   :  { %v5419_v12 = vpop.eup %5418  ;;  %5432 = vtanh.f32 %v4410_v6  ;;  %v4414_v57 = vadd.f32 %v4413_v19, %v4341_v1  ;;  %v4343_v61 = vadd.f32 %v4342_v15, %v4270_v36 }
 0x308   :  { %v4415_v63 = vpop.f32.mrf.mxu1  ;;  %v5421_v20 = vpop.eup %5420 }
 0x309   :  { %v4344_v7 = vpop.f32.mrf.mxu0  ;;  %v5285_v46 = vpack.c.bf16 %v5421_v20, %v5419_v12  ;;  %v4416_v11 = vadd.f32 %v4415_v63, %v4343_v61  ;;  %5434 = vtanh.f32 %v4414_v57 }
 0x30a   :  { %v4345_v53 = vadd.f32 %v4344_v7, %v4272_v62  ;;  %v4417_v44 = vpop.f32.mrf.mxu1  ;;  %v5423_v31 = vpop.eup %5422 }
 0x30b   :  { %v4346_v21 = vpop.f32.mrf.mxu0  ;;  %4691 = vst [vmem:[#allocation8 + $0x18] sm:$0xff] %v5285_v46  ;;  %5436 = vtanh.f32 %v4416_v11 }
 0x30c   :  { %v4418_v34 = vadd.f32 %v4417_v44, %v4345_v53  ;;  %v4347_v24 = vadd.f32 %v4346_v21, %v4274_v8  ;;  %v4419_v32 = vpop.f32.mrf.mxu1  ;;  %v5425_v38 = vpop.eup %5424 }
 0x30d   :  { %v4350_v45 = vpop.f32.mrf.mxu0  ;;  %v5289_v56 = vpack.c.bf16 %v5425_v38, %v5423_v31 }
 0x30e   :  { %v4420_v51 = vadd.f32 %v4419_v32, %v4347_v24  ;;  %v4351_v10 = vadd.f32 %v4350_v45, %v4278_v17  ;;  %v4423_v2 = vpop.f32.mrf.mxu1  ;;  %5438 = vtanh.f32 %v4418_v34  ;;  %v5427_v50 = vpop.eup %5426 }
 0x30f   :  { %v4352_v13 = vpop.f32.mrf.mxu0  ;;  %4695 = vst [vmem:[#allocation8 + $0x38] sm:$0xff] %v5289_v56 }
 0x310   :  { %5440 = vtanh.f32 %v4420_v51  ;;  %v4424_v16 = vadd.f32 %v4423_v2, %v4351_v10  ;;  %v4353_v40 = vadd.f32 %v4352_v13, %v4280_v23  ;;  %v4425_v39 = vpop.f32.mrf.mxu1  ;;  %v5429_v43 = vpop.eup %5428 }
 0x311   :  { %v4354_v49 = vpop.f32.mrf.mxu0  ;;  %v5293_v60 = vpack.c.bf16 %v5429_v43, %v5427_v50 }
 0x312   :  { %v4426_v35 = vadd.f32 %v4425_v39, %v4353_v40  ;;  %v4355_v52 = vadd.f32 %v4354_v49, %v4282_v26  ;;  %v4427_v54 = vpop.f32.mrf.mxu1  ;;  %5442 = vtanh.f32 %v4424_v16  ;;  %v5431_v14 = vpop.eup %5430 }
 0x313   :  { %v4356_v25 = vpop.f32.mrf.mxu0  ;;  %4699 = vst [vmem:[#allocation8 + $0x58] sm:$0xff] %v5293_v60 }
 0x314   :  { %5444 = vtanh.f32 %v4426_v35  ;;  %v4428_v41 = vadd.f32 %v4427_v54, %v4355_v52  ;;  %v4357_v3 = vadd.f32 %v4356_v25, %v4284_v22  ;;  %v5433_v30 = vpop.eup %5432  ;;  %v4429_v58 = vpop.f32.mrf.mxu1 }
 0x315   :  { %v5297_v27 = vpack.c.bf16 %v5433_v30, %v5431_v14 }
 0x316   :  { %v4430_v4 = vadd.f32 %v4429_v58, %v4357_v3  ;;  %5446 = vtanh.f32 %v4428_v41  ;;  %v5435_v0 = vpop.eup %5434 }
 0x317   :  { %4703 = vst [vmem:[#allocation8 + $0x78] sm:$0xff] %v5297_v27 }
 0x318   :  { %5448 = vtanh.f32 %v4430_v4  ;;  %v5437_v9 = vpop.eup %5436 }
 0x319   :  { %v5301_v48 = vpack.c.bf16 %v5437_v9, %v5435_v0 }
 0x31b   :  { %v5439_v42 = vpop.eup %5438  ;;  %4707 = vst [vmem:[#allocation8 + $0x98] sm:$0xff] %v5301_v48 }
 0x31d   :  { %v5441_v29 = vpop.eup %5440 }
 0x31e   :  { %v5305_v59 = vpack.c.bf16 %v5441_v29, %v5439_v42 }
 0x31f   :  { %v5443_v18 = vpop.eup %5442 }
 0x320   :  { %4711 = vst [vmem:[#allocation8 + $0xb8] sm:$0xff] %v5305_v59 }
 0x321   :  { %v5445_v47 = vpop.eup %5444 }
 0x322   :  { %v5309_v36 = vpack.c.bf16 %v5445_v47, %v5443_v18 }
 0x323   :  { %v5447_v5 = vpop.eup %5446 }
 0x324   :  { %4715 = vst [vmem:[#allocation8 + $0xd8] sm:$0xff] %v5309_v36 }
 0x325   :  { %v5449_v6 = vpop.eup %5448 }
 0x326   :  { %v5313_v1 = vpack.c.bf16 %v5449_v6, %v5447_v5 }
 0x328   :  { %4719 = vst [vmem:[#allocation8 + $0xf8] sm:$0xff] %v5313_v1 }
 0x329   :  { %5523 = shalt.err (!%p5520_p5)
}
 0x32a   :  { %4731 = dma.vmem_to_hbm [thread:$0]  %s4726_s2, 4096, %s6387_s3, [#allocation4], %s5539_s15, %s5539_s15, %s5540_s16  }
 0x32b   :  { %5536 = dma.done.wait [#allocation4], 4096  }
 0x32c   :  { %5537 = vsyncadd [#allocation4], 4294963200 }
 0x32d   :  { %4735 = vsyncpa [#allocation3], 1 }
 0x32e   :  { %4736 = vsyncpa [#allocation6], 1 }
 0x32f   :  { %4737 = vsyncpa [#allocation4], 1 }

</bundles_post_ra>
